<compile_context>
chip_gen: v7x
topology: tpu7x:2x2x1
jax: 0.10.0
libtpu: 0.0.40
codegen_flags: <defaults>
</compile_context>

<pallas_src>
import functools

import numpy as np
import jax
import jax.numpy as jnp
from jax.experimental import pallas as pl
from jax.experimental.pallas import tpu as pltpu


# ----------------------------------------------------------------------------
# Fused LeNet kernel
# ----------------------------------------------------------------------------
def _lenet_kernel(x_ref, w1_ref, b1_ref, pm1_ref, w2_ref, b2_ref, pm2_ref,
                  fc1w_ref, fc1b_ref, fc2w_ref, fc2b_ref, fc3w_ref, fc3b_ref,
                  out_ref, p1_ref, p2_ref, feat_ref,
                  *, batch, cin, offs1, offs2, n1, n2, c2_in, c2_out, pooled2):
    f32 = jnp.float32
    w1 = w1_ref[...]        # [6, 25*cin]   (tap-major, cin-minor packing)
    b1 = b1_ref[...]        # [6, 1]
    pm1 = pm1_ref[...]      # [n1, n2 + pad2]  constant pooling/selection matrix
    w2 = w2_ref[...]        # [16, 150]
    b2 = b2_ref[...]        # [16, 1]
    pm2 = pm2_ref[...]      # [n2, pooled2]

    for b in range(batch):
        xb = x_ref[b]       # [cin, n1 + pad1]  flattened, right-padded image rows

        # ---- conv1 im2col: 25 shifted lane-slices into the patch scratch ----
        for t, off in enumerate(offs1):
            p1_ref[t * cin:(t + 1) * cin, :] = xb[:, off:off + n1]

        # ---- conv1 + tanh, lane-dense [6, n1] (spatial on lanes) ----
        h1 = jnp.tanh(jnp.dot(w1, p1_ref[...], preferred_element_type=f32) + b1)

        # ---- avgpool1 fused as matmul (also zero-pads tail for conv2 taps) ----
        pool1 = jnp.dot(h1, pm1, preferred_element_type=f32)     # [6, n2 + pad2]

        # ---- conv2 im2col ----
        for t, off in enumerate(offs2):
            p2_ref[t * c2_in:(t + 1) * c2_in, :] = pool1[:, off:off + n2]

        # ---- conv2 + tanh, lane-dense [16, n2] ----
        h2 = jnp.tanh(jnp.dot(w2, p2_ref[...], preferred_element_type=f32) + b2)

        # ---- avgpool2 fused as matmul -> exact [16, 25] ----
        pool2 = jnp.dot(h2, pm2, preferred_element_type=f32)

        # ---- flatten (c, h, w) -> 400-wide feature row via VMEM stores ----
        for c in range(c2_out):
            feat_ref[b:b + 1, c * pooled2:(c + 1) * pooled2] = pool2[c:c + 1, :]

    # ---- classifier (batched): fc1+tanh, fc2+tanh, fc3+softmax ----
    feats = feat_ref[...]                                          # [B, 400]
    h = jnp.tanh(jnp.dot(feats, fc1w_ref[...], preferred_element_type=f32)
                 + fc1b_ref[...])
    h = jnp.tanh(jnp.dot(h, fc2w_ref[...], preferred_element_type=f32)
                 + fc2b_ref[...])
    logits = jnp.dot(h, fc3w_ref[...], preferred_element_type=f32) + fc3b_ref[...]
    m = jnp.max(logits, axis=-1, keepdims=True)
    e = jnp.exp(logits - m)
    out_ref[...] = (e / jnp.sum(e, axis=-1, keepdims=True)).astype(out_ref.dtype)


# ----------------------------------------------------------------------------
# Host-side constants and one-time weight packing
# ----------------------------------------------------------------------------
def _pool_matrix(h_in, w_in, row_stride, n_rows, n_cols):
    """Constant selection matrix for 2x2/stride-2 average pooling that also
    compacts a `row_stride`-strided "padded spatial" layout to a dense one."""
    ho, wo = h_in // 2, w_in // 2
    m = np.zeros((n_rows, n_cols), np.float32)
    for i in range(ho):
        for j in range(wo):
            col = i * wo + j
            for a in range(2):
                for bb in range(2):
                    m[(2 * i + a) * row_stride + (2 * j + bb), col] = 0.25
    return m


def pack_lenet_params(params):
    """One-time packing: conv weights -> [Cout, kh*kw*Cin] (tap-major, cin-minor),
    linear weights pre-transposed to [in, out], biases shaped for broadcast."""
    cin = params["conv1_w"].shape[1]
    return dict(
        w1p=jnp.transpose(params["conv1_w"], (0, 2, 3, 1)).reshape(6, 25 * cin).astype(jnp.float32),
        b1=params["conv1_b"].reshape(6, 1).astype(jnp.float32),
        w2p=jnp.transpose(params["conv2_w"], (0, 2, 3, 1)).reshape(16, 150).astype(jnp.float32),
        b2=params["conv2_b"].reshape(16, 1).astype(jnp.float32),
        fc1_wT=params["fc1_w"].T.astype(jnp.float32),     # [400, 120]
        fc1_b=params["fc1_b"].reshape(1, -1).astype(jnp.float32),
        fc2_wT=params["fc2_w"].T.astype(jnp.float32),     # [120, 84]
        fc2_b=params["fc2_b"].reshape(1, -1).astype(jnp.float32),
        fc3_wT=params["fc3_w"].T.astype(jnp.float32),     # [84, 10]
        fc3_b=params["fc3_b"].reshape(1, -1).astype(jnp.float32),
    )


# ----------------------------------------------------------------------------
# Forward wrapper (single pallas_call)
# ----------------------------------------------------------------------------
def lenet_forward(x, packed, padding=0):
    """x: [B, C, H, W] NCHW f32. Returns softmax probabilities [B, 10]."""
    B, C, H, W = x.shape
    if padding:
        x = jnp.pad(x, ((0, 0), (0, 0), (padding, padding), (padding, padding)))
        H, W = H + 2 * padding, W + 2 * padding
    k = 5
    H1, W1 = H - k + 1, W - k + 1           # conv1 output
    H1p, W1p = H1 // 2, W1 // 2             # pool1 output
    H2, W2 = H1p - k + 1, W1p - k + 1       # conv2 output
    H2p, W2p = H2 // 2, W2 // 2             # pool2 output
    n_feat = packed["fc1_wT"].shape[0]
    assert 16 * H2p * W2p == n_feat, "feature count mismatch with classifier"

    n1 = H * W                              # conv1 padded-spatial width
    pad1 = (k - 1) * W + (k - 1)            # max conv1 tap offset
    n2 = H1p * W1p                          # pool1 dense width
    pad2 = (k - 1) * W1p + (k - 1)          # max conv2 tap offset
    pooled2 = H2p * W2p

    offs1 = tuple(di * W + dj for di in range(k) for dj in range(k))
    offs2 = tuple(di * W1p + dj for di in range(k) for dj in range(k))

    # flattened, right-padded image rows (reshape is layout-free, pad is tiny)
    x_flat = jnp.pad(x.reshape(B, C, n1).astype(jnp.float32),
                     ((0, 0), (0, 0), (0, pad1)))

    pm1 = jnp.asarray(_pool_matrix(H1, W1, W, n1, n2 + pad2))
    pm2 = jnp.asarray(_pool_matrix(H2, W2, W1p, n2, pooled2))
    n_classes = packed["fc3_wT"].shape[1]

    kernel = functools.partial(
        _lenet_kernel, batch=B, cin=C, offs1=offs1, offs2=offs2,
        n1=n1, n2=n2, c2_in=6, c2_out=16, pooled2=pooled2)

    def full(a):
        nd = a.ndim
        return pl.BlockSpec(a.shape, lambda i, _nd=nd: (0,) * _nd)

    inputs = (x_flat, packed["w1p"], packed["b1"], pm1,
              packed["w2p"], packed["b2"], pm2,
              packed["fc1_wT"], packed["fc1_b"],
              packed["fc2_wT"], packed["fc2_b"],
              packed["fc3_wT"], packed["fc3_b"])

    return pl.pallas_call(
        kernel,
        out_shape=jax.ShapeDtypeStruct((B, n_classes), jnp.float32),
        grid=(1,),
        in_specs=[full(a) for a in inputs],
        out_specs=pl.BlockSpec((B, n_classes), lambda i: (0, 0)),
        scratch_shapes=[
            pltpu.VMEM((25 * C, n1), jnp.float32),    # conv1 im2col patches
            pltpu.VMEM((25 * 6, n2), jnp.float32),    # conv2 im2col patches
            pltpu.VMEM((B, n_feat), jnp.float32),     # flattened classifier input
        ],
        compiler_params=pltpu.CompilerParams(
            dimension_semantics=("arbitrary",)),
    )(*inputs)


# ----------------------------------------------------------------------------
# Deterministic parameter init (torch-style uniform) and driver
# ----------------------------------------------------------------------------
def init_lenet_params(key, num_channels=1):
    def uniform(key, shape, fan_in):
        bound = 1.0 / jnp.sqrt(jnp.float32(fan_in))
        return jax.random.uniform(key, shape, jnp.float32, -bound, bound)

    ks = jax.random.split(key, 10)
    p = {}
    p["conv1_w"] = uniform(ks[0], (6, num_channels, 5, 5), num_channels * 25)
    p["conv1_b"] = uniform(ks[1], (6,), num_channels * 25)
    p["conv2_w"] = uniform(ks[2], (16, 6, 5, 5), 6 * 25)
    p["conv2_b"] = uniform(ks[3], (16,), 6 * 25)
    p["fc1_w"] = uniform(ks[4], (120, 400), 400)   # torch Linear layout [out, in]
    p["fc1_b"] = uniform(ks[5], (120,), 400)
    p["fc2_w"] = uniform(ks[6], (84, 120), 120)
    p["fc2_b"] = uniform(ks[7], (84,), 120)
    p["fc3_w"] = uniform(ks[8], (10, 84), 84)
    p["fc3_b"] = uniform(ks[9], (10,), 84)
    return p


if __name__ == "__main__":
    # params.num_channels = 1, params.padding = 0 -> 32x32 input gives the
    # 16*5*5 = 400 features hard-coded in the classifier.
    key = jax.random.PRNGKey(0)
    k_param, k_x = jax.random.split(key)
    params = init_lenet_params(k_param, num_channels=1)
    packed = pack_lenet_params(params)
    x = jax.random.normal(k_x, (2, 1, 32, 32), dtype=jnp.float32)

    fwd = jax.jit(lambda xx, pp: lenet_forward(xx, pp, padding=0))
    out = jax.block_until_ready(fwd(x, packed))

    assert out.shape == (2, 10), out.shape
    assert bool(jnp.all(jnp.isfinite(out)))
    row_sums = jnp.sum(out, axis=1)
    assert bool(jnp.all(jnp.abs(row_sums - 1.0) < 1e-4)), row_sums
    print("KERNEL_OK")
</pallas_src>

<mosaic_0001>
module attributes {stable_mosaic.version = 11 : i64} {
  func.func @_lenet_kernel(%arg0: i32, %arg1: memref<2x1x1156xf32, #tpu.memory_space<vmem>>, %arg2: memref<6x25xf32, #tpu.memory_space<vmem>>, %arg3: memref<6x1xf32, #tpu.memory_space<vmem>>, %arg4: memref<1024x256xf32, #tpu.memory_space<vmem>>, %arg5: memref<16x150xf32, #tpu.memory_space<vmem>>, %arg6: memref<16x1xf32, #tpu.memory_space<vmem>>, %arg7: memref<196x25xf32, #tpu.memory_space<vmem>>, %arg8: memref<400x120xf32, #tpu.memory_space<vmem>>, %arg9: memref<1x120xf32, #tpu.memory_space<vmem>>, %arg10: memref<120x84xf32, #tpu.memory_space<vmem>>, %arg11: memref<1x84xf32, #tpu.memory_space<vmem>>, %arg12: memref<84x10xf32, #tpu.memory_space<vmem>>, %arg13: memref<1x10xf32, #tpu.memory_space<vmem>>, %arg14: memref<2x10xf32, #tpu.memory_space<vmem>>, %arg15: memref<25x1024xf32, #tpu.memory_space<vmem>>, %arg16: memref<150x196xf32, #tpu.memory_space<vmem>>, %arg17: memref<2x400xf32, #tpu.memory_space<vmem>>) attributes {dimension_semantics = [#tpu.dimension_semantics<arbitrary>], iteration_bounds = array<i64: 1>, scalar_prefetch = 0 : i64, scratch_operands = 3 : i64, tpu.core_type = #tpu.core_type<tc>, window_params = [{pipeline_mode = #tpu.pipeline_mode<synchronous>, transform_indices = @transform_0, window_bounds = array<i64: 2, 1, 1156>}, {pipeline_mode = #tpu.pipeline_mode<synchronous>, transform_indices = @transform_1, window_bounds = array<i64: 6, 25>}, {pipeline_mode = #tpu.pipeline_mode<synchronous>, transform_indices = @transform_2, window_bounds = array<i64: 6, 1>}, {pipeline_mode = #tpu.pipeline_mode<synchronous>, transform_indices = @transform_3, window_bounds = array<i64: 1024, 256>}, {pipeline_mode = #tpu.pipeline_mode<synchronous>, transform_indices = @transform_4, window_bounds = array<i64: 16, 150>}, {pipeline_mode = #tpu.pipeline_mode<synchronous>, transform_indices = @transform_5, window_bounds = array<i64: 16, 1>}, {pipeline_mode = #tpu.pipeline_mode<synchronous>, transform_indices = @transform_6, window_bounds = array<i64: 196, 25>}, {pipeline_mode = #tpu.pipeline_mode<synchronous>, transform_indices = @transform_7, window_bounds = array<i64: 400, 120>}, {pipeline_mode = #tpu.pipeline_mode<synchronous>, transform_indices = @transform_8, window_bounds = array<i64: 1, 120>}, {pipeline_mode = #tpu.pipeline_mode<synchronous>, transform_indices = @transform_9, window_bounds = array<i64: 120, 84>}, {pipeline_mode = #tpu.pipeline_mode<synchronous>, transform_indices = @transform_10, window_bounds = array<i64: 1, 84>}, {pipeline_mode = #tpu.pipeline_mode<synchronous>, transform_indices = @transform_11, window_bounds = array<i64: 84, 10>}, {pipeline_mode = #tpu.pipeline_mode<synchronous>, transform_indices = @transform_12, window_bounds = array<i64: 1, 10>}, {pipeline_mode = #tpu.pipeline_mode<synchronous>, transform_indices = @transform_13, window_bounds = array<i64: 2, 10>}]} {
    %c0 = arith.constant 0 : index
    %c0_0 = arith.constant 0 : index
    %0 = vector.load %arg2[%c0, %c0_0] : memref<6x25xf32, #tpu.memory_space<vmem>>, vector<6x25xf32>
    %c0_1 = arith.constant 0 : index
    %c0_2 = arith.constant 0 : index
    %1 = vector.load %arg3[%c0_1, %c0_2] : memref<6x1xf32, #tpu.memory_space<vmem>>, vector<6x1xf32>
    %c0_3 = arith.constant 0 : index
    %c0_4 = arith.constant 0 : index
    %2 = vector.load %arg4[%c0_3, %c0_4] : memref<1024x256xf32, #tpu.memory_space<vmem>>, vector<1024x256xf32>
    %c0_5 = arith.constant 0 : index
    %c0_6 = arith.constant 0 : index
    %3 = vector.load %arg5[%c0_5, %c0_6] : memref<16x150xf32, #tpu.memory_space<vmem>>, vector<16x150xf32>
    %c0_7 = arith.constant 0 : index
    %c0_8 = arith.constant 0 : index
    %4 = vector.load %arg6[%c0_7, %c0_8] : memref<16x1xf32, #tpu.memory_space<vmem>>, vector<16x1xf32>
    %c0_9 = arith.constant 0 : index
    %c0_10 = arith.constant 0 : index
    %5 = vector.load %arg7[%c0_9, %c0_10] : memref<196x25xf32, #tpu.memory_space<vmem>>, vector<196x25xf32>
    %c0_11 = arith.constant 0 : index
    %c0_12 = arith.constant 0 : index
    %c0_13 = arith.constant 0 : index
    %6 = vector.load %arg1[%c0_11, %c0_12, %c0_13] : memref<2x1x1156xf32, #tpu.memory_space<vmem>>, vector<1x1x1156xf32>
    %7 = vector.shape_cast %6 : vector<1x1x1156xf32> to vector<1x1156xf32>
    %8 = vector.extract_strided_slice %7 {offsets = [0, 0], sizes = [1, 1024], strides = [1, 1]} : vector<1x1156xf32> to vector<1x1024xf32>
    %c0_14 = arith.constant 0 : index
    %c0_15 = arith.constant 0 : index
    %9 = vector.load %arg15[%c0_14, %c0_15] : memref<25x1024xf32, #tpu.memory_space<vmem>>, vector<1x1024xf32>
    tpu.vector_store %arg15[%c0_14, %c0_15], %8 {strides = array<i32>} : memref<25x1024xf32, #tpu.memory_space<vmem>>, vector<1x1024xf32>,
    %10 = vector.extract_strided_slice %7 {offsets = [0, 1], sizes = [1, 1024], strides = [1, 1]} : vector<1x1156xf32> to vector<1x1024xf32>
    %c1 = arith.constant 1 : index
    %c0_16 = arith.constant 0 : index
    %11 = vector.load %arg15[%c1, %c0_16] : memref<25x1024xf32, #tpu.memory_space<vmem>>, vector<1x1024xf32>
    tpu.vector_store %arg15[%c1, %c0_16], %10 {strides = array<i32>} : memref<25x1024xf32, #tpu.memory_space<vmem>>, vector<1x1024xf32>,
    %12 = vector.extract_strided_slice %7 {offsets = [0, 2], sizes = [1, 1024], strides = [1, 1]} : vector<1x1156xf32> to vector<1x1024xf32>
    %c2 = arith.constant 2 : index
    %c0_17 = arith.constant 0 : index
    %13 = vector.load %arg15[%c2, %c0_17] : memref<25x1024xf32, #tpu.memory_space<vmem>>, vector<1x1024xf32>
    tpu.vector_store %arg15[%c2, %c0_17], %12 {strides = array<i32>} : memref<25x1024xf32, #tpu.memory_space<vmem>>, vector<1x1024xf32>,
    %14 = vector.extract_strided_slice %7 {offsets = [0, 3], sizes = [1, 1024], strides = [1, 1]} : vector<1x1156xf32> to vector<1x1024xf32>
    %c3 = arith.constant 3 : index
    %c0_18 = arith.constant 0 : index
    %15 = vector.load %arg15[%c3, %c0_18] : memref<25x1024xf32, #tpu.memory_space<vmem>>, vector<1x1024xf32>
    tpu.vector_store %arg15[%c3, %c0_18], %14 {strides = array<i32>} : memref<25x1024xf32, #tpu.memory_space<vmem>>, vector<1x1024xf32>,
    %16 = vector.extract_strided_slice %7 {offsets = [0, 4], sizes = [1, 1024], strides = [1, 1]} : vector<1x1156xf32> to vector<1x1024xf32>
    %c4 = arith.constant 4 : index
    %c0_19 = arith.constant 0 : index
    %17 = vector.load %arg15[%c4, %c0_19] : memref<25x1024xf32, #tpu.memory_space<vmem>>, vector<1x1024xf32>
    tpu.vector_store %arg15[%c4, %c0_19], %16 {strides = array<i32>} : memref<25x1024xf32, #tpu.memory_space<vmem>>, vector<1x1024xf32>,
    %18 = vector.extract_strided_slice %7 {offsets = [0, 32], sizes = [1, 1024], strides = [1, 1]} : vector<1x1156xf32> to vector<1x1024xf32>
    %c5 = arith.constant 5 : index
    %c0_20 = arith.constant 0 : index
    %19 = vector.load %arg15[%c5, %c0_20] : memref<25x1024xf32, #tpu.memory_space<vmem>>, vector<1x1024xf32>
    tpu.vector_store %arg15[%c5, %c0_20], %18 {strides = array<i32>} : memref<25x1024xf32, #tpu.memory_space<vmem>>, vector<1x1024xf32>,
    %20 = vector.extract_strided_slice %7 {offsets = [0, 33], sizes = [1, 1024], strides = [1, 1]} : vector<1x1156xf32> to vector<1x1024xf32>
    %c6 = arith.constant 6 : index
    %c0_21 = arith.constant 0 : index
    %21 = vector.load %arg15[%c6, %c0_21] : memref<25x1024xf32, #tpu.memory_space<vmem>>, vector<1x1024xf32>
    tpu.vector_store %arg15[%c6, %c0_21], %20 {strides = array<i32>} : memref<25x1024xf32, #tpu.memory_space<vmem>>, vector<1x1024xf32>,
    %22 = vector.extract_strided_slice %7 {offsets = [0, 34], sizes = [1, 1024], strides = [1, 1]} : vector<1x1156xf32> to vector<1x1024xf32>
    %c7 = arith.constant 7 : index
    %c0_22 = arith.constant 0 : index
    %23 = vector.load %arg15[%c7, %c0_22] : memref<25x1024xf32, #tpu.memory_space<vmem>>, vector<1x1024xf32>
    tpu.vector_store %arg15[%c7, %c0_22], %22 {strides = array<i32>} : memref<25x1024xf32, #tpu.memory_space<vmem>>, vector<1x1024xf32>,
    %24 = vector.extract_strided_slice %7 {offsets = [0, 35], sizes = [1, 1024], strides = [1, 1]} : vector<1x1156xf32> to vector<1x1024xf32>
    %c8 = arith.constant 8 : index
    %c0_23 = arith.constant 0 : index
    %25 = vector.load %arg15[%c8, %c0_23] : memref<25x1024xf32, #tpu.memory_space<vmem>>, vector<1x1024xf32>
    tpu.vector_store %arg15[%c8, %c0_23], %24 {strides = array<i32>} : memref<25x1024xf32, #tpu.memory_space<vmem>>, vector<1x1024xf32>,
    %26 = vector.extract_strided_slice %7 {offsets = [0, 36], sizes = [1, 1024], strides = [1, 1]} : vector<1x1156xf32> to vector<1x1024xf32>
    %c9 = arith.constant 9 : index
    %c0_24 = arith.constant 0 : index
    %27 = vector.load %arg15[%c9, %c0_24] : memref<25x1024xf32, #tpu.memory_space<vmem>>, vector<1x1024xf32>
    tpu.vector_store %arg15[%c9, %c0_24], %26 {strides = array<i32>} : memref<25x1024xf32, #tpu.memory_space<vmem>>, vector<1x1024xf32>,
    %28 = vector.extract_strided_slice %7 {offsets = [0, 64], sizes = [1, 1024], strides = [1, 1]} : vector<1x1156xf32> to vector<1x1024xf32>
    %c10 = arith.constant 10 : index
    %c0_25 = arith.constant 0 : index
    %29 = vector.load %arg15[%c10, %c0_25] : memref<25x1024xf32, #tpu.memory_space<vmem>>, vector<1x1024xf32>
    tpu.vector_store %arg15[%c10, %c0_25], %28 {strides = array<i32>} : memref<25x1024xf32, #tpu.memory_space<vmem>>, vector<1x1024xf32>,
    %30 = vector.extract_strided_slice %7 {offsets = [0, 65], sizes = [1, 1024], strides = [1, 1]} : vector<1x1156xf32> to vector<1x1024xf32>
    %c11 = arith.constant 11 : index
    %c0_26 = arith.constant 0 : index
    %31 = vector.load %arg15[%c11, %c0_26] : memref<25x1024xf32, #tpu.memory_space<vmem>>, vector<1x1024xf32>
    tpu.vector_store %arg15[%c11, %c0_26], %30 {strides = array<i32>} : memref<25x1024xf32, #tpu.memory_space<vmem>>, vector<1x1024xf32>,
    %32 = vector.extract_strided_slice %7 {offsets = [0, 66], sizes = [1, 1024], strides = [1, 1]} : vector<1x1156xf32> to vector<1x1024xf32>
    %c12 = arith.constant 12 : index
    %c0_27 = arith.constant 0 : index
    %33 = vector.load %arg15[%c12, %c0_27] : memref<25x1024xf32, #tpu.memory_space<vmem>>, vector<1x1024xf32>
    tpu.vector_store %arg15[%c12, %c0_27], %32 {strides = array<i32>} : memref<25x1024xf32, #tpu.memory_space<vmem>>, vector<1x1024xf32>,
    %34 = vector.extract_strided_slice %7 {offsets = [0, 67], sizes = [1, 1024], strides = [1, 1]} : vector<1x1156xf32> to vector<1x1024xf32>
    %c13 = arith.constant 13 : index
    %c0_28 = arith.constant 0 : index
    %35 = vector.load %arg15[%c13, %c0_28] : memref<25x1024xf32, #tpu.memory_space<vmem>>, vector<1x1024xf32>
    tpu.vector_store %arg15[%c13, %c0_28], %34 {strides = array<i32>} : memref<25x1024xf32, #tpu.memory_space<vmem>>, vector<1x1024xf32>,
    %36 = vector.extract_strided_slice %7 {offsets = [0, 68], sizes = [1, 1024], strides = [1, 1]} : vector<1x1156xf32> to vector<1x1024xf32>
    %c14 = arith.constant 14 : index
    %c0_29 = arith.constant 0 : index
    %37 = vector.load %arg15[%c14, %c0_29] : memref<25x1024xf32, #tpu.memory_space<vmem>>, vector<1x1024xf32>
    tpu.vector_store %arg15[%c14, %c0_29], %36 {strides = array<i32>} : memref<25x1024xf32, #tpu.memory_space<vmem>>, vector<1x1024xf32>,
    %38 = vector.extract_strided_slice %7 {offsets = [0, 96], sizes = [1, 1024], strides = [1, 1]} : vector<1x1156xf32> to vector<1x1024xf32>
    %c15 = arith.constant 15 : index
    %c0_30 = arith.constant 0 : index
    %39 = vector.load %arg15[%c15, %c0_30] : memref<25x1024xf32, #tpu.memory_space<vmem>>, vector<1x1024xf32>
    tpu.vector_store %arg15[%c15, %c0_30], %38 {strides = array<i32>} : memref<25x1024xf32, #tpu.memory_space<vmem>>, vector<1x1024xf32>,
    %40 = vector.extract_strided_slice %7 {offsets = [0, 97], sizes = [1, 1024], strides = [1, 1]} : vector<1x1156xf32> to vector<1x1024xf32>
    %c16 = arith.constant 16 : index
    %c0_31 = arith.constant 0 : index
    %41 = vector.load %arg15[%c16, %c0_31] : memref<25x1024xf32, #tpu.memory_space<vmem>>, vector<1x1024xf32>
    tpu.vector_store %arg15[%c16, %c0_31], %40 {strides = array<i32>} : memref<25x1024xf32, #tpu.memory_space<vmem>>, vector<1x1024xf32>,
    %42 = vector.extract_strided_slice %7 {offsets = [0, 98], sizes = [1, 1024], strides = [1, 1]} : vector<1x1156xf32> to vector<1x1024xf32>
    %c17 = arith.constant 17 : index
    %c0_32 = arith.constant 0 : index
    %43 = vector.load %arg15[%c17, %c0_32] : memref<25x1024xf32, #tpu.memory_space<vmem>>, vector<1x1024xf32>
    tpu.vector_store %arg15[%c17, %c0_32], %42 {strides = array<i32>} : memref<25x1024xf32, #tpu.memory_space<vmem>>, vector<1x1024xf32>,
    %44 = vector.extract_strided_slice %7 {offsets = [0, 99], sizes = [1, 1024], strides = [1, 1]} : vector<1x1156xf32> to vector<1x1024xf32>
    %c18 = arith.constant 18 : index
    %c0_33 = arith.constant 0 : index
    %45 = vector.load %arg15[%c18, %c0_33] : memref<25x1024xf32, #tpu.memory_space<vmem>>, vector<1x1024xf32>
    tpu.vector_store %arg15[%c18, %c0_33], %44 {strides = array<i32>} : memref<25x1024xf32, #tpu.memory_space<vmem>>, vector<1x1024xf32>,
    %46 = vector.extract_strided_slice %7 {offsets = [0, 100], sizes = [1, 1024], strides = [1, 1]} : vector<1x1156xf32> to vector<1x1024xf32>
    %c19 = arith.constant 19 : index
    %c0_34 = arith.constant 0 : index
    %47 = vector.load %arg15[%c19, %c0_34] : memref<25x1024xf32, #tpu.memory_space<vmem>>, vector<1x1024xf32>
    tpu.vector_store %arg15[%c19, %c0_34], %46 {strides = array<i32>} : memref<25x1024xf32, #tpu.memory_space<vmem>>, vector<1x1024xf32>,
    %48 = vector.extract_strided_slice %7 {offsets = [0, 128], sizes = [1, 1024], strides = [1, 1]} : vector<1x1156xf32> to vector<1x1024xf32>
    %c20 = arith.constant 20 : index
    %c0_35 = arith.constant 0 : index
    %49 = vector.load %arg15[%c20, %c0_35] : memref<25x1024xf32, #tpu.memory_space<vmem>>, vector<1x1024xf32>
    tpu.vector_store %arg15[%c20, %c0_35], %48 {strides = array<i32>} : memref<25x1024xf32, #tpu.memory_space<vmem>>, vector<1x1024xf32>,
    %50 = vector.extract_strided_slice %7 {offsets = [0, 129], sizes = [1, 1024], strides = [1, 1]} : vector<1x1156xf32> to vector<1x1024xf32>
    %c21 = arith.constant 21 : index
    %c0_36 = arith.constant 0 : index
    %51 = vector.load %arg15[%c21, %c0_36] : memref<25x1024xf32, #tpu.memory_space<vmem>>, vector<1x1024xf32>
    tpu.vector_store %arg15[%c21, %c0_36], %50 {strides = array<i32>} : memref<25x1024xf32, #tpu.memory_space<vmem>>, vector<1x1024xf32>,
    %52 = vector.extract_strided_slice %7 {offsets = [0, 130], sizes = [1, 1024], strides = [1, 1]} : vector<1x1156xf32> to vector<1x1024xf32>
    %c22 = arith.constant 22 : index
    %c0_37 = arith.constant 0 : index
    %53 = vector.load %arg15[%c22, %c0_37] : memref<25x1024xf32, #tpu.memory_space<vmem>>, vector<1x1024xf32>
    tpu.vector_store %arg15[%c22, %c0_37], %52 {strides = array<i32>} : memref<25x1024xf32, #tpu.memory_space<vmem>>, vector<1x1024xf32>,
    %54 = vector.extract_strided_slice %7 {offsets = [0, 131], sizes = [1, 1024], strides = [1, 1]} : vector<1x1156xf32> to vector<1x1024xf32>
    %c23 = arith.constant 23 : index
    %c0_38 = arith.constant 0 : index
    %55 = vector.load %arg15[%c23, %c0_38] : memref<25x1024xf32, #tpu.memory_space<vmem>>, vector<1x1024xf32>
    tpu.vector_store %arg15[%c23, %c0_38], %54 {strides = array<i32>} : memref<25x1024xf32, #tpu.memory_space<vmem>>, vector<1x1024xf32>,
    %56 = vector.extract_strided_slice %7 {offsets = [0, 132], sizes = [1, 1024], strides = [1, 1]} : vector<1x1156xf32> to vector<1x1024xf32>
    %c24 = arith.constant 24 : index
    %c0_39 = arith.constant 0 : index
    %57 = vector.load %arg15[%c24, %c0_39] : memref<25x1024xf32, #tpu.memory_space<vmem>>, vector<1x1024xf32>
    tpu.vector_store %arg15[%c24, %c0_39], %56 {strides = array<i32>} : memref<25x1024xf32, #tpu.memory_space<vmem>>, vector<1x1024xf32>,
    %c0_40 = arith.constant 0 : index
    %c0_41 = arith.constant 0 : index
    %58 = vector.load %arg15[%c0_40, %c0_41] : memref<25x1024xf32, #tpu.memory_space<vmem>>, vector<25x1024xf32>
    %cst = arith.constant dense<0.000000e+00> : vector<6x1024xf32>
    %59 = tpu.matmul %0, %58, %cst {dimension_numbers = #tpu.dot_dimension_numbers<[1], [0], [0], [1], [0, 0, 1, 1], [], []>} : vector<6x25xf32>, vector<25x1024xf32>, vector<6x1024xf32> -> vector<6x1024xf32>
    %60 = vector.broadcast %1 : vector<6x1xf32> to vector<6x1024xf32>
    %61 = arith.addf %59, %60 : vector<6x1024xf32>
    %62 = math.tanh %61 : vector<6x1024xf32>
    %cst_42 = arith.constant dense<0.000000e+00> : vector<6x256xf32>
    %63 = tpu.matmul %62, %2, %cst_42 {dimension_numbers = #tpu.dot_dimension_numbers<[1], [0], [0], [1], [0, 0, 1, 1], [], []>} : vector<6x1024xf32>, vector<1024x256xf32>, vector<6x256xf32> -> vector<6x256xf32>
    %64 = vector.extract_strided_slice %63 {offsets = [0, 0], sizes = [6, 196], strides = [1, 1]} : vector<6x256xf32> to vector<6x196xf32>
    %c0_43 = arith.constant 0 : index
    %c0_44 = arith.constant 0 : index
    %65 = vector.load %arg16[%c0_43, %c0_44] : memref<150x196xf32, #tpu.memory_space<vmem>>, vector<6x196xf32>
    tpu.vector_store %arg16[%c0_43, %c0_44], %64 {strides = array<i32>} : memref<150x196xf32, #tpu.memory_space<vmem>>, vector<6x196xf32>,
    %66 = vector.extract_strided_slice %63 {offsets = [0, 1], sizes = [6, 196], strides = [1, 1]} : vector<6x256xf32> to vector<6x196xf32>
    %c6_45 = arith.constant 6 : index
    %c0_46 = arith.constant 0 : index
    %67 = vector.load %arg16[%c6_45, %c0_46] : memref<150x196xf32, #tpu.memory_space<vmem>>, vector<6x196xf32>
    tpu.vector_store %arg16[%c6_45, %c0_46], %66 {strides = array<i32>} : memref<150x196xf32, #tpu.memory_space<vmem>>, vector<6x196xf32>,
    %68 = vector.extract_strided_slice %63 {offsets = [0, 2], sizes = [6, 196], strides = [1, 1]} : vector<6x256xf32> to vector<6x196xf32>
    %c12_47 = arith.constant 12 : index
    %c0_48 = arith.constant 0 : index
    %69 = vector.load %arg16[%c12_47, %c0_48] : memref<150x196xf32, #tpu.memory_space<vmem>>, vector<6x196xf32>
    tpu.vector_store %arg16[%c12_47, %c0_48], %68 {strides = array<i32>} : memref<150x196xf32, #tpu.memory_space<vmem>>, vector<6x196xf32>,
    %70 = vector.extract_strided_slice %63 {offsets = [0, 3], sizes = [6, 196], strides = [1, 1]} : vector<6x256xf32> to vector<6x196xf32>
    %c18_49 = arith.constant 18 : index
    %c0_50 = arith.constant 0 : index
    %71 = vector.load %arg16[%c18_49, %c0_50] : memref<150x196xf32, #tpu.memory_space<vmem>>, vector<6x196xf32>
    tpu.vector_store %arg16[%c18_49, %c0_50], %70 {strides = array<i32>} : memref<150x196xf32, #tpu.memory_space<vmem>>, vector<6x196xf32>,
    %72 = vector.extract_strided_slice %63 {offsets = [0, 4], sizes = [6, 196], strides = [1, 1]} : vector<6x256xf32> to vector<6x196xf32>
    %c24_51 = arith.constant 24 : index
    %c0_52 = arith.constant 0 : index
    %73 = vector.load %arg16[%c24_51, %c0_52] : memref<150x196xf32, #tpu.memory_space<vmem>>, vector<6x196xf32>
    tpu.vector_store %arg16[%c24_51, %c0_52], %72 {strides = array<i32>} : memref<150x196xf32, #tpu.memory_space<vmem>>, vector<6x196xf32>,
    %74 = vector.extract_strided_slice %63 {offsets = [0, 14], sizes = [6, 196], strides = [1, 1]} : vector<6x256xf32> to vector<6x196xf32>
    %c30 = arith.constant 30 : index
    %c0_53 = arith.constant 0 : index
    %75 = vector.load %arg16[%c30, %c0_53] : memref<150x196xf32, #tpu.memory_space<vmem>>, vector<6x196xf32>
    tpu.vector_store %arg16[%c30, %c0_53], %74 {strides = array<i32>} : memref<150x196xf32, #tpu.memory_space<vmem>>, vector<6x196xf32>,
    %76 = vector.extract_strided_slice %63 {offsets = [0, 15], sizes = [6, 196], strides = [1, 1]} : vector<6x256xf32> to vector<6x196xf32>
    %c36 = arith.constant 36 : index
    %c0_54 = arith.constant 0 : index
    %77 = vector.load %arg16[%c36, %c0_54] : memref<150x196xf32, #tpu.memory_space<vmem>>, vector<6x196xf32>
    tpu.vector_store %arg16[%c36, %c0_54], %76 {strides = array<i32>} : memref<150x196xf32, #tpu.memory_space<vmem>>, vector<6x196xf32>,
    %78 = vector.extract_strided_slice %63 {offsets = [0, 16], sizes = [6, 196], strides = [1, 1]} : vector<6x256xf32> to vector<6x196xf32>
    %c42 = arith.constant 42 : index
    %c0_55 = arith.constant 0 : index
    %79 = vector.load %arg16[%c42, %c0_55] : memref<150x196xf32, #tpu.memory_space<vmem>>, vector<6x196xf32>
    tpu.vector_store %arg16[%c42, %c0_55], %78 {strides = array<i32>} : memref<150x196xf32, #tpu.memory_space<vmem>>, vector<6x196xf32>,
    %80 = vector.extract_strided_slice %63 {offsets = [0, 17], sizes = [6, 196], strides = [1, 1]} : vector<6x256xf32> to vector<6x196xf32>
    %c48 = arith.constant 48 : index
    %c0_56 = arith.constant 0 : index
    %81 = vector.load %arg16[%c48, %c0_56] : memref<150x196xf32, #tpu.memory_space<vmem>>, vector<6x196xf32>
    tpu.vector_store %arg16[%c48, %c0_56], %80 {strides = array<i32>} : memref<150x196xf32, #tpu.memory_space<vmem>>, vector<6x196xf32>,
    %82 = vector.extract_strided_slice %63 {offsets = [0, 18], sizes = [6, 196], strides = [1, 1]} : vector<6x256xf32> to vector<6x196xf32>
    %c54 = arith.constant 54 : index
    %c0_57 = arith.constant 0 : index
    %83 = vector.load %arg16[%c54, %c0_57] : memref<150x196xf32, #tpu.memory_space<vmem>>, vector<6x196xf32>
    tpu.vector_store %arg16[%c54, %c0_57], %82 {strides = array<i32>} : memref<150x196xf32, #tpu.memory_space<vmem>>, vector<6x196xf32>,
    %84 = vector.extract_strided_slice %63 {offsets = [0, 28], sizes = [6, 196], strides = [1, 1]} : vector<6x256xf32> to vector<6x196xf32>
    %c60 = arith.constant 60 : index
    %c0_58 = arith.constant 0 : index
    %85 = vector.load %arg16[%c60, %c0_58] : memref<150x196xf32, #tpu.memory_space<vmem>>, vector<6x196xf32>
    tpu.vector_store %arg16[%c60, %c0_58], %84 {strides = array<i32>} : memref<150x196xf32, #tpu.memory_space<vmem>>, vector<6x196xf32>,
    %86 = vector.extract_strided_slice %63 {offsets = [0, 29], sizes = [6, 196], strides = [1, 1]} : vector<6x256xf32> to vector<6x196xf32>
    %c66 = arith.constant 66 : index
    %c0_59 = arith.constant 0 : index
    %87 = vector.load %arg16[%c66, %c0_59] : memref<150x196xf32, #tpu.memory_space<vmem>>, vector<6x196xf32>
    tpu.vector_store %arg16[%c66, %c0_59], %86 {strides = array<i32>} : memref<150x196xf32, #tpu.memory_space<vmem>>, vector<6x196xf32>,
    %88 = vector.extract_strided_slice %63 {offsets = [0, 30], sizes = [6, 196], strides = [1, 1]} : vector<6x256xf32> to vector<6x196xf32>
    %c72 = arith.constant 72 : index
    %c0_60 = arith.constant 0 : index
    %89 = vector.load %arg16[%c72, %c0_60] : memref<150x196xf32, #tpu.memory_space<vmem>>, vector<6x196xf32>
    tpu.vector_store %arg16[%c72, %c0_60], %88 {strides = array<i32>} : memref<150x196xf32, #tpu.memory_space<vmem>>, vector<6x196xf32>,
    %90 = vector.extract_strided_slice %63 {offsets = [0, 31], sizes = [6, 196], strides = [1, 1]} : vector<6x256xf32> to vector<6x196xf32>
    %c78 = arith.constant 78 : index
    %c0_61 = arith.constant 0 : index
    %91 = vector.load %arg16[%c78, %c0_61] : memref<150x196xf32, #tpu.memory_space<vmem>>, vector<6x196xf32>
    tpu.vector_store %arg16[%c78, %c0_61], %90 {strides = array<i32>} : memref<150x196xf32, #tpu.memory_space<vmem>>, vector<6x196xf32>,
    %92 = vector.extract_strided_slice %63 {offsets = [0, 32], sizes = [6, 196], strides = [1, 1]} : vector<6x256xf32> to vector<6x196xf32>
    %c84 = arith.constant 84 : index
    %c0_62 = arith.constant 0 : index
    %93 = vector.load %arg16[%c84, %c0_62] : memref<150x196xf32, #tpu.memory_space<vmem>>, vector<6x196xf32>
    tpu.vector_store %arg16[%c84, %c0_62], %92 {strides = array<i32>} : memref<150x196xf32, #tpu.memory_space<vmem>>, vector<6x196xf32>,
    %94 = vector.extract_strided_slice %63 {offsets = [0, 42], sizes = [6, 196], strides = [1, 1]} : vector<6x256xf32> to vector<6x196xf32>
    %c90 = arith.constant 90 : index
    %c0_63 = arith.constant 0 : index
    %95 = vector.load %arg16[%c90, %c0_63] : memref<150x196xf32, #tpu.memory_space<vmem>>, vector<6x196xf32>
    tpu.vector_store %arg16[%c90, %c0_63], %94 {strides = array<i32>} : memref<150x196xf32, #tpu.memory_space<vmem>>, vector<6x196xf32>,
    %96 = vector.extract_strided_slice %63 {offsets = [0, 43], sizes = [6, 196], strides = [1, 1]} : vector<6x256xf32> to vector<6x196xf32>
    %c96 = arith.constant 96 : index
    %c0_64 = arith.constant 0 : index
    %97 = vector.load %arg16[%c96, %c0_64] : memref<150x196xf32, #tpu.memory_space<vmem>>, vector<6x196xf32>
    tpu.vector_store %arg16[%c96, %c0_64], %96 {strides = array<i32>} : memref<150x196xf32, #tpu.memory_space<vmem>>, vector<6x196xf32>,
    %98 = vector.extract_strided_slice %63 {offsets = [0, 44], sizes = [6, 196], strides = [1, 1]} : vector<6x256xf32> to vector<6x196xf32>
    %c102 = arith.constant 102 : index
    %c0_65 = arith.constant 0 : index
    %99 = vector.load %arg16[%c102, %c0_65] : memref<150x196xf32, #tpu.memory_space<vmem>>, vector<6x196xf32>
    tpu.vector_store %arg16[%c102, %c0_65], %98 {strides = array<i32>} : memref<150x196xf32, #tpu.memory_space<vmem>>, vector<6x196xf32>,
    %100 = vector.extract_strided_slice %63 {offsets = [0, 45], sizes = [6, 196], strides = [1, 1]} : vector<6x256xf32> to vector<6x196xf32>
    %c108 = arith.constant 108 : index
    %c0_66 = arith.constant 0 : index
    %101 = vector.load %arg16[%c108, %c0_66] : memref<150x196xf32, #tpu.memory_space<vmem>>, vector<6x196xf32>
    tpu.vector_store %arg16[%c108, %c0_66], %100 {strides = array<i32>} : memref<150x196xf32, #tpu.memory_space<vmem>>, vector<6x196xf32>,
    %102 = vector.extract_strided_slice %63 {offsets = [0, 46], sizes = [6, 196], strides = [1, 1]} : vector<6x256xf32> to vector<6x196xf32>
    %c114 = arith.constant 114 : index
    %c0_67 = arith.constant 0 : index
    %103 = vector.load %arg16[%c114, %c0_67] : memref<150x196xf32, #tpu.memory_space<vmem>>, vector<6x196xf32>
    tpu.vector_store %arg16[%c114, %c0_67], %102 {strides = array<i32>} : memref<150x196xf32, #tpu.memory_space<vmem>>, vector<6x196xf32>,
    %104 = vector.extract_strided_slice %63 {offsets = [0, 56], sizes = [6, 196], strides = [1, 1]} : vector<6x256xf32> to vector<6x196xf32>
    %c120 = arith.constant 120 : index
    %c0_68 = arith.constant 0 : index
    %105 = vector.load %arg16[%c120, %c0_68] : memref<150x196xf32, #tpu.memory_space<vmem>>, vector<6x196xf32>
    tpu.vector_store %arg16[%c120, %c0_68], %104 {strides = array<i32>} : memref<150x196xf32, #tpu.memory_space<vmem>>, vector<6x196xf32>,
    %106 = vector.extract_strided_slice %63 {offsets = [0, 57], sizes = [6, 196], strides = [1, 1]} : vector<6x256xf32> to vector<6x196xf32>
    %c126 = arith.constant 126 : index
    %c0_69 = arith.constant 0 : index
    %107 = vector.load %arg16[%c126, %c0_69] : memref<150x196xf32, #tpu.memory_space<vmem>>, vector<6x196xf32>
    tpu.vector_store %arg16[%c126, %c0_69], %106 {strides = array<i32>} : memref<150x196xf32, #tpu.memory_space<vmem>>, vector<6x196xf32>,
    %108 = vector.extract_strided_slice %63 {offsets = [0, 58], sizes = [6, 196], strides = [1, 1]} : vector<6x256xf32> to vector<6x196xf32>
    %c132 = arith.constant 132 : index
    %c0_70 = arith.constant 0 : index
    %109 = vector.load %arg16[%c132, %c0_70] : memref<150x196xf32, #tpu.memory_space<vmem>>, vector<6x196xf32>
    tpu.vector_store %arg16[%c132, %c0_70], %108 {strides = array<i32>} : memref<150x196xf32, #tpu.memory_space<vmem>>, vector<6x196xf32>,
    %110 = vector.extract_strided_slice %63 {offsets = [0, 59], sizes = [6, 196], strides = [1, 1]} : vector<6x256xf32> to vector<6x196xf32>
    %c138 = arith.constant 138 : index
    %c0_71 = arith.constant 0 : index
    %111 = vector.load %arg16[%c138, %c0_71] : memref<150x196xf32, #tpu.memory_space<vmem>>, vector<6x196xf32>
    tpu.vector_store %arg16[%c138, %c0_71], %110 {strides = array<i32>} : memref<150x196xf32, #tpu.memory_space<vmem>>, vector<6x196xf32>,
    %112 = vector.extract_strided_slice %63 {offsets = [0, 60], sizes = [6, 196], strides = [1, 1]} : vector<6x256xf32> to vector<6x196xf32>
    %c144 = arith.constant 144 : index
    %c0_72 = arith.constant 0 : index
    %113 = vector.load %arg16[%c144, %c0_72] : memref<150x196xf32, #tpu.memory_space<vmem>>, vector<6x196xf32>
    tpu.vector_store %arg16[%c144, %c0_72], %112 {strides = array<i32>} : memref<150x196xf32, #tpu.memory_space<vmem>>, vector<6x196xf32>,
    %c0_73 = arith.constant 0 : index
    %c0_74 = arith.constant 0 : index
    %114 = vector.load %arg16[%c0_73, %c0_74] : memref<150x196xf32, #tpu.memory_space<vmem>>, vector<150x196xf32>
    %cst_75 = arith.constant dense<0.000000e+00> : vector<16x196xf32>
    %115 = tpu.matmul %3, %114, %cst_75 {dimension_numbers = #tpu.dot_dimension_numbers<[1], [0], [0], [1], [0, 0, 1, 1], [], []>} : vector<16x150xf32>, vector<150x196xf32>, vector<16x196xf32> -> vector<16x196xf32>
    %116 = vector.broadcast %4 : vector<16x1xf32> to vector<16x196xf32>
    %117 = arith.addf %115, %116 : vector<16x196xf32>
    %118 = math.tanh %117 : vector<16x196xf32>
    %cst_76 = arith.constant dense<0.000000e+00> : vector<16x25xf32>
    %119 = tpu.matmul %118, %5, %cst_76 {dimension_numbers = #tpu.dot_dimension_numbers<[1], [0], [0], [1], [0, 0, 1, 1], [], []>} : vector<16x196xf32>, vector<196x25xf32>, vector<16x25xf32> -> vector<16x25xf32>
    %120 = vector.extract_strided_slice %119 {offsets = [0, 0], sizes = [1, 25], strides = [1, 1]} : vector<16x25xf32> to vector<1x25xf32>
    %c0_77 = arith.constant 0 : index
    %c0_78 = arith.constant 0 : index
    %121 = vector.load %arg17[%c0_77, %c0_78] : memref<2x400xf32, #tpu.memory_space<vmem>>, vector<1x25xf32>
    tpu.vector_store %arg17[%c0_77, %c0_78], %120 {strides = array<i32>} : memref<2x400xf32, #tpu.memory_space<vmem>>, vector<1x25xf32>,
    %122 = vector.extract_strided_slice %119 {offsets = [1, 0], sizes = [1, 25], strides = [1, 1]} : vector<16x25xf32> to vector<1x25xf32>
    %c0_79 = arith.constant 0 : index
    %c25 = arith.constant 25 : index
    %123 = vector.load %arg17[%c0_79, %c25] : memref<2x400xf32, #tpu.memory_space<vmem>>, vector<1x25xf32>
    tpu.vector_store %arg17[%c0_79, %c25], %122 {strides = array<i32>} : memref<2x400xf32, #tpu.memory_space<vmem>>, vector<1x25xf32>,
    %124 = vector.extract_strided_slice %119 {offsets = [2, 0], sizes = [1, 25], strides = [1, 1]} : vector<16x25xf32> to vector<1x25xf32>
    %c0_80 = arith.constant 0 : index
    %c50 = arith.constant 50 : index
    %125 = vector.load %arg17[%c0_80, %c50] : memref<2x400xf32, #tpu.memory_space<vmem>>, vector<1x25xf32>
    tpu.vector_store %arg17[%c0_80, %c50], %124 {strides = array<i32>} : memref<2x400xf32, #tpu.memory_space<vmem>>, vector<1x25xf32>,
    %126 = vector.extract_strided_slice %119 {offsets = [3, 0], sizes = [1, 25], strides = [1, 1]} : vector<16x25xf32> to vector<1x25xf32>
    %c0_81 = arith.constant 0 : index
    %c75 = arith.constant 75 : index
    %127 = vector.load %arg17[%c0_81, %c75] : memref<2x400xf32, #tpu.memory_space<vmem>>, vector<1x25xf32>
    tpu.vector_store %arg17[%c0_81, %c75], %126 {strides = array<i32>} : memref<2x400xf32, #tpu.memory_space<vmem>>, vector<1x25xf32>,
    %128 = vector.extract_strided_slice %119 {offsets = [4, 0], sizes = [1, 25], strides = [1, 1]} : vector<16x25xf32> to vector<1x25xf32>
    %c0_82 = arith.constant 0 : index
    %c100 = arith.constant 100 : index
    %129 = vector.load %arg17[%c0_82, %c100] : memref<2x400xf32, #tpu.memory_space<vmem>>, vector<1x25xf32>
    tpu.vector_store %arg17[%c0_82, %c100], %128 {strides = array<i32>} : memref<2x400xf32, #tpu.memory_space<vmem>>, vector<1x25xf32>,
    %130 = vector.extract_strided_slice %119 {offsets = [5, 0], sizes = [1, 25], strides = [1, 1]} : vector<16x25xf32> to vector<1x25xf32>
    %c0_83 = arith.constant 0 : index
    %c125 = arith.constant 125 : index
    %131 = vector.load %arg17[%c0_83, %c125] : memref<2x400xf32, #tpu.memory_space<vmem>>, vector<1x25xf32>
    tpu.vector_store %arg17[%c0_83, %c125], %130 {strides = array<i32>} : memref<2x400xf32, #tpu.memory_space<vmem>>, vector<1x25xf32>,
    %132 = vector.extract_strided_slice %119 {offsets = [6, 0], sizes = [1, 25], strides = [1, 1]} : vector<16x25xf32> to vector<1x25xf32>
    %c0_84 = arith.constant 0 : index
    %c150 = arith.constant 150 : index
    %133 = vector.load %arg17[%c0_84, %c150] : memref<2x400xf32, #tpu.memory_space<vmem>>, vector<1x25xf32>
    tpu.vector_store %arg17[%c0_84, %c150], %132 {strides = array<i32>} : memref<2x400xf32, #tpu.memory_space<vmem>>, vector<1x25xf32>,
    %134 = vector.extract_strided_slice %119 {offsets = [7, 0], sizes = [1, 25], strides = [1, 1]} : vector<16x25xf32> to vector<1x25xf32>
    %c0_85 = arith.constant 0 : index
    %c175 = arith.constant 175 : index
    %135 = vector.load %arg17[%c0_85, %c175] : memref<2x400xf32, #tpu.memory_space<vmem>>, vector<1x25xf32>
    tpu.vector_store %arg17[%c0_85, %c175], %134 {strides = array<i32>} : memref<2x400xf32, #tpu.memory_space<vmem>>, vector<1x25xf32>,
    %136 = vector.extract_strided_slice %119 {offsets = [8, 0], sizes = [1, 25], strides = [1, 1]} : vector<16x25xf32> to vector<1x25xf32>
    %c0_86 = arith.constant 0 : index
    %c200 = arith.constant 200 : index
    %137 = vector.load %arg17[%c0_86, %c200] : memref<2x400xf32, #tpu.memory_space<vmem>>, vector<1x25xf32>
    tpu.vector_store %arg17[%c0_86, %c200], %136 {strides = array<i32>} : memref<2x400xf32, #tpu.memory_space<vmem>>, vector<1x25xf32>,
    %138 = vector.extract_strided_slice %119 {offsets = [9, 0], sizes = [1, 25], strides = [1, 1]} : vector<16x25xf32> to vector<1x25xf32>
    %c0_87 = arith.constant 0 : index
    %c225 = arith.constant 225 : index
    %139 = vector.load %arg17[%c0_87, %c225] : memref<2x400xf32, #tpu.memory_space<vmem>>, vector<1x25xf32>
    tpu.vector_store %arg17[%c0_87, %c225], %138 {strides = array<i32>} : memref<2x400xf32, #tpu.memory_space<vmem>>, vector<1x25xf32>,
    %140 = vector.extract_strided_slice %119 {offsets = [10, 0], sizes = [1, 25], strides = [1, 1]} : vector<16x25xf32> to vector<1x25xf32>
    %c0_88 = arith.constant 0 : index
    %c250 = arith.constant 250 : index
    %141 = vector.load %arg17[%c0_88, %c250] : memref<2x400xf32, #tpu.memory_space<vmem>>, vector<1x25xf32>
    tpu.vector_store %arg17[%c0_88, %c250], %140 {strides = array<i32>} : memref<2x400xf32, #tpu.memory_space<vmem>>, vector<1x25xf32>,
    %142 = vector.extract_strided_slice %119 {offsets = [11, 0], sizes = [1, 25], strides = [1, 1]} : vector<16x25xf32> to vector<1x25xf32>
    %c0_89 = arith.constant 0 : index
    %c275 = arith.constant 275 : index
    %143 = vector.load %arg17[%c0_89, %c275] : memref<2x400xf32, #tpu.memory_space<vmem>>, vector<1x25xf32>
    tpu.vector_store %arg17[%c0_89, %c275], %142 {strides = array<i32>} : memref<2x400xf32, #tpu.memory_space<vmem>>, vector<1x25xf32>,
    %144 = vector.extract_strided_slice %119 {offsets = [12, 0], sizes = [1, 25], strides = [1, 1]} : vector<16x25xf32> to vector<1x25xf32>
    %c0_90 = arith.constant 0 : index
    %c300 = arith.constant 300 : index
    %145 = vector.load %arg17[%c0_90, %c300] : memref<2x400xf32, #tpu.memory_space<vmem>>, vector<1x25xf32>
    tpu.vector_store %arg17[%c0_90, %c300], %144 {strides = array<i32>} : memref<2x400xf32, #tpu.memory_space<vmem>>, vector<1x25xf32>,
    %146 = vector.extract_strided_slice %119 {offsets = [13, 0], sizes = [1, 25], strides = [1, 1]} : vector<16x25xf32> to vector<1x25xf32>
    %c0_91 = arith.constant 0 : index
    %c325 = arith.constant 325 : index
    %147 = vector.load %arg17[%c0_91, %c325] : memref<2x400xf32, #tpu.memory_space<vmem>>, vector<1x25xf32>
    tpu.vector_store %arg17[%c0_91, %c325], %146 {strides = array<i32>} : memref<2x400xf32, #tpu.memory_space<vmem>>, vector<1x25xf32>,
    %148 = vector.extract_strided_slice %119 {offsets = [14, 0], sizes = [1, 25], strides = [1, 1]} : vector<16x25xf32> to vector<1x25xf32>
    %c0_92 = arith.constant 0 : index
    %c350 = arith.constant 350 : index
    %149 = vector.load %arg17[%c0_92, %c350] : memref<2x400xf32, #tpu.memory_space<vmem>>, vector<1x25xf32>
    tpu.vector_store %arg17[%c0_92, %c350], %148 {strides = array<i32>} : memref<2x400xf32, #tpu.memory_space<vmem>>, vector<1x25xf32>,
    %150 = vector.extract_strided_slice %119 {offsets = [15, 0], sizes = [1, 25], strides = [1, 1]} : vector<16x25xf32> to vector<1x25xf32>
    %c0_93 = arith.constant 0 : index
    %c375 = arith.constant 375 : index
    %151 = vector.load %arg17[%c0_93, %c375] : memref<2x400xf32, #tpu.memory_space<vmem>>, vector<1x25xf32>
    tpu.vector_store %arg17[%c0_93, %c375], %150 {strides = array<i32>} : memref<2x400xf32, #tpu.memory_space<vmem>>, vector<1x25xf32>,
    %c1_94 = arith.constant 1 : index
    %c0_95 = arith.constant 0 : index
    %c0_96 = arith.constant 0 : index
    %152 = vector.load %arg1[%c1_94, %c0_95, %c0_96] : memref<2x1x1156xf32, #tpu.memory_space<vmem>>, vector<1x1x1156xf32>
    %153 = vector.shape_cast %152 : vector<1x1x1156xf32> to vector<1x1156xf32>
    %154 = vector.extract_strided_slice %153 {offsets = [0, 0], sizes = [1, 1024], strides = [1, 1]} : vector<1x1156xf32> to vector<1x1024xf32>
    %c0_97 = arith.constant 0 : index
    %c0_98 = arith.constant 0 : index
    %155 = vector.load %arg15[%c0_97, %c0_98] : memref<25x1024xf32, #tpu.memory_space<vmem>>, vector<1x1024xf32>
    tpu.vector_store %arg15[%c0_97, %c0_98], %154 {strides = array<i32>} : memref<25x1024xf32, #tpu.memory_space<vmem>>, vector<1x1024xf32>,
    %156 = vector.extract_strided_slice %153 {offsets = [0, 1], sizes = [1, 1024], strides = [1, 1]} : vector<1x1156xf32> to vector<1x1024xf32>
    %c1_99 = arith.constant 1 : index
    %c0_100 = arith.constant 0 : index
    %157 = vector.load %arg15[%c1_99, %c0_100] : memref<25x1024xf32, #tpu.memory_space<vmem>>, vector<1x1024xf32>
    tpu.vector_store %arg15[%c1_99, %c0_100], %156 {strides = array<i32>} : memref<25x1024xf32, #tpu.memory_space<vmem>>, vector<1x1024xf32>,
    %158 = vector.extract_strided_slice %153 {offsets = [0, 2], sizes = [1, 1024], strides = [1, 1]} : vector<1x1156xf32> to vector<1x1024xf32>
    %c2_101 = arith.constant 2 : index
    %c0_102 = arith.constant 0 : index
    %159 = vector.load %arg15[%c2_101, %c0_102] : memref<25x1024xf32, #tpu.memory_space<vmem>>, vector<1x1024xf32>
    tpu.vector_store %arg15[%c2_101, %c0_102], %158 {strides = array<i32>} : memref<25x1024xf32, #tpu.memory_space<vmem>>, vector<1x1024xf32>,
    %160 = vector.extract_strided_slice %153 {offsets = [0, 3], sizes = [1, 1024], strides = [1, 1]} : vector<1x1156xf32> to vector<1x1024xf32>
    %c3_103 = arith.constant 3 : index
    %c0_104 = arith.constant 0 : index
    %161 = vector.load %arg15[%c3_103, %c0_104] : memref<25x1024xf32, #tpu.memory_space<vmem>>, vector<1x1024xf32>
    tpu.vector_store %arg15[%c3_103, %c0_104], %160 {strides = array<i32>} : memref<25x1024xf32, #tpu.memory_space<vmem>>, vector<1x1024xf32>,
    %162 = vector.extract_strided_slice %153 {offsets = [0, 4], sizes = [1, 1024], strides = [1, 1]} : vector<1x1156xf32> to vector<1x1024xf32>
    %c4_105 = arith.constant 4 : index
    %c0_106 = arith.constant 0 : index
    %163 = vector.load %arg15[%c4_105, %c0_106] : memref<25x1024xf32, #tpu.memory_space<vmem>>, vector<1x1024xf32>
    tpu.vector_store %arg15[%c4_105, %c0_106], %162 {strides = array<i32>} : memref<25x1024xf32, #tpu.memory_space<vmem>>, vector<1x1024xf32>,
    %164 = vector.extract_strided_slice %153 {offsets = [0, 32], sizes = [1, 1024], strides = [1, 1]} : vector<1x1156xf32> to vector<1x1024xf32>
    %c5_107 = arith.constant 5 : index
    %c0_108 = arith.constant 0 : index
    %165 = vector.load %arg15[%c5_107, %c0_108] : memref<25x1024xf32, #tpu.memory_space<vmem>>, vector<1x1024xf32>
    tpu.vector_store %arg15[%c5_107, %c0_108], %164 {strides = array<i32>} : memref<25x1024xf32, #tpu.memory_space<vmem>>, vector<1x1024xf32>,
    %166 = vector.extract_strided_slice %153 {offsets = [0, 33], sizes = [1, 1024], strides = [1, 1]} : vector<1x1156xf32> to vector<1x1024xf32>
    %c6_109 = arith.constant 6 : index
    %c0_110 = arith.constant 0 : index
    %167 = vector.load %arg15[%c6_109, %c0_110] : memref<25x1024xf32, #tpu.memory_space<vmem>>, vector<1x1024xf32>
    tpu.vector_store %arg15[%c6_109, %c0_110], %166 {strides = array<i32>} : memref<25x1024xf32, #tpu.memory_space<vmem>>, vector<1x1024xf32>,
    %168 = vector.extract_strided_slice %153 {offsets = [0, 34], sizes = [1, 1024], strides = [1, 1]} : vector<1x1156xf32> to vector<1x1024xf32>
    %c7_111 = arith.constant 7 : index
    %c0_112 = arith.constant 0 : index
    %169 = vector.load %arg15[%c7_111, %c0_112] : memref<25x1024xf32, #tpu.memory_space<vmem>>, vector<1x1024xf32>
    tpu.vector_store %arg15[%c7_111, %c0_112], %168 {strides = array<i32>} : memref<25x1024xf32, #tpu.memory_space<vmem>>, vector<1x1024xf32>,
    %170 = vector.extract_strided_slice %153 {offsets = [0, 35], sizes = [1, 1024], strides = [1, 1]} : vector<1x1156xf32> to vector<1x1024xf32>
    %c8_113 = arith.constant 8 : index
    %c0_114 = arith.constant 0 : index
    %171 = vector.load %arg15[%c8_113, %c0_114] : memref<25x1024xf32, #tpu.memory_space<vmem>>, vector<1x1024xf32>
    tpu.vector_store %arg15[%c8_113, %c0_114], %170 {strides = array<i32>} : memref<25x1024xf32, #tpu.memory_space<vmem>>, vector<1x1024xf32>,
    %172 = vector.extract_strided_slice %153 {offsets = [0, 36], sizes = [1, 1024], strides = [1, 1]} : vector<1x1156xf32> to vector<1x1024xf32>
    %c9_115 = arith.constant 9 : index
    %c0_116 = arith.constant 0 : index
    %173 = vector.load %arg15[%c9_115, %c0_116] : memref<25x1024xf32, #tpu.memory_space<vmem>>, vector<1x1024xf32>
    tpu.vector_store %arg15[%c9_115, %c0_116], %172 {strides = array<i32>} : memref<25x1024xf32, #tpu.memory_space<vmem>>, vector<1x1024xf32>,
    %174 = vector.extract_strided_slice %153 {offsets = [0, 64], sizes = [1, 1024], strides = [1, 1]} : vector<1x1156xf32> to vector<1x1024xf32>
    %c10_117 = arith.constant 10 : index
    %c0_118 = arith.constant 0 : index
    %175 = vector.load %arg15[%c10_117, %c0_118] : memref<25x1024xf32, #tpu.memory_space<vmem>>, vector<1x1024xf32>
    tpu.vector_store %arg15[%c10_117, %c0_118], %174 {strides = array<i32>} : memref<25x1024xf32, #tpu.memory_space<vmem>>, vector<1x1024xf32>,
    %176 = vector.extract_strided_slice %153 {offsets = [0, 65], sizes = [1, 1024], strides = [1, 1]} : vector<1x1156xf32> to vector<1x1024xf32>
    %c11_119 = arith.constant 11 : index
    %c0_120 = arith.constant 0 : index
    %177 = vector.load %arg15[%c11_119, %c0_120] : memref<25x1024xf32, #tpu.memory_space<vmem>>, vector<1x1024xf32>
    tpu.vector_store %arg15[%c11_119, %c0_120], %176 {strides = array<i32>} : memref<25x1024xf32, #tpu.memory_space<vmem>>, vector<1x1024xf32>,
    %178 = vector.extract_strided_slice %153 {offsets = [0, 66], sizes = [1, 1024], strides = [1, 1]} : vector<1x1156xf32> to vector<1x1024xf32>
    %c12_121 = arith.constant 12 : index
    %c0_122 = arith.constant 0 : index
    %179 = vector.load %arg15[%c12_121, %c0_122] : memref<25x1024xf32, #tpu.memory_space<vmem>>, vector<1x1024xf32>
    tpu.vector_store %arg15[%c12_121, %c0_122], %178 {strides = array<i32>} : memref<25x1024xf32, #tpu.memory_space<vmem>>, vector<1x1024xf32>,
    %180 = vector.extract_strided_slice %153 {offsets = [0, 67], sizes = [1, 1024], strides = [1, 1]} : vector<1x1156xf32> to vector<1x1024xf32>
    %c13_123 = arith.constant 13 : index
    %c0_124 = arith.constant 0 : index
    %181 = vector.load %arg15[%c13_123, %c0_124] : memref<25x1024xf32, #tpu.memory_space<vmem>>, vector<1x1024xf32>
    tpu.vector_store %arg15[%c13_123, %c0_124], %180 {strides = array<i32>} : memref<25x1024xf32, #tpu.memory_space<vmem>>, vector<1x1024xf32>,
    %182 = vector.extract_strided_slice %153 {offsets = [0, 68], sizes = [1, 1024], strides = [1, 1]} : vector<1x1156xf32> to vector<1x1024xf32>
    %c14_125 = arith.constant 14 : index
    %c0_126 = arith.constant 0 : index
    %183 = vector.load %arg15[%c14_125, %c0_126] : memref<25x1024xf32, #tpu.memory_space<vmem>>, vector<1x1024xf32>
    tpu.vector_store %arg15[%c14_125, %c0_126], %182 {strides = array<i32>} : memref<25x1024xf32, #tpu.memory_space<vmem>>, vector<1x1024xf32>,
    %184 = vector.extract_strided_slice %153 {offsets = [0, 96], sizes = [1, 1024], strides = [1, 1]} : vector<1x1156xf32> to vector<1x1024xf32>
    %c15_127 = arith.constant 15 : index
    %c0_128 = arith.constant 0 : index
    %185 = vector.load %arg15[%c15_127, %c0_128] : memref<25x1024xf32, #tpu.memory_space<vmem>>, vector<1x1024xf32>
    tpu.vector_store %arg15[%c15_127, %c0_128], %184 {strides = array<i32>} : memref<25x1024xf32, #tpu.memory_space<vmem>>, vector<1x1024xf32>,
    %186 = vector.extract_strided_slice %153 {offsets = [0, 97], sizes = [1, 1024], strides = [1, 1]} : vector<1x1156xf32> to vector<1x1024xf32>
    %c16_129 = arith.constant 16 : index
    %c0_130 = arith.constant 0 : index
    %187 = vector.load %arg15[%c16_129, %c0_130] : memref<25x1024xf32, #tpu.memory_space<vmem>>, vector<1x1024xf32>
    tpu.vector_store %arg15[%c16_129, %c0_130], %186 {strides = array<i32>} : memref<25x1024xf32, #tpu.memory_space<vmem>>, vector<1x1024xf32>,
    %188 = vector.extract_strided_slice %153 {offsets = [0, 98], sizes = [1, 1024], strides = [1, 1]} : vector<1x1156xf32> to vector<1x1024xf32>
    %c17_131 = arith.constant 17 : index
    %c0_132 = arith.constant 0 : index
    %189 = vector.load %arg15[%c17_131, %c0_132] : memref<25x1024xf32, #tpu.memory_space<vmem>>, vector<1x1024xf32>
    tpu.vector_store %arg15[%c17_131, %c0_132], %188 {strides = array<i32>} : memref<25x1024xf32, #tpu.memory_space<vmem>>, vector<1x1024xf32>,
    %190 = vector.extract_strided_slice %153 {offsets = [0, 99], sizes = [1, 1024], strides = [1, 1]} : vector<1x1156xf32> to vector<1x1024xf32>
    %c18_133 = arith.constant 18 : index
    %c0_134 = arith.constant 0 : index
    %191 = vector.load %arg15[%c18_133, %c0_134] : memref<25x1024xf32, #tpu.memory_space<vmem>>, vector<1x1024xf32>
    tpu.vector_store %arg15[%c18_133, %c0_134], %190 {strides = array<i32>} : memref<25x1024xf32, #tpu.memory_space<vmem>>, vector<1x1024xf32>,
    %192 = vector.extract_strided_slice %153 {offsets = [0, 100], sizes = [1, 1024], strides = [1, 1]} : vector<1x1156xf32> to vector<1x1024xf32>
    %c19_135 = arith.constant 19 : index
    %c0_136 = arith.constant 0 : index
    %193 = vector.load %arg15[%c19_135, %c0_136] : memref<25x1024xf32, #tpu.memory_space<vmem>>, vector<1x1024xf32>
    tpu.vector_store %arg15[%c19_135, %c0_136], %192 {strides = array<i32>} : memref<25x1024xf32, #tpu.memory_space<vmem>>, vector<1x1024xf32>,
    %194 = vector.extract_strided_slice %153 {offsets = [0, 128], sizes = [1, 1024], strides = [1, 1]} : vector<1x1156xf32> to vector<1x1024xf32>
    %c20_137 = arith.constant 20 : index
    %c0_138 = arith.constant 0 : index
    %195 = vector.load %arg15[%c20_137, %c0_138] : memref<25x1024xf32, #tpu.memory_space<vmem>>, vector<1x1024xf32>
    tpu.vector_store %arg15[%c20_137, %c0_138], %194 {strides = array<i32>} : memref<25x1024xf32, #tpu.memory_space<vmem>>, vector<1x1024xf32>,
    %196 = vector.extract_strided_slice %153 {offsets = [0, 129], sizes = [1, 1024], strides = [1, 1]} : vector<1x1156xf32> to vector<1x1024xf32>
    %c21_139 = arith.constant 21 : index
    %c0_140 = arith.constant 0 : index
    %197 = vector.load %arg15[%c21_139, %c0_140] : memref<25x1024xf32, #tpu.memory_space<vmem>>, vector<1x1024xf32>
    tpu.vector_store %arg15[%c21_139, %c0_140], %196 {strides = array<i32>} : memref<25x1024xf32, #tpu.memory_space<vmem>>, vector<1x1024xf32>,
    %198 = vector.extract_strided_slice %153 {offsets = [0, 130], sizes = [1, 1024], strides = [1, 1]} : vector<1x1156xf32> to vector<1x1024xf32>
    %c22_141 = arith.constant 22 : index
    %c0_142 = arith.constant 0 : index
    %199 = vector.load %arg15[%c22_141, %c0_142] : memref<25x1024xf32, #tpu.memory_space<vmem>>, vector<1x1024xf32>
    tpu.vector_store %arg15[%c22_141, %c0_142], %198 {strides = array<i32>} : memref<25x1024xf32, #tpu.memory_space<vmem>>, vector<1x1024xf32>,
    %200 = vector.extract_strided_slice %153 {offsets = [0, 131], sizes = [1, 1024], strides = [1, 1]} : vector<1x1156xf32> to vector<1x1024xf32>
    %c23_143 = arith.constant 23 : index
    %c0_144 = arith.constant 0 : index
    %201 = vector.load %arg15[%c23_143, %c0_144] : memref<25x1024xf32, #tpu.memory_space<vmem>>, vector<1x1024xf32>
    tpu.vector_store %arg15[%c23_143, %c0_144], %200 {strides = array<i32>} : memref<25x1024xf32, #tpu.memory_space<vmem>>, vector<1x1024xf32>,
    %202 = vector.extract_strided_slice %153 {offsets = [0, 132], sizes = [1, 1024], strides = [1, 1]} : vector<1x1156xf32> to vector<1x1024xf32>
    %c24_145 = arith.constant 24 : index
    %c0_146 = arith.constant 0 : index
    %203 = vector.load %arg15[%c24_145, %c0_146] : memref<25x1024xf32, #tpu.memory_space<vmem>>, vector<1x1024xf32>
    tpu.vector_store %arg15[%c24_145, %c0_146], %202 {strides = array<i32>} : memref<25x1024xf32, #tpu.memory_space<vmem>>, vector<1x1024xf32>,
    %c0_147 = arith.constant 0 : index
    %c0_148 = arith.constant 0 : index
    %204 = vector.load %arg15[%c0_147, %c0_148] : memref<25x1024xf32, #tpu.memory_space<vmem>>, vector<25x1024xf32>
    %cst_149 = arith.constant dense<0.000000e+00> : vector<6x1024xf32>
    %205 = tpu.matmul %0, %204, %cst_149 {dimension_numbers = #tpu.dot_dimension_numbers<[1], [0], [0], [1], [0, 0, 1, 1], [], []>} : vector<6x25xf32>, vector<25x1024xf32>, vector<6x1024xf32> -> vector<6x1024xf32>
    %206 = vector.broadcast %1 : vector<6x1xf32> to vector<6x1024xf32>
    %207 = arith.addf %205, %206 : vector<6x1024xf32>
    %208 = math.tanh %207 : vector<6x1024xf32>
    %cst_150 = arith.constant dense<0.000000e+00> : vector<6x256xf32>
    %209 = tpu.matmul %208, %2, %cst_150 {dimension_numbers = #tpu.dot_dimension_numbers<[1], [0], [0], [1], [0, 0, 1, 1], [], []>} : vector<6x1024xf32>, vector<1024x256xf32>, vector<6x256xf32> -> vector<6x256xf32>
    %210 = vector.extract_strided_slice %209 {offsets = [0, 0], sizes = [6, 196], strides = [1, 1]} : vector<6x256xf32> to vector<6x196xf32>
    %c0_151 = arith.constant 0 : index
    %c0_152 = arith.constant 0 : index
    %211 = vector.load %arg16[%c0_151, %c0_152] : memref<150x196xf32, #tpu.memory_space<vmem>>, vector<6x196xf32>
    tpu.vector_store %arg16[%c0_151, %c0_152], %210 {strides = array<i32>} : memref<150x196xf32, #tpu.memory_space<vmem>>, vector<6x196xf32>,
    %212 = vector.extract_strided_slice %209 {offsets = [0, 1], sizes = [6, 196], strides = [1, 1]} : vector<6x256xf32> to vector<6x196xf32>
    %c6_153 = arith.constant 6 : index
    %c0_154 = arith.constant 0 : index
    %213 = vector.load %arg16[%c6_153, %c0_154] : memref<150x196xf32, #tpu.memory_space<vmem>>, vector<6x196xf32>
    tpu.vector_store %arg16[%c6_153, %c0_154], %212 {strides = array<i32>} : memref<150x196xf32, #tpu.memory_space<vmem>>, vector<6x196xf32>,
    %214 = vector.extract_strided_slice %209 {offsets = [0, 2], sizes = [6, 196], strides = [1, 1]} : vector<6x256xf32> to vector<6x196xf32>
    %c12_155 = arith.constant 12 : index
    %c0_156 = arith.constant 0 : index
    %215 = vector.load %arg16[%c12_155, %c0_156] : memref<150x196xf32, #tpu.memory_space<vmem>>, vector<6x196xf32>
    tpu.vector_store %arg16[%c12_155, %c0_156], %214 {strides = array<i32>} : memref<150x196xf32, #tpu.memory_space<vmem>>, vector<6x196xf32>,
    %216 = vector.extract_strided_slice %209 {offsets = [0, 3], sizes = [6, 196], strides = [1, 1]} : vector<6x256xf32> to vector<6x196xf32>
    %c18_157 = arith.constant 18 : index
    %c0_158 = arith.constant 0 : index
    %217 = vector.load %arg16[%c18_157, %c0_158] : memref<150x196xf32, #tpu.memory_space<vmem>>, vector<6x196xf32>
    tpu.vector_store %arg16[%c18_157, %c0_158], %216 {strides = array<i32>} : memref<150x196xf32, #tpu.memory_space<vmem>>, vector<6x196xf32>,
    %218 = vector.extract_strided_slice %209 {offsets = [0, 4], sizes = [6, 196], strides = [1, 1]} : vector<6x256xf32> to vector<6x196xf32>
    %c24_159 = arith.constant 24 : index
    %c0_160 = arith.constant 0 : index
    %219 = vector.load %arg16[%c24_159, %c0_160] : memref<150x196xf32, #tpu.memory_space<vmem>>, vector<6x196xf32>
    tpu.vector_store %arg16[%c24_159, %c0_160], %218 {strides = array<i32>} : memref<150x196xf32, #tpu.memory_space<vmem>>, vector<6x196xf32>,
    %220 = vector.extract_strided_slice %209 {offsets = [0, 14], sizes = [6, 196], strides = [1, 1]} : vector<6x256xf32> to vector<6x196xf32>
    %c30_161 = arith.constant 30 : index
    %c0_162 = arith.constant 0 : index
    %221 = vector.load %arg16[%c30_161, %c0_162] : memref<150x196xf32, #tpu.memory_space<vmem>>, vector<6x196xf32>
    tpu.vector_store %arg16[%c30_161, %c0_162], %220 {strides = array<i32>} : memref<150x196xf32, #tpu.memory_space<vmem>>, vector<6x196xf32>,
    %222 = vector.extract_strided_slice %209 {offsets = [0, 15], sizes = [6, 196], strides = [1, 1]} : vector<6x256xf32> to vector<6x196xf32>
    %c36_163 = arith.constant 36 : index
    %c0_164 = arith.constant 0 : index
    %223 = vector.load %arg16[%c36_163, %c0_164] : memref<150x196xf32, #tpu.memory_space<vmem>>, vector<6x196xf32>
    tpu.vector_store %arg16[%c36_163, %c0_164], %222 {strides = array<i32>} : memref<150x196xf32, #tpu.memory_space<vmem>>, vector<6x196xf32>,
    %224 = vector.extract_strided_slice %209 {offsets = [0, 16], sizes = [6, 196], strides = [1, 1]} : vector<6x256xf32> to vector<6x196xf32>
    %c42_165 = arith.constant 42 : index
    %c0_166 = arith.constant 0 : index
    %225 = vector.load %arg16[%c42_165, %c0_166] : memref<150x196xf32, #tpu.memory_space<vmem>>, vector<6x196xf32>
    tpu.vector_store %arg16[%c42_165, %c0_166], %224 {strides = array<i32>} : memref<150x196xf32, #tpu.memory_space<vmem>>, vector<6x196xf32>,
    %226 = vector.extract_strided_slice %209 {offsets = [0, 17], sizes = [6, 196], strides = [1, 1]} : vector<6x256xf32> to vector<6x196xf32>
    %c48_167 = arith.constant 48 : index
    %c0_168 = arith.constant 0 : index
    %227 = vector.load %arg16[%c48_167, %c0_168] : memref<150x196xf32, #tpu.memory_space<vmem>>, vector<6x196xf32>
    tpu.vector_store %arg16[%c48_167, %c0_168], %226 {strides = array<i32>} : memref<150x196xf32, #tpu.memory_space<vmem>>, vector<6x196xf32>,
    %228 = vector.extract_strided_slice %209 {offsets = [0, 18], sizes = [6, 196], strides = [1, 1]} : vector<6x256xf32> to vector<6x196xf32>
    %c54_169 = arith.constant 54 : index
    %c0_170 = arith.constant 0 : index
    %229 = vector.load %arg16[%c54_169, %c0_170] : memref<150x196xf32, #tpu.memory_space<vmem>>, vector<6x196xf32>
    tpu.vector_store %arg16[%c54_169, %c0_170], %228 {strides = array<i32>} : memref<150x196xf32, #tpu.memory_space<vmem>>, vector<6x196xf32>,
    %230 = vector.extract_strided_slice %209 {offsets = [0, 28], sizes = [6, 196], strides = [1, 1]} : vector<6x256xf32> to vector<6x196xf32>
    %c60_171 = arith.constant 60 : index
    %c0_172 = arith.constant 0 : index
    %231 = vector.load %arg16[%c60_171, %c0_172] : memref<150x196xf32, #tpu.memory_space<vmem>>, vector<6x196xf32>
    tpu.vector_store %arg16[%c60_171, %c0_172], %230 {strides = array<i32>} : memref<150x196xf32, #tpu.memory_space<vmem>>, vector<6x196xf32>,
    %232 = vector.extract_strided_slice %209 {offsets = [0, 29], sizes = [6, 196], strides = [1, 1]} : vector<6x256xf32> to vector<6x196xf32>
    %c66_173 = arith.constant 66 : index
    %c0_174 = arith.constant 0 : index
    %233 = vector.load %arg16[%c66_173, %c0_174] : memref<150x196xf32, #tpu.memory_space<vmem>>, vector<6x196xf32>
    tpu.vector_store %arg16[%c66_173, %c0_174], %232 {strides = array<i32>} : memref<150x196xf32, #tpu.memory_space<vmem>>, vector<6x196xf32>,
    %234 = vector.extract_strided_slice %209 {offsets = [0, 30], sizes = [6, 196], strides = [1, 1]} : vector<6x256xf32> to vector<6x196xf32>
    %c72_175 = arith.constant 72 : index
    %c0_176 = arith.constant 0 : index
    %235 = vector.load %arg16[%c72_175, %c0_176] : memref<150x196xf32, #tpu.memory_space<vmem>>, vector<6x196xf32>
    tpu.vector_store %arg16[%c72_175, %c0_176], %234 {strides = array<i32>} : memref<150x196xf32, #tpu.memory_space<vmem>>, vector<6x196xf32>,
    %236 = vector.extract_strided_slice %209 {offsets = [0, 31], sizes = [6, 196], strides = [1, 1]} : vector<6x256xf32> to vector<6x196xf32>
    %c78_177 = arith.constant 78 : index
    %c0_178 = arith.constant 0 : index
    %237 = vector.load %arg16[%c78_177, %c0_178] : memref<150x196xf32, #tpu.memory_space<vmem>>, vector<6x196xf32>
    tpu.vector_store %arg16[%c78_177, %c0_178], %236 {strides = array<i32>} : memref<150x196xf32, #tpu.memory_space<vmem>>, vector<6x196xf32>,
    %238 = vector.extract_strided_slice %209 {offsets = [0, 32], sizes = [6, 196], strides = [1, 1]} : vector<6x256xf32> to vector<6x196xf32>
    %c84_179 = arith.constant 84 : index
    %c0_180 = arith.constant 0 : index
    %239 = vector.load %arg16[%c84_179, %c0_180] : memref<150x196xf32, #tpu.memory_space<vmem>>, vector<6x196xf32>
    tpu.vector_store %arg16[%c84_179, %c0_180], %238 {strides = array<i32>} : memref<150x196xf32, #tpu.memory_space<vmem>>, vector<6x196xf32>,
    %240 = vector.extract_strided_slice %209 {offsets = [0, 42], sizes = [6, 196], strides = [1, 1]} : vector<6x256xf32> to vector<6x196xf32>
    %c90_181 = arith.constant 90 : index
    %c0_182 = arith.constant 0 : index
    %241 = vector.load %arg16[%c90_181, %c0_182] : memref<150x196xf32, #tpu.memory_space<vmem>>, vector<6x196xf32>
    tpu.vector_store %arg16[%c90_181, %c0_182], %240 {strides = array<i32>} : memref<150x196xf32, #tpu.memory_space<vmem>>, vector<6x196xf32>,
    %242 = vector.extract_strided_slice %209 {offsets = [0, 43], sizes = [6, 196], strides = [1, 1]} : vector<6x256xf32> to vector<6x196xf32>
    %c96_183 = arith.constant 96 : index
    %c0_184 = arith.constant 0 : index
    %243 = vector.load %arg16[%c96_183, %c0_184] : memref<150x196xf32, #tpu.memory_space<vmem>>, vector<6x196xf32>
    tpu.vector_store %arg16[%c96_183, %c0_184], %242 {strides = array<i32>} : memref<150x196xf32, #tpu.memory_space<vmem>>, vector<6x196xf32>,
    %244 = vector.extract_strided_slice %209 {offsets = [0, 44], sizes = [6, 196], strides = [1, 1]} : vector<6x256xf32> to vector<6x196xf32>
    %c102_185 = arith.constant 102 : index
    %c0_186 = arith.constant 0 : index
    %245 = vector.load %arg16[%c102_185, %c0_186] : memref<150x196xf32, #tpu.memory_space<vmem>>, vector<6x196xf32>
    tpu.vector_store %arg16[%c102_185, %c0_186], %244 {strides = array<i32>} : memref<150x196xf32, #tpu.memory_space<vmem>>, vector<6x196xf32>,
    %246 = vector.extract_strided_slice %209 {offsets = [0, 45], sizes = [6, 196], strides = [1, 1]} : vector<6x256xf32> to vector<6x196xf32>
    %c108_187 = arith.constant 108 : index
    %c0_188 = arith.constant 0 : index
    %247 = vector.load %arg16[%c108_187, %c0_188] : memref<150x196xf32, #tpu.memory_space<vmem>>, vector<6x196xf32>
    tpu.vector_store %arg16[%c108_187, %c0_188], %246 {strides = array<i32>} : memref<150x196xf32, #tpu.memory_space<vmem>>, vector<6x196xf32>,
    %248 = vector.extract_strided_slice %209 {offsets = [0, 46], sizes = [6, 196], strides = [1, 1]} : vector<6x256xf32> to vector<6x196xf32>
    %c114_189 = arith.constant 114 : index
    %c0_190 = arith.constant 0 : index
    %249 = vector.load %arg16[%c114_189, %c0_190] : memref<150x196xf32, #tpu.memory_space<vmem>>, vector<6x196xf32>
    tpu.vector_store %arg16[%c114_189, %c0_190], %248 {strides = array<i32>} : memref<150x196xf32, #tpu.memory_space<vmem>>, vector<6x196xf32>,
    %250 = vector.extract_strided_slice %209 {offsets = [0, 56], sizes = [6, 196], strides = [1, 1]} : vector<6x256xf32> to vector<6x196xf32>
    %c120_191 = arith.constant 120 : index
    %c0_192 = arith.constant 0 : index
    %251 = vector.load %arg16[%c120_191, %c0_192] : memref<150x196xf32, #tpu.memory_space<vmem>>, vector<6x196xf32>
    tpu.vector_store %arg16[%c120_191, %c0_192], %250 {strides = array<i32>} : memref<150x196xf32, #tpu.memory_space<vmem>>, vector<6x196xf32>,
    %252 = vector.extract_strided_slice %209 {offsets = [0, 57], sizes = [6, 196], strides = [1, 1]} : vector<6x256xf32> to vector<6x196xf32>
    %c126_193 = arith.constant 126 : index
    %c0_194 = arith.constant 0 : index
    %253 = vector.load %arg16[%c126_193, %c0_194] : memref<150x196xf32, #tpu.memory_space<vmem>>, vector<6x196xf32>
    tpu.vector_store %arg16[%c126_193, %c0_194], %252 {strides = array<i32>} : memref<150x196xf32, #tpu.memory_space<vmem>>, vector<6x196xf32>,
    %254 = vector.extract_strided_slice %209 {offsets = [0, 58], sizes = [6, 196], strides = [1, 1]} : vector<6x256xf32> to vector<6x196xf32>
    %c132_195 = arith.constant 132 : index
    %c0_196 = arith.constant 0 : index
    %255 = vector.load %arg16[%c132_195, %c0_196] : memref<150x196xf32, #tpu.memory_space<vmem>>, vector<6x196xf32>
    tpu.vector_store %arg16[%c132_195, %c0_196], %254 {strides = array<i32>} : memref<150x196xf32, #tpu.memory_space<vmem>>, vector<6x196xf32>,
    %256 = vector.extract_strided_slice %209 {offsets = [0, 59], sizes = [6, 196], strides = [1, 1]} : vector<6x256xf32> to vector<6x196xf32>
    %c138_197 = arith.constant 138 : index
    %c0_198 = arith.constant 0 : index
    %257 = vector.load %arg16[%c138_197, %c0_198] : memref<150x196xf32, #tpu.memory_space<vmem>>, vector<6x196xf32>
    tpu.vector_store %arg16[%c138_197, %c0_198], %256 {strides = array<i32>} : memref<150x196xf32, #tpu.memory_space<vmem>>, vector<6x196xf32>,
    %258 = vector.extract_strided_slice %209 {offsets = [0, 60], sizes = [6, 196], strides = [1, 1]} : vector<6x256xf32> to vector<6x196xf32>
    %c144_199 = arith.constant 144 : index
    %c0_200 = arith.constant 0 : index
    %259 = vector.load %arg16[%c144_199, %c0_200] : memref<150x196xf32, #tpu.memory_space<vmem>>, vector<6x196xf32>
    tpu.vector_store %arg16[%c144_199, %c0_200], %258 {strides = array<i32>} : memref<150x196xf32, #tpu.memory_space<vmem>>, vector<6x196xf32>,
    %c0_201 = arith.constant 0 : index
    %c0_202 = arith.constant 0 : index
    %260 = vector.load %arg16[%c0_201, %c0_202] : memref<150x196xf32, #tpu.memory_space<vmem>>, vector<150x196xf32>
    %cst_203 = arith.constant dense<0.000000e+00> : vector<16x196xf32>
    %261 = tpu.matmul %3, %260, %cst_203 {dimension_numbers = #tpu.dot_dimension_numbers<[1], [0], [0], [1], [0, 0, 1, 1], [], []>} : vector<16x150xf32>, vector<150x196xf32>, vector<16x196xf32> -> vector<16x196xf32>
    %262 = vector.broadcast %4 : vector<16x1xf32> to vector<16x196xf32>
    %263 = arith.addf %261, %262 : vector<16x196xf32>
    %264 = math.tanh %263 : vector<16x196xf32>
    %cst_204 = arith.constant dense<0.000000e+00> : vector<16x25xf32>
    %265 = tpu.matmul %264, %5, %cst_204 {dimension_numbers = #tpu.dot_dimension_numbers<[1], [0], [0], [1], [0, 0, 1, 1], [], []>} : vector<16x196xf32>, vector<196x25xf32>, vector<16x25xf32> -> vector<16x25xf32>
    %266 = vector.extract_strided_slice %265 {offsets = [0, 0], sizes = [1, 25], strides = [1, 1]} : vector<16x25xf32> to vector<1x25xf32>
    %c1_205 = arith.constant 1 : index
    %c0_206 = arith.constant 0 : index
    %267 = vector.load %arg17[%c1_205, %c0_206] : memref<2x400xf32, #tpu.memory_space<vmem>>, vector<1x25xf32>
    tpu.vector_store %arg17[%c1_205, %c0_206], %266 {strides = array<i32>} : memref<2x400xf32, #tpu.memory_space<vmem>>, vector<1x25xf32>,
    %268 = vector.extract_strided_slice %265 {offsets = [1, 0], sizes = [1, 25], strides = [1, 1]} : vector<16x25xf32> to vector<1x25xf32>
    %c1_207 = arith.constant 1 : index
    %c25_208 = arith.constant 25 : index
    %269 = vector.load %arg17[%c1_207, %c25_208] : memref<2x400xf32, #tpu.memory_space<vmem>>, vector<1x25xf32>
    tpu.vector_store %arg17[%c1_207, %c25_208], %268 {strides = array<i32>} : memref<2x400xf32, #tpu.memory_space<vmem>>, vector<1x25xf32>,
    %270 = vector.extract_strided_slice %265 {offsets = [2, 0], sizes = [1, 25], strides = [1, 1]} : vector<16x25xf32> to vector<1x25xf32>
    %c1_209 = arith.constant 1 : index
    %c50_210 = arith.constant 50 : index
    %271 = vector.load %arg17[%c1_209, %c50_210] : memref<2x400xf32, #tpu.memory_space<vmem>>, vector<1x25xf32>
    tpu.vector_store %arg17[%c1_209, %c50_210], %270 {strides = array<i32>} : memref<2x400xf32, #tpu.memory_space<vmem>>, vector<1x25xf32>,
    %272 = vector.extract_strided_slice %265 {offsets = [3, 0], sizes = [1, 25], strides = [1, 1]} : vector<16x25xf32> to vector<1x25xf32>
    %c1_211 = arith.constant 1 : index
    %c75_212 = arith.constant 75 : index
    %273 = vector.load %arg17[%c1_211, %c75_212] : memref<2x400xf32, #tpu.memory_space<vmem>>, vector<1x25xf32>
    tpu.vector_store %arg17[%c1_211, %c75_212], %272 {strides = array<i32>} : memref<2x400xf32, #tpu.memory_space<vmem>>, vector<1x25xf32>,
    %274 = vector.extract_strided_slice %265 {offsets = [4, 0], sizes = [1, 25], strides = [1, 1]} : vector<16x25xf32> to vector<1x25xf32>
    %c1_213 = arith.constant 1 : index
    %c100_214 = arith.constant 100 : index
    %275 = vector.load %arg17[%c1_213, %c100_214] : memref<2x400xf32, #tpu.memory_space<vmem>>, vector<1x25xf32>
    tpu.vector_store %arg17[%c1_213, %c100_214], %274 {strides = array<i32>} : memref<2x400xf32, #tpu.memory_space<vmem>>, vector<1x25xf32>,
    %276 = vector.extract_strided_slice %265 {offsets = [5, 0], sizes = [1, 25], strides = [1, 1]} : vector<16x25xf32> to vector<1x25xf32>
    %c1_215 = arith.constant 1 : index
    %c125_216 = arith.constant 125 : index
    %277 = vector.load %arg17[%c1_215, %c125_216] : memref<2x400xf32, #tpu.memory_space<vmem>>, vector<1x25xf32>
    tpu.vector_store %arg17[%c1_215, %c125_216], %276 {strides = array<i32>} : memref<2x400xf32, #tpu.memory_space<vmem>>, vector<1x25xf32>,
    %278 = vector.extract_strided_slice %265 {offsets = [6, 0], sizes = [1, 25], strides = [1, 1]} : vector<16x25xf32> to vector<1x25xf32>
    %c1_217 = arith.constant 1 : index
    %c150_218 = arith.constant 150 : index
    %279 = vector.load %arg17[%c1_217, %c150_218] : memref<2x400xf32, #tpu.memory_space<vmem>>, vector<1x25xf32>
    tpu.vector_store %arg17[%c1_217, %c150_218], %278 {strides = array<i32>} : memref<2x400xf32, #tpu.memory_space<vmem>>, vector<1x25xf32>,
    %280 = vector.extract_strided_slice %265 {offsets = [7, 0], sizes = [1, 25], strides = [1, 1]} : vector<16x25xf32> to vector<1x25xf32>
    %c1_219 = arith.constant 1 : index
    %c175_220 = arith.constant 175 : index
    %281 = vector.load %arg17[%c1_219, %c175_220] : memref<2x400xf32, #tpu.memory_space<vmem>>, vector<1x25xf32>
    tpu.vector_store %arg17[%c1_219, %c175_220], %280 {strides = array<i32>} : memref<2x400xf32, #tpu.memory_space<vmem>>, vector<1x25xf32>,
    %282 = vector.extract_strided_slice %265 {offsets = [8, 0], sizes = [1, 25], strides = [1, 1]} : vector<16x25xf32> to vector<1x25xf32>
    %c1_221 = arith.constant 1 : index
    %c200_222 = arith.constant 200 : index
    %283 = vector.load %arg17[%c1_221, %c200_222] : memref<2x400xf32, #tpu.memory_space<vmem>>, vector<1x25xf32>
    tpu.vector_store %arg17[%c1_221, %c200_222], %282 {strides = array<i32>} : memref<2x400xf32, #tpu.memory_space<vmem>>, vector<1x25xf32>,
    %284 = vector.extract_strided_slice %265 {offsets = [9, 0], sizes = [1, 25], strides = [1, 1]} : vector<16x25xf32> to vector<1x25xf32>
    %c1_223 = arith.constant 1 : index
    %c225_224 = arith.constant 225 : index
    %285 = vector.load %arg17[%c1_223, %c225_224] : memref<2x400xf32, #tpu.memory_space<vmem>>, vector<1x25xf32>
    tpu.vector_store %arg17[%c1_223, %c225_224], %284 {strides = array<i32>} : memref<2x400xf32, #tpu.memory_space<vmem>>, vector<1x25xf32>,
    %286 = vector.extract_strided_slice %265 {offsets = [10, 0], sizes = [1, 25], strides = [1, 1]} : vector<16x25xf32> to vector<1x25xf32>
    %c1_225 = arith.constant 1 : index
    %c250_226 = arith.constant 250 : index
    %287 = vector.load %arg17[%c1_225, %c250_226] : memref<2x400xf32, #tpu.memory_space<vmem>>, vector<1x25xf32>
    tpu.vector_store %arg17[%c1_225, %c250_226], %286 {strides = array<i32>} : memref<2x400xf32, #tpu.memory_space<vmem>>, vector<1x25xf32>,
    %288 = vector.extract_strided_slice %265 {offsets = [11, 0], sizes = [1, 25], strides = [1, 1]} : vector<16x25xf32> to vector<1x25xf32>
    %c1_227 = arith.constant 1 : index
    %c275_228 = arith.constant 275 : index
    %289 = vector.load %arg17[%c1_227, %c275_228] : memref<2x400xf32, #tpu.memory_space<vmem>>, vector<1x25xf32>
    tpu.vector_store %arg17[%c1_227, %c275_228], %288 {strides = array<i32>} : memref<2x400xf32, #tpu.memory_space<vmem>>, vector<1x25xf32>,
    %290 = vector.extract_strided_slice %265 {offsets = [12, 0], sizes = [1, 25], strides = [1, 1]} : vector<16x25xf32> to vector<1x25xf32>
    %c1_229 = arith.constant 1 : index
    %c300_230 = arith.constant 300 : index
    %291 = vector.load %arg17[%c1_229, %c300_230] : memref<2x400xf32, #tpu.memory_space<vmem>>, vector<1x25xf32>
    tpu.vector_store %arg17[%c1_229, %c300_230], %290 {strides = array<i32>} : memref<2x400xf32, #tpu.memory_space<vmem>>, vector<1x25xf32>,
    %292 = vector.extract_strided_slice %265 {offsets = [13, 0], sizes = [1, 25], strides = [1, 1]} : vector<16x25xf32> to vector<1x25xf32>
    %c1_231 = arith.constant 1 : index
    %c325_232 = arith.constant 325 : index
    %293 = vector.load %arg17[%c1_231, %c325_232] : memref<2x400xf32, #tpu.memory_space<vmem>>, vector<1x25xf32>
    tpu.vector_store %arg17[%c1_231, %c325_232], %292 {strides = array<i32>} : memref<2x400xf32, #tpu.memory_space<vmem>>, vector<1x25xf32>,
    %294 = vector.extract_strided_slice %265 {offsets = [14, 0], sizes = [1, 25], strides = [1, 1]} : vector<16x25xf32> to vector<1x25xf32>
    %c1_233 = arith.constant 1 : index
    %c350_234 = arith.constant 350 : index
    %295 = vector.load %arg17[%c1_233, %c350_234] : memref<2x400xf32, #tpu.memory_space<vmem>>, vector<1x25xf32>
    tpu.vector_store %arg17[%c1_233, %c350_234], %294 {strides = array<i32>} : memref<2x400xf32, #tpu.memory_space<vmem>>, vector<1x25xf32>,
    %296 = vector.extract_strided_slice %265 {offsets = [15, 0], sizes = [1, 25], strides = [1, 1]} : vector<16x25xf32> to vector<1x25xf32>
    %c1_235 = arith.constant 1 : index
    %c375_236 = arith.constant 375 : index
    %297 = vector.load %arg17[%c1_235, %c375_236] : memref<2x400xf32, #tpu.memory_space<vmem>>, vector<1x25xf32>
    tpu.vector_store %arg17[%c1_235, %c375_236], %296 {strides = array<i32>} : memref<2x400xf32, #tpu.memory_space<vmem>>, vector<1x25xf32>,
    %c0_237 = arith.constant 0 : index
    %c0_238 = arith.constant 0 : index
    %298 = vector.load %arg17[%c0_237, %c0_238] : memref<2x400xf32, #tpu.memory_space<vmem>>, vector<2x400xf32>
    %c0_239 = arith.constant 0 : index
    %c0_240 = arith.constant 0 : index
    %299 = vector.load %arg8[%c0_239, %c0_240] : memref<400x120xf32, #tpu.memory_space<vmem>>, vector<400x120xf32>
    %cst_241 = arith.constant dense<0.000000e+00> : vector<2x120xf32>
    %300 = tpu.matmul %298, %299, %cst_241 {dimension_numbers = #tpu.dot_dimension_numbers<[1], [0], [0], [1], [0, 0, 1, 1], [], []>} : vector<2x400xf32>, vector<400x120xf32>, vector<2x120xf32> -> vector<2x120xf32>
    %c0_242 = arith.constant 0 : index
    %c0_243 = arith.constant 0 : index
    %301 = vector.load %arg9[%c0_242, %c0_243] : memref<1x120xf32, #tpu.memory_space<vmem>>, vector<1x120xf32>
    %302 = vector.broadcast %301 : vector<1x120xf32> to vector<2x120xf32>
    %303 = arith.addf %300, %302 : vector<2x120xf32>
    %304 = math.tanh %303 : vector<2x120xf32>
    %c0_244 = arith.constant 0 : index
    %c0_245 = arith.constant 0 : index
    %305 = vector.load %arg10[%c0_244, %c0_245] : memref<120x84xf32, #tpu.memory_space<vmem>>, vector<120x84xf32>
    %cst_246 = arith.constant dense<0.000000e+00> : vector<2x84xf32>
    %306 = tpu.matmul %304, %305, %cst_246 {dimension_numbers = #tpu.dot_dimension_numbers<[1], [0], [0], [1], [0, 0, 1, 1], [], []>} : vector<2x120xf32>, vector<120x84xf32>, vector<2x84xf32> -> vector<2x84xf32>
    %c0_247 = arith.constant 0 : index
    %c0_248 = arith.constant 0 : index
    %307 = vector.load %arg11[%c0_247, %c0_248] : memref<1x84xf32, #tpu.memory_space<vmem>>, vector<1x84xf32>
    %308 = vector.broadcast %307 : vector<1x84xf32> to vector<2x84xf32>
    %309 = arith.addf %306, %308 : vector<2x84xf32>
    %310 = math.tanh %309 : vector<2x84xf32>
    %c0_249 = arith.constant 0 : index
    %c0_250 = arith.constant 0 : index
    %311 = vector.load %arg12[%c0_249, %c0_250] : memref<84x10xf32, #tpu.memory_space<vmem>>, vector<84x10xf32>
    %cst_251 = arith.constant dense<0.000000e+00> : vector<2x10xf32>
    %312 = tpu.matmul %310, %311, %cst_251 {dimension_numbers = #tpu.dot_dimension_numbers<[1], [0], [0], [1], [0, 0, 1, 1], [], []>} : vector<2x84xf32>, vector<84x10xf32>, vector<2x10xf32> -> vector<2x10xf32>
    %c0_252 = arith.constant 0 : index
    %c0_253 = arith.constant 0 : index
    %313 = vector.load %arg13[%c0_252, %c0_253] : memref<1x10xf32, #tpu.memory_space<vmem>>, vector<1x10xf32>
    %314 = vector.broadcast %313 : vector<1x10xf32> to vector<2x10xf32>
    %315 = arith.addf %312, %314 : vector<2x10xf32>
    %cst_254 = arith.constant dense<0xFF800000> : vector<2xf32>
    %316 = vector.multi_reduction <maximumf>, %315, %cst_254 [1] : vector<2x10xf32> to vector<2xf32>
    %317 = vector.shape_cast %316 : vector<2xf32> to vector<2x1xf32>
    %318 = vector.broadcast %317 : vector<2x1xf32> to vector<2x10xf32>
    %319 = arith.subf %315, %318 : vector<2x10xf32>
    %320 = math.exp %319 : vector<2x10xf32>
    %cst_255 = arith.constant dense<0.000000e+00> : vector<2xf32>
    %321 = vector.multi_reduction <add>, %320, %cst_255 [1] : vector<2x10xf32> to vector<2xf32>
    %322 = vector.shape_cast %321 : vector<2xf32> to vector<2x1xf32>
    %323 = vector.broadcast %322 : vector<2x1xf32> to vector<2x10xf32>
    %324 = arith.divf %320, %323 : vector<2x10xf32>
    %c0_256 = arith.constant 0 : index
    %c0_257 = arith.constant 0 : index
    %325 = vector.load %arg14[%c0_256, %c0_257] : memref<2x10xf32, #tpu.memory_space<vmem>>, vector<2x10xf32>
    tpu.vector_store %arg14[%c0_256, %c0_257], %324 {strides = array<i32>} : memref<2x10xf32, #tpu.memory_space<vmem>>, vector<2x10xf32>,
    return
  }
  func.func @transform_0(%arg0: i32) -> (i32, i32, i32) {
    %c0_i32 = arith.constant 0 : i32
    %c0_i32_0 = arith.constant 0 : i32
    %c0_i32_1 = arith.constant 0 : i32
    %c0_i32_2 = arith.constant 0 : i32
    return %c0_i32, %c0_i32_0, %c0_i32_1 : i32, i32, i32
  }
  func.func @transform_1(%arg0: i32) -> (i32, i32) {
    %c0_i32 = arith.constant 0 : i32
    %c0_i32_0 = arith.constant 0 : i32
    %c0_i32_1 = arith.constant 0 : i32
    return %c0_i32, %c0_i32_0 : i32, i32
  }
  func.func @transform_2(%arg0: i32) -> (i32, i32) {
    %c0_i32 = arith.constant 0 : i32
    %c0_i32_0 = arith.constant 0 : i32
    %c0_i32_1 = arith.constant 0 : i32
    return %c0_i32, %c0_i32_0 : i32, i32
  }
  func.func @transform_3(%arg0: i32) -> (i32, i32) {
    %c0_i32 = arith.constant 0 : i32
    %c0_i32_0 = arith.constant 0 : i32
    %c0_i32_1 = arith.constant 0 : i32
    return %c0_i32, %c0_i32_0 : i32, i32
  }
  func.func @transform_4(%arg0: i32) -> (i32, i32) {
    %c0_i32 = arith.constant 0 : i32
    %c0_i32_0 = arith.constant 0 : i32
    %c0_i32_1 = arith.constant 0 : i32
    return %c0_i32, %c0_i32_0 : i32, i32
  }
  func.func @transform_5(%arg0: i32) -> (i32, i32) {
    %c0_i32 = arith.constant 0 : i32
    %c0_i32_0 = arith.constant 0 : i32
    %c0_i32_1 = arith.constant 0 : i32
    return %c0_i32, %c0_i32_0 : i32, i32
  }
  func.func @transform_6(%arg0: i32) -> (i32, i32) {
    %c0_i32 = arith.constant 0 : i32
    %c0_i32_0 = arith.constant 0 : i32
    %c0_i32_1 = arith.constant 0 : i32
    return %c0_i32, %c0_i32_0 : i32, i32
  }
  func.func @transform_7(%arg0: i32) -> (i32, i32) {
    %c0_i32 = arith.constant 0 : i32
    %c0_i32_0 = arith.constant 0 : i32
    %c0_i32_1 = arith.constant 0 : i32
    return %c0_i32, %c0_i32_0 : i32, i32
  }
  func.func @transform_8(%arg0: i32) -> (i32, i32) {
    %c0_i32 = arith.constant 0 : i32
    %c0_i32_0 = arith.constant 0 : i32
    %c0_i32_1 = arith.constant 0 : i32
    return %c0_i32, %c0_i32_0 : i32, i32
  }
  func.func @transform_9(%arg0: i32) -> (i32, i32) {
    %c0_i32 = arith.constant 0 : i32
    %c0_i32_0 = arith.constant 0 : i32
    %c0_i32_1 = arith.constant 0 : i32
    return %c0_i32, %c0_i32_0 : i32, i32
  }
  func.func @transform_10(%arg0: i32) -> (i32, i32) {
    %c0_i32 = arith.constant 0 : i32
    %c0_i32_0 = arith.constant 0 : i32
    %c0_i32_1 = arith.constant 0 : i32
    return %c0_i32, %c0_i32_0 : i32, i32
  }
  func.func @transform_11(%arg0: i32) -> (i32, i32) {
    %c0_i32 = arith.constant 0 : i32
    %c0_i32_0 = arith.constant 0 : i32
    %c0_i32_1 = arith.constant 0 : i32
    return %c0_i32, %c0_i32_0 : i32, i32
  }
  func.func @transform_12(%arg0: i32) -> (i32, i32) {
    %c0_i32 = arith.constant 0 : i32
    %c0_i32_0 = arith.constant 0 : i32
    %c0_i32_1 = arith.constant 0 : i32
    return %c0_i32, %c0_i32_0 : i32, i32
  }
  func.func @transform_13(%arg0: i32) -> (i32, i32) {
    %c0_i32 = arith.constant 0 : i32
    %c0_i32_0 = arith.constant 0 : i32
    %c0_i32_1 = arith.constant 0 : i32
    return %c0_i32, %c0_i32_0 : i32, i32
  }
}

</mosaic_0001>

<bundles_post_ra>
// kernel: _lambda_.1
= control target key start
LH: loop header
LB: loop body
LE: loop exit
PB: predicated region body
PF: predicated region fallthrough
CT: control target
= control target key end

     0   :  { %18 = vsyncpa [#allocation6], 0  ;;  %s6891_s0 = inlined_call_operand.vmem [shape: f32[2,1,1156], index: 0, kind: input, shape index: {}]   ;;  %s6892_s1 = inlined_call_operand.vmem [shape: f32[6,25], index: 1, kind: input, shape index: {}]   ;;  %s6893_s2 = inlined_call_operand.vmem [shape: f32[6,1], index: 2, kind: input, shape index: {}]   ;;  %s6894_s3 = inlined_call_operand.hbm [shape: f32[1024,256], index: 3, kind: input, shape index: {}]   ;;  %s6895_s4 = inlined_call_operand.vmem [shape: f32[16,150], index: 4, kind: input, shape index: {}]   ;;  %s6896_s5 = inlined_call_operand.vmem [shape: f32[16,1], index: 5, kind: input, shape index: {}]   ;;  %s6897_s6 = inlined_call_operand.hbm [shape: f32[196,25], index: 6, kind: input, shape index: {}]   ;;  %s6898_s7 = inlined_call_operand.vmem [shape: f32[400,120], index: 7, kind: input, shape index: {}]   ;;  %s6899_s8 = inlined_call_operand.vmem [shape: f32[1,120], index: 8, kind: input, shape index: {}]   ;;  %s6900_s9 = inlined_call_operand.vmem [shape: f32[120,84], index: 9, kind: input, shape index: {}]   ;;  %s6901_s10 = inlined_call_operand.vmem [shape: f32[1,84], index: 10, kind: input, shape index: {}]   ;;  %s6902_s11 = inlined_call_operand.vmem [shape: f32[84,10], index: 11, kind: input, shape index: {}]   ;;  %s6903_s12 = inlined_call_operand.vmem [shape: f32[1,10], index: 12, kind: input, shape index: {}]   ;;  %s6904_s13 = inlined_call_operand.hbm [shape: f32[2,10], index: 13, kind: output, shape index: {}]  }
   0x1   :  { %19 = vsyncpa [#allocation9], 0 }
   0x2   :  { %20 = vsyncpa [#allocation7], 0  ;;  %s5066_s25 = smov [#allocation5]   ;;  %s4994_s29 = scalar_lea.hbm %s6894_s3, 32768 }
   0x3   :  { %s32_s26 = sshll.u32 %s5066_s25, 4  ;;  %p4995_p0 = scmp.ne.s32.totalorder %s6894_s3, %s4994_s29  ;;  %s33_s26 = int_to_ptr.vmem [resolvable:$true] %s32_s26 }
   0x4   :  { %p4998_p1 = scmp.lt.u32.totalorder %s4994_s29, %s6894_s3 }
   0x6   :  { %p5000_p2 = pnand %p4998_p1, %p4995_p0 }
   0x8   :  { %5003 = shalt.err (!%p5000_p2)
}
   0x9   :  { %s5004_s17 = scalar_lea.vmem %s33_s26, 32768  ;;  %p5009_p4 = scmp.lt.s32.totalorder %s33_s26, %s33_s26 }
   0xa   :  { %p5005_p3 = scmp.ne.s32.totalorder %s33_s26, %s5004_s17  ;;  %p5010_p5 = scmp.lt.s32.totalorder %s5004_s17, %s5004_s17 }
   0xc   :  { %p5011_p6 = por %p5010_p5, %p5009_p4 }
   0xe   :  { %p5012_p7 = pnand %p5011_p6, %p5005_p3 }
  0x10   :  { %5015 = shalt.err (!%p5012_p7)
}
  0x11   :  { %s5067_s18 = smov 256   ;;  %s5068_s19 = smov 16  }
  0x12   :  { %38 = dma.hbm_to_vmem [thread:$0]  %s6894_s3, 32768, %s33_s26, [#allocation6], %s5067_s18, %s5067_s18, %s5068_s19  }
  0x13   :  { %s5069_s22 = smov [#allocation8]   ;;  %s5016_s27 = scalar_lea.hbm %s6897_s6, 3200 }
  0x14   :  { %s48_s23 = sshll.u32 %s5069_s22, 4  ;;  %p5017_p8 = scmp.ne.s32.totalorder %s6897_s6, %s5016_s27  ;;  %s49_s23 = int_to_ptr.vmem [resolvable:$true] %s48_s23 }
  0x15   :  { %p5020_p9 = scmp.lt.u32.totalorder %s5016_s27, %s6897_s6 }
  0x17   :  { %p5022_p10 = pnand %p5020_p9, %p5017_p8 }
  0x19   :  { %5025 = shalt.err (!%p5022_p10)
}
  0x1a   :  { %s5026_s15 = scalar_lea.vmem %s49_s23, 3200  ;;  %p5031_p12 = scmp.lt.s32.totalorder %s49_s23, %s49_s23 }
  0x1b   :  { %p5027_p11 = scmp.ne.s32.totalorder %s49_s23, %s5026_s15  ;;  %p5032_p13 = scmp.lt.s32.totalorder %s5026_s15, %s5026_s15 }
  0x1d   :  { %p5033_p0 = por %p5032_p13, %p5031_p12 }
  0x1f   :  { %p5034_p1 = pnand %p5033_p0, %p5027_p11 }
  0x21   :  { %5037 = shalt.err (!%p5034_p1)
}
  0x22   :  { %s5070_s3 = smov 128   ;;  %s5071_s26 = smov 8  }
  0x23   :  { %54 = dma.hbm_to_vmem [thread:$0]  %s6897_s6, 3200, %s49_s23, [#allocation9], %s5070_s3, %s5070_s3, %s5071_s26  }
  0x24   :  { %5060 = dma.done.wait [#allocation6], 32768  }
  0x25   :  { %5061 = vsyncadd [#allocation6], 4294934528 }
  0x26   :  { %5062 = dma.done.wait [#allocation9], 3200  }
  0x27   :  { %5063 = vsyncadd [#allocation9], 4294964096  ;;  %v5223_v0 = vld [vmem:[%s6891_s0] sm:$0xff]  ;;  %s5072_s20 = smov 126   ;;  %s5073_s21 = smov 127   ;;  %vm374_vm0 = vcmask 1046528  }
  0x28   :  { %382 = vrot.lane.b32.xlu1 %v5223_v0, %s5072_s20  ;;  %364 = vst [vmem:[#allocation2] ss:$8 sm:$0xf] %v5223_v0  ;;  %365 = vst [vmem:[#allocation2] ss:$8 sm:$0xf0] %v5223_v0  ;;  %368 = vrot.lane.b32.xlu0 %v5223_v0, %s5073_s21 }
  0x29   :  { %v363_v1 = vld [vmem:[%s6891_s0 + $0x8] sm:$0x3]  ;;  %s5074_s23 = smov 125   ;;  %s5075_s24 = smov 124   ;;  %v616_v2 = vrot.slane %v5223_v0, 1  ;;  %v6917_v5 = vmov 0.0  }
  0x2a   :  { %s5076_s25 = smov 96   ;;  %s5077_s27 = smov 95   ;;  %v617_v3 = vrot.slane %v363_v1, 1  ;;  %786 = vmatprep.mubr.f32.mxu0 %v6917_v5  ;;  %999 = vmatprep.mubr.f32.mxu1 %v6917_v5  ;;  %v74_v6 = vld [vmem:[%s6893_s2] sm:$0x3f]  ;;  %v5092_v7 = vmov 0  }
  0x2b   :  { %s5078_s28 = smov 94   ;;  %s5079_s29 = smov 93   ;;  %4930 = vset.pattern.permute.xlu0 %v5092_v7  ;;  %4931 = vset.pattern.permute.xlu1 %v5092_v7  ;;  %vm389_vm1 = vcmask 1031168   ;;  %vm7086_vm2 = vcmask 1045504   ;;  %vm376_vm3 = vcmask 1039360   ;;  %vm402_vm4 = vcmask 1022976  }
  0x2c   :  { %384 = vrot.lane.b32.xlu1 %v363_v1, %s5072_s20  ;;  %370 = vrot.lane.b32.xlu0 %v363_v1, %s5073_s21  ;;  %s5080_s30 = smov 92   ;;  %s5081_s14 = smov 64   ;;  %v618_v4 = vsel %vm374_vm0, %v616_v2, %v617_v3  ;;  %vm7049_vm5 = vcmask 1014784   ;;  %vm7064_vm6 = vcmask 785408   ;;  %vm7045_vm7 = vcmask 777216  }
  0x2d   :  { %s5082_s15 = smov 63   ;;  %s5083_s3 = smov 62   ;;  %621 = vst [vmem:[#allocation2 + $0x84] ss:$8 sm:$0xf] %v618_v4  ;;  %vm7044_vm8 = vcmask 769024  }
  0x2e   :  { %s7012_s26 = smov 61   ;;  %s7008_s16 = smov 60   ;;  %622 = vst [vmem:[#allocation2 + $0x84] ss:$8 sm:$0xf0] %v618_v4  ;;  %vm7042_vm9 = vcmask 760832  }
  0x2f   :  { %s7006_s17 = smov 32   ;;  %s6907_s18 = smov 31   ;;  %vm7040_vm10 = vcmask 752640   ;;  %vm6916_vm11 = vcmask 523264   ;;  %vm6915_vm12 = vcmask 515072   ;;  %vm6909_vm13 = vcmask 506880  }
  0x30   :  { %397 = vrot.lane.b32.xlu1 %v363_v1, %s5074_s23  ;;  %395 = vrot.lane.b32.xlu0 %v5223_v0, %s5074_s23  ;;  %s6905_s19 = smov 30   ;;  %s7004_s6 = smov 29   ;;  %vm6910_vm14 = vcmask 498688   ;;  %vm6911_vm15 = vcmask 490496  }
  0x31   :  { %s6994_s22 = smov 28   ;;  %s7000_s2 = smov 98  }
  0x34   :  { %410 = vrot.lane.b32.xlu1 %v363_v1, %s5075_s24  ;;  %408 = vrot.lane.b32.xlu0 %v5223_v0, %s5075_s24 }
  0x38   :  { %423 = vrot.lane.b32.xlu1 %v363_v1, %s5076_s25  ;;  %421 = vrot.lane.b32.xlu0 %v5223_v0, %s5076_s25 }
  0x3c   :  { %436 = vrot.lane.b32.xlu1 %v363_v1, %s5077_s27  ;;  %434 = vrot.lane.b32.xlu0 %v5223_v0, %s5077_s27 }
  0x40   :  { %449 = vrot.lane.b32.xlu1 %v363_v1, %s5078_s28  ;;  %447 = vrot.lane.b32.xlu0 %v5223_v0, %s5078_s28 }
  0x44   :  { %462 = vrot.lane.b32.xlu1 %v363_v1, %s5079_s29  ;;  %460 = vrot.lane.b32.xlu0 %v5223_v0, %s5079_s29 }
  0x48   :  { %475 = vrot.lane.b32.xlu1 %v363_v1, %s5080_s30  ;;  %473 = vrot.lane.b32.xlu0 %v5223_v0, %s5080_s30 }
  0x4c   :  { %488 = vrot.lane.b32.xlu1 %v363_v1, %s5081_s14  ;;  %486 = vrot.lane.b32.xlu0 %v5223_v0, %s5081_s14 }
  0x50   :  { %501 = vrot.lane.b32.xlu1 %v363_v1, %s5082_s15  ;;  %499 = vrot.lane.b32.xlu0 %v5223_v0, %s5082_s15 }
  0x54   :  { %514 = vrot.lane.b32.xlu1 %v363_v1, %s5083_s3  ;;  %512 = vrot.lane.b32.xlu0 %v5223_v0, %s5083_s3 }
  0x58   :  { %527 = vrot.lane.b32.xlu1 %v363_v1, %s7012_s26  ;;  %525 = vrot.lane.b32.xlu0 %v5223_v0, %s7012_s26  ;;  %s7030_s26 = smov 83  }
  0x5c   :  { %540 = vrot.lane.b32.xlu1 %v363_v1, %s7008_s16  ;;  %538 = vrot.lane.b32.xlu0 %v5223_v0, %s7008_s16  ;;  %s7020_s16 = smov 97  }
  0x60   :  { %553 = vrot.lane.b32.xlu1 %v363_v1, %s7006_s17  ;;  %551 = vrot.lane.b32.xlu0 %v5223_v0, %s7006_s17  ;;  %s7018_s17 = smov 99  }
  0x64   :  { %566 = vrot.lane.b32.xlu1 %v363_v1, %s6907_s18  ;;  %564 = vrot.lane.b32.xlu0 %v5223_v0, %s6907_s18  ;;  %s6996_s18 = smov 85  }
  0x68   :  { %579 = vrot.lane.b32.xlu1 %v363_v1, %s6905_s19  ;;  %577 = vrot.lane.b32.xlu0 %v5223_v0, %s6905_s19  ;;  %s7002_s19 = smov 111  }
  0x6c   :  { %592 = vrot.lane.b32.xlu1 %v363_v1, %s7004_s6  ;;  %590 = vrot.lane.b32.xlu0 %v5223_v0, %s7004_s6  ;;  %s7022_s6 = smov 100  }
  0x70   :  { %605 = vrot.lane.b32.xlu1 %v363_v1, %s6994_s22  ;;  %603 = vrot.lane.b32.xlu0 %v5223_v0, %s6994_s22  ;;  %s6998_s22 = smov 72  }
  0x74   :  { %690 = vperm.xlu0 %4930, %v74_v6  }
  0x9a   :  { %v383_v8 = vpop.permute.xlu1 %382  ;;  %v369_v9 = vpop.permute.xlu0 %368 }
  0x9b   :  { %v386_v10 = vrot.slane %v383_v8, 1  ;;  %v632_v11 = vrot.slane %v383_v8, 2  ;;  %v372_v12 = vrot.slane %v369_v9, 1  ;;  %v623_v13 = vrot.slane %v369_v9, 2 }
  0x9e   :  { %v385_v14 = vpop.permute.xlu1 %384  ;;  %v371_v15 = vpop.permute.xlu0 %370 }
  0x9f   :  { %v387_v16 = vrot.slane %v385_v14, 1  ;;  %v633_v17 = vrot.slane %v385_v14, 2  ;;  %v373_v18 = vrot.slane %v371_v15, 1  ;;  %v624_v19 = vrot.slane %v371_v15, 2 }
  0xa1   :  { %v388_v20 = vsel %vm374_vm0, %v386_v10, %v387_v16  ;;  %v634_v21 = vsel %vm7086_vm2, %v632_v11, %v633_v17  ;;  %v375_v22 = vsel %vm374_vm0, %v372_v12, %v373_v18  ;;  %v626_v23 = vsel %vm7086_vm2, %v623_v13, %v624_v19 }
  0xa2   :  { %v390_v24 = vsel %vm389_vm1, %v383_v8, %v388_v20  ;;  %v635_v25 = vsel %vm389_vm1, %v388_v20, %v634_v21  ;;  %v377_v26 = vsel %vm376_vm3, %v369_v9, %v375_v22  ;;  %v627_v27 = vsel %vm376_vm3, %v375_v22, %v626_v23  ;;  %v398_v28 = vpop.permute.xlu1 %397  ;;  %v396_v29 = vpop.permute.xlu0 %395 }
  0xa3   :  { %393 = vst [vmem:[#allocation2 + $0x2] ss:$8 sm:$0xf] %v390_v24  ;;  %394 = vst [vmem:[#allocation2 + $0x2] ss:$8 sm:$0xf0] %v390_v24 }
  0xa4   :  { %638 = vst [vmem:[#allocation2 + $0x86] ss:$8 sm:$0xf] %v635_v25  ;;  %639 = vst [vmem:[#allocation2 + $0x86] ss:$8 sm:$0xf0] %v635_v25 }
  0xa5   :  { %380 = vst [vmem:[#allocation2 + $0x1] ss:$8 sm:$0xf] %v377_v26  ;;  %381 = vst [vmem:[#allocation2 + $0x1] ss:$8 sm:$0xf0] %v377_v26 }
  0xa6   :  { %630 = vst [vmem:[#allocation2 + $0x85] ss:$8 sm:$0xf] %v627_v27  ;;  %631 = vst [vmem:[#allocation2 + $0x85] ss:$8 sm:$0xf0] %v627_v27  ;;  %v411_v38 = vpop.permute.xlu1 %410  ;;  %v409_v39 = vpop.permute.xlu0 %408 }
  0xa7   :  { %v400_v30 = vrot.slane %v398_v28, 1  ;;  %v641_v31 = vrot.slane %v398_v28, 2  ;;  %v399_v32 = vrot.slane %v396_v29, 1  ;;  %v640_v33 = vrot.slane %v396_v29, 2 }
  0xa8   :  { %v413_v40 = vrot.slane %v411_v38, 1  ;;  %v649_v41 = vrot.slane %v411_v38, 2  ;;  %v412_v42 = vrot.slane %v409_v39, 1  ;;  %v648_v43 = vrot.slane %v409_v39, 2 }
  0xa9   :  { %v401_v34 = vsel %vm374_vm0, %v399_v32, %v400_v30  ;;  %v642_v35 = vsel %vm7086_vm2, %v640_v33, %v641_v31 }
  0xaa   :  { %v403_v36 = vsel %vm402_vm4, %v396_v29, %v401_v34  ;;  %v643_v37 = vsel %vm402_vm4, %v401_v34, %v642_v35  ;;  %v414_v44 = vsel %vm374_vm0, %v412_v42, %v413_v40  ;;  %v650_v45 = vsel %vm7086_vm2, %v648_v43, %v649_v41  ;;  %v424_v48 = vpop.permute.xlu1 %423  ;;  %v422_v49 = vpop.permute.xlu0 %421 }
  0xab   :  { %406 = vst [vmem:[#allocation2 + $0x3] ss:$8 sm:$0xf] %v403_v36  ;;  %407 = vst [vmem:[#allocation2 + $0x3] ss:$8 sm:$0xf0] %v403_v36  ;;  %v416_v46 = vsel %vm7049_vm5, %v409_v39, %v414_v44  ;;  %v651_v47 = vsel %vm7049_vm5, %v414_v44, %v650_v45 }
  0xac   :  { %646 = vst [vmem:[#allocation2 + $0x87] ss:$8 sm:$0xf] %v643_v37  ;;  %647 = vst [vmem:[#allocation2 + $0x87] ss:$8 sm:$0xf0] %v643_v37 }
  0xad   :  { %419 = vst [vmem:[#allocation2 + $0x4] ss:$8 sm:$0xf] %v416_v46  ;;  %420 = vst [vmem:[#allocation2 + $0x4] ss:$8 sm:$0xf0] %v416_v46 }
  0xae   :  { %654 = vst [vmem:[#allocation2 + $0xc0] ss:$8 sm:$0xf] %v651_v47  ;;  %655 = vst [vmem:[#allocation2 + $0xc0] ss:$8 sm:$0xf0] %v651_v47  ;;  %v437_v54 = vpop.permute.xlu1 %436  ;;  %v435_v55 = vpop.permute.xlu0 %434 }
  0xaf   :  { %v426_v50 = vrot.slane %v424_v48, 1  ;;  %v425_v51 = vrot.slane %v422_v49, 1  ;;  %v439_v56 = vrot.slane %v437_v54, 1  ;;  %v438_v57 = vrot.slane %v435_v55, 1 }
  0xb1   :  { %v427_v52 = vsel %vm374_vm0, %v425_v51, %v426_v50  ;;  %v440_v58 = vsel %vm374_vm0, %v438_v57, %v439_v56 }
  0xb2   :  { %v429_v53 = vsel %vm7064_vm6, %v422_v49, %v427_v52  ;;  %v442_v59 = vsel %vm7045_vm7, %v435_v55, %v440_v58  ;;  %v450_v60 = vpop.permute.xlu1 %449  ;;  %v448_v61 = vpop.permute.xlu0 %447  ;;  %vm7052_vm7 = vcmask 932864  }
  0xb3   :  { %432 = vst [vmem:[#allocation2 + $0x5] ss:$8 sm:$0xf] %v429_v53  ;;  %433 = vst [vmem:[#allocation2 + $0x5] ss:$8 sm:$0xf0] %v429_v53 }
  0xb4   :  { %445 = vst [vmem:[#allocation2 + $0x6] ss:$8 sm:$0xf] %v442_v59  ;;  %446 = vst [vmem:[#allocation2 + $0x6] ss:$8 sm:$0xf0] %v442_v59 }
  0xb5   :  { %v452_v62 = vrot.slane %v450_v60, 1  ;;  %v451_v63 = vrot.slane %v448_v61, 1 }
  0xb6   :  { %v463_v2 = vpop.permute.xlu1 %462  ;;  %v461_v3 = vpop.permute.xlu0 %460 }
  0xb7   :  { %v453_v0 = vsel %vm374_vm0, %v451_v63, %v452_v62  ;;  %v465_v4 = vrot.slane %v463_v2, 1  ;;  %v464_v6 = vrot.slane %v461_v3, 1 }
  0xb8   :  { %v455_v1 = vsel %vm7044_vm8, %v448_v61, %v453_v0  ;;  %vm1343_vm8 = vcmask 556034  }
  0xb9   :  { %458 = vst [vmem:[#allocation2 + $0x7] ss:$8 sm:$0xf] %v455_v1  ;;  %459 = vst [vmem:[#allocation2 + $0x7] ss:$8 sm:$0xf0] %v455_v1  ;;  %v466_v7 = vsel %vm374_vm0, %v464_v6, %v465_v4 }
  0xba   :  { %v468_v8 = vsel %vm7042_vm9, %v461_v3, %v466_v7  ;;  %v476_v9 = vpop.permute.xlu1 %475  ;;  %v474_v10 = vpop.permute.xlu0 %473  ;;  %vm1331_vm9 = vcmask 549888  }
  0xbb   :  { %471 = vst [vmem:[#allocation2 + $0x40] ss:$8 sm:$0xf] %v468_v8  ;;  %472 = vst [vmem:[#allocation2 + $0x40] ss:$8 sm:$0xf0] %v468_v8 }
  0xbc   :  { %v478_v11 = vrot.slane %v476_v9, 1  ;;  %v477_v12 = vrot.slane %v474_v10, 1 }
  0xbe   :  { %v479_v13 = vsel %vm374_vm0, %v477_v12, %v478_v11  ;;  %v489_v15 = vpop.permute.xlu1 %488  ;;  %v487_v16 = vpop.permute.xlu0 %486 }
  0xbf   :  { %v481_v14 = vsel %vm7040_vm10, %v474_v10, %v479_v13  ;;  %v491_v17 = vrot.slane %v489_v15, 1  ;;  %v490_v18 = vrot.slane %v487_v16, 1  ;;  %vm1316_vm10 = vcmask 551936  }
  0xc0   :  { %484 = vst [vmem:[#allocation2 + $0x41] ss:$8 sm:$0xf] %v481_v14  ;;  %485 = vst [vmem:[#allocation2 + $0x41] ss:$8 sm:$0xf0] %v481_v14 }
  0xc1   :  { %v492_v19 = vsel %vm374_vm0, %v490_v18, %v491_v17  ;;  %v657_v62 = vld [vmem:[#allocation2 + $0x8] sm:$0xff]  ;;  %v663_v63 = vld [vmem:[#allocation2 + $0x38] sm:$0xff]  ;;  %v656_v11 = vld [vmem:[#allocation2] sm:$0xff] }
  0xc2   :  { %v494_v20 = vsel %vm6916_vm11, %v487_v16, %v492_v19  ;;  %v502_v21 = vpop.permute.xlu1 %501  ;;  %v500_v22 = vpop.permute.xlu0 %499  ;;  %v662_v12 = vld [vmem:[#allocation2 + $0x30] sm:$0xff] }
  0xc3   :  { %497 = vst [vmem:[#allocation2 + $0x42] ss:$8 sm:$0xf] %v494_v20  ;;  %498 = vst [vmem:[#allocation2 + $0x42] ss:$8 sm:$0xf0] %v494_v20 }
  0xc4   :  { %v504_v23 = vrot.slane %v502_v21, 1  ;;  %v503_v24 = vrot.slane %v500_v22, 1 }
  0xc6   :  { %v505_v25 = vsel %vm374_vm0, %v503_v24, %v504_v23  ;;  %v515_v27 = vpop.permute.xlu1 %514  ;;  %v513_v28 = vpop.permute.xlu0 %512  ;;  %v681_v24 = vld [vmem:[#allocation2 + $0xc8] sm:$0x1] }
  0xc7   :  { %v507_v26 = vsel %vm6915_vm12, %v500_v22, %v505_v25  ;;  %v517_v29 = vrot.slane %v515_v27, 1  ;;  %v516_v30 = vrot.slane %v513_v28, 1  ;;  %vm5093_vm12 = vmmov 1   ;;  %v680_v27 = vld [vmem:[#allocation2 + $0xc0] sm:$0x1] }
  0xc8   :  { %510 = vst [vmem:[#allocation2 + $0x43] ss:$8 sm:$0xf] %v507_v26  ;;  %511 = vst [vmem:[#allocation2 + $0x43] ss:$8 sm:$0xf0] %v507_v26 }
  0xc9   :  { %v518_v31 = vsel %vm374_vm0, %v516_v30, %v517_v29  ;;  %v687_v26 = vld [vmem:[#allocation2 + $0xf8] sm:$0x1] }
  0xca   :  { %v520_v32 = vsel %vm6909_vm13, %v513_v28, %v518_v31  ;;  %v528_v33 = vpop.permute.xlu1 %527  ;;  %v526_v34 = vpop.permute.xlu0 %525  ;;  %vm6912_vm13 = vcmask 261120  }
  0xcb   :  { %523 = vst [vmem:[#allocation2 + $0x44] ss:$8 sm:$0xf] %v520_v32  ;;  %524 = vst [vmem:[#allocation2 + $0x44] ss:$8 sm:$0xf0] %v520_v32 }
  0xcc   :  { %v530_v35 = vrot.slane %v528_v33, 1  ;;  %v529_v36 = vrot.slane %v526_v34, 1 }
  0xce   :  { %v531_v37 = vsel %vm374_vm0, %v529_v36, %v530_v35  ;;  %v541_v39 = vpop.permute.xlu1 %540  ;;  %v539_v40 = vpop.permute.xlu0 %538  ;;  %v686_v36 = vld [vmem:[#allocation2 + $0xf0] sm:$0x1] }
  0xcf   :  { %v533_v38 = vsel %vm6910_vm14, %v526_v34, %v531_v37  ;;  %v543_v41 = vrot.slane %v541_v39, 1  ;;  %v542_v42 = vrot.slane %v539_v40, 1  ;;  %vm6914_vm14 = vcmask 252928  }
  0xd0   :  { %536 = vst [vmem:[#allocation2 + $0x45] ss:$8 sm:$0xf] %v533_v38  ;;  %537 = vst [vmem:[#allocation2 + $0x45] ss:$8 sm:$0xf0] %v533_v38 }
  0xd1   :  { %v544_v43 = vsel %vm374_vm0, %v542_v42, %v543_v41  ;;  %v659_v38 = vld [vmem:[#allocation2 + $0x18] sm:$0xff]  ;;  %v73_v41 = vld [vmem:[%s6892_s1] sm:$0x3f] }
  0xd2   :  { %v546_v44 = vsel %vm6911_vm15, %v539_v40, %v544_v43  ;;  %v554_v45 = vpop.permute.xlu1 %553  ;;  %v552_v46 = vpop.permute.xlu0 %551  ;;  %vm6913_vm15 = vcmask 244736   ;;  %v658_v43 = vld [vmem:[#allocation2 + $0x10] sm:$0xff] }
  0xd3   :  { %549 = vst [vmem:[#allocation2 + $0x46] ss:$8 sm:$0xf] %v546_v44  ;;  %550 = vst [vmem:[#allocation2 + $0x46] ss:$8 sm:$0xf0] %v546_v44 }
  0xd4   :  { %v556_v47 = vrot.slane %v554_v45, 1  ;;  %v555_v48 = vrot.slane %v552_v46, 1  ;;  %v683_v45 = vld [vmem:[#allocation2 + $0xd8] sm:$0x1] }
  0xd6   :  { %v557_v49 = vsel %vm374_vm0, %v555_v48, %v556_v47  ;;  %v567_v51 = vpop.permute.xlu1 %566  ;;  %v565_v52 = vpop.permute.xlu0 %564 }
  0xd7   :  { %v559_v50 = vsel %vm6912_vm13, %v552_v46, %v557_v49  ;;  %v569_v53 = vrot.slane %v567_v51, 1  ;;  %v568_v54 = vrot.slane %v565_v52, 1  ;;  %vm7036_vm13 = vcmask 236544   ;;  %v682_v49 = vld [vmem:[#allocation2 + $0xd0] sm:$0x1]  ;;  %v661_v51 = vld [vmem:[#allocation2 + $0x28] sm:$0xff] }
  0xd8   :  { %562 = vst [vmem:[#allocation2 + $0x47] ss:$8 sm:$0xf] %v559_v50  ;;  %563 = vst [vmem:[#allocation2 + $0x47] ss:$8 sm:$0xf0] %v559_v50 }
  0xd9   :  { %v570_v55 = vsel %vm374_vm0, %v568_v54, %v569_v53 }
  0xda   :  { %v572_v56 = vsel %vm6914_vm14, %v565_v52, %v570_v55  ;;  %v580_v57 = vpop.permute.xlu1 %579  ;;  %v578_v58 = vpop.permute.xlu0 %577  ;;  %vm697_vm14 = vcmask 1040384   ;;  %v660_v55 = vld [vmem:[#allocation2 + $0x20] sm:$0xff] }
  0xdb   :  { %575 = vst [vmem:[#allocation2 + $0x80] ss:$8 sm:$0xf] %v572_v56  ;;  %576 = vst [vmem:[#allocation2 + $0x80] ss:$8 sm:$0xf0] %v572_v56 }
  0xdc   :  { %v582_v59 = vrot.slane %v580_v57, 1  ;;  %v581_v60 = vrot.slane %v578_v58, 1  ;;  %vm5340_vm11 = vmpackc.low %vm697_vm14, %vm5093_vm12  ;;  %vm7034_vm12 = vcmask 203776   ;;  %v685_v57 = vld [vmem:[#allocation2 + $0xe8] sm:$0x1]  ;;  %vm1299_vm14 = vcmask 553984  }
  0xde   :  { %v583_v61 = vsel %vm374_vm0, %v581_v60, %v582_v59  ;;  %v593_v1 = vpop.permute.xlu1 %592  ;;  %v591_v2 = vpop.permute.xlu0 %590  ;;  %v78_v59 = vld [vmem:[#allocation5 + $0x18] sm:$0xff] }
  0xdf   :  { %v585_v0 = vsel %vm6913_vm15, %v578_v58, %v583_v61  ;;  %v665_v3 = vld [vmem:[#allocation2 + $0x48] sm:$0xff]  ;;  %v671_v4 = vld [vmem:[#allocation2 + $0x78] sm:$0xff]  ;;  %v664_v6 = vld [vmem:[#allocation2 + $0x40] sm:$0xff]  ;;  %v595_v7 = vrot.slane %v593_v1, 1  ;;  %v594_v8 = vrot.slane %v591_v2, 1  ;;  %vm7035_vm15 = vcmask 228352  }
  0xe0   :  { %588 = vst [vmem:[#allocation2 + $0x81] ss:$8 sm:$0xf] %v585_v0  ;;  %589 = vst [vmem:[#allocation2 + $0x81] ss:$8 sm:$0xf0] %v585_v0  ;;  %v4027_v9 = vpack.c.bf16 %v665_v3, %v657_v62  ;;  %v4057_v10 = vpack.c.bf16 %v671_v4, %v663_v63  ;;  %v4029_v14 = vpack.c.bf16 %v664_v6, %v656_v11 }
  0xe1   :  { %v670_v13 = vld [vmem:[#allocation2 + $0x70] sm:$0xff]  ;;  %v596_v16 = vsel %vm374_vm0, %v594_v8, %v595_v7  ;;  %v667_v28 = vld [vmem:[#allocation2 + $0x58] sm:$0xff]  ;;  %v669_v48 = vld [vmem:[#allocation2 + $0x68] sm:$0xff] }
  0xe2   :  { %v4059_v15 = vpack.c.bf16 %v670_v13, %v662_v12  ;;  %4028 = vmatprep.subr.bf16.mxu0 %v4027_v9  ;;  %4058 = vmatprep.subr.bf16.mxu1 %v4057_v10  ;;  %v598_v17 = vsel %vm7036_vm13, %v591_v2, %v596_v16  ;;  %v606_v18 = vpop.permute.xlu1 %605  ;;  %v604_v19 = vpop.permute.xlu0 %603  ;;  %v4037_v39 = vpack.c.bf16 %v667_v28, %v659_v38  ;;  %v666_v40 = vld [vmem:[#allocation2 + $0x50] sm:$0xff]  ;;  %v668_v53 = vld [vmem:[#allocation2 + $0x60] sm:$0xff]  ;;  %v75_v0 = vld [vmem:[#allocation5] sm:$0xff]  ;;  %vm7038_vm13 = vcmask 801792  }
  0xe3   :  { %4030 = vmatpush1.bf16.msra.mxu0 %v4029_v14  ;;  %601 = vst [vmem:[#allocation2 + $0x82] ss:$8 sm:$0xf] %v598_v17  ;;  %602 = vst [vmem:[#allocation2 + $0x82] ss:$8 sm:$0xf0] %v598_v17  ;;  %v4039_v44 = vpack.c.bf16 %v666_v40, %v658_v43  ;;  %v4047_v52 = vpack.c.bf16 %v669_v48, %v661_v51  ;;  %v4049_v56 = vpack.c.bf16 %v668_v53, %v660_v55 }
  0xe4   :  { %4060 = vmatpush1.bf16.msra.mxu1 %v4059_v15  ;;  %v608_v20 = vrot.slane %v606_v18, 1  ;;  %v607_v21 = vrot.slane %v604_v19, 1  ;;  %v76_v58 = vld [vmem:[#allocation5 + $0x8] sm:$0xff]  ;;  %v77_v1 = vld [vmem:[#allocation5 + $0x10] sm:$0xff]  ;;  %v82_v4 = vld [vmem:[#allocation5 + $0x38] sm:$0xff] }
  0xe5   :  { %v684_v62 = vld [vmem:[#allocation2 + $0xe0] sm:$0x1]  ;;  %v5366_v63 = vpack.c.bf16 %v78_v59, %v76_v58  ;;  %v5370_v6 = vpack.c.bf16 %v77_v1, %v75_v0  ;;  %v79_v8 = vld [vmem:[#allocation5 + $0x20] sm:$0xff]  ;;  %v81_v9 = vld [vmem:[#allocation5 + $0x30] sm:$0xff] }
  0xe6   :  { %v609_v22 = vsel %vm374_vm0, %v607_v21, %v608_v20  ;;  %v80_v3 = vld [vmem:[#allocation5 + $0x28] sm:$0xff]  ;;  %v86_v11 = vld [vmem:[#allocation5 + $0x58] sm:$0xff]  ;;  %v5377_v12 = vpack.c.bf16 %v81_v9, %v79_v8  ;;  %v83_v14 = vld [vmem:[#allocation5 + $0x40] sm:$0xff] }
  0xe7   :  { %v611_v23 = vsel %vm7035_vm15, %v604_v19, %v609_v22  ;;  %v5373_v7 = vpack.c.bf16 %v82_v4, %v80_v3  ;;  %v84_v10 = vld [vmem:[#allocation5 + $0x48] sm:$0xff]  ;;  %v85_v15 = vld [vmem:[#allocation5 + $0x50] sm:$0xff]  ;;  %v90_v17 = vld [vmem:[#allocation5 + $0x78] sm:$0xff]  ;;  %vm7037_vm15 = vcmask 908288  }
  0xe8   :  { %614 = vst [vmem:[#allocation2 + $0x83] ss:$8 sm:$0xf] %v611_v23  ;;  %615 = vst [vmem:[#allocation2 + $0x83] ss:$8 sm:$0xf0] %v611_v23  ;;  %v5380_v13 = vpack.c.bf16 %v86_v11, %v84_v10  ;;  %v5383_v18 = vpack.c.bf16 %v85_v15, %v83_v14 }
  0xe9   :  { %v88_v16 = vld [vmem:[#allocation5 + $0x68] sm:$0xff]  ;;  %v87_v20 = vld [vmem:[#allocation5 + $0x60] sm:$0xff]  ;;  %v89_v21 = vld [vmem:[#allocation5 + $0x70] sm:$0xff] }
  0xea   :  { %v5386_v19 = vpack.c.bf16 %v90_v17, %v88_v16  ;;  %v92_v22 = vld [vmem:[#allocation5 + $0x88] sm:$0xff]  ;;  %v94_v23 = vld [vmem:[#allocation5 + $0x98] sm:$0xff]  ;;  %v93_v28 = vld [vmem:[#allocation5 + $0x90] sm:$0xff] }
  0xeb   :  { %v101_v40 = vld [vmem:[#allocation5 + $0xd0] sm:$0xff]  ;;  %v110_v48 = vld [vmem:[#allocation5 + $0x118] sm:$0xff]  ;;  %v107_v51 = vld [vmem:[#allocation5 + $0x100] sm:$0xff] }
  0xec   :  { %v112_v53 = vld [vmem:[#allocation5 + $0x128] sm:$0xff]  ;;  %v113_v58 = vld [vmem:[#allocation5 + $0x130] sm:$0xff]  ;;  %v115_v0 = vld [vmem:[#allocation5 + $0x140] sm:$0xff] }
  0xed   :  { %v116_v59 = vld [vmem:[#allocation5 + $0x148] sm:$0xff]  ;;  %v117_v1 = vld [vmem:[#allocation5 + $0x150] sm:$0xff]  ;;  %v122_v3 = vld [vmem:[#allocation5 + $0x178] sm:$0xff] }
  0xee   :  { %v5431_v4 = vpack.c.bf16 %v117_v1, %v115_v0  ;;  %v119_v9 = vld [vmem:[#allocation5 + $0x160] sm:$0xff]  ;;  %v121_v10 = vld [vmem:[#allocation5 + $0x170] sm:$0xff]  ;;  %v124_v11 = vld [vmem:[#allocation5 + $0x188] sm:$0xff] }
  0xef   :  { %v673_v29 = vld [vmem:[#allocation2 + $0x88] sm:$0xff]  ;;  %v679_v30 = vld [vmem:[#allocation2 + $0xb8] sm:$0xff]  ;;  %v672_v31 = vld [vmem:[#allocation2 + $0x80] sm:$0xff]  ;;  %v5437_v15 = vpack.c.bf16 %v121_v10, %v119_v9 }
  0xf0   :  { %v4031_v32 = vpack.c.bf16 %v681_v24, %v673_v29  ;;  %v4061_v33 = vpack.c.bf16 %v687_v26, %v679_v30  ;;  %v4034_v34 = vpack.c.bf16 %v680_v27, %v672_v31  ;;  %v678_v35 = vld [vmem:[#allocation2 + $0xb0] sm:$0xff]  ;;  %v675_v42 = vld [vmem:[#allocation2 + $0x98] sm:$0xff]  ;;  %v677_v54 = vld [vmem:[#allocation2 + $0xa8] sm:$0xff]  ;;  %v5389_v24 = vpack.c.bf16 %v89_v21, %v87_v20 }
  0xf1   :  { %v4064_v37 = vpack.c.bf16 %v686_v36, %v678_v35  ;;  %v4041_v46 = vpack.c.bf16 %v683_v45, %v675_v42  ;;  %v674_v47 = vld [vmem:[#allocation2 + $0x90] sm:$0xff]  ;;  %v4051_v60 = vpack.c.bf16 %v685_v57, %v677_v54  ;;  %v676_v61 = vld [vmem:[#allocation2 + $0xa0] sm:$0xff]  ;;  %v5392_v26 = vpack.c.bf16 %v94_v23, %v92_v22  ;;  %v91_v27 = vld [vmem:[#allocation5 + $0x80] sm:$0xff] }
  0xf2   :  { %4033 = vmatprep.subr.msk.bf16.mxu0 %vm5340_vm11, %v4031_v32  ;;  %4063 = vmatprep.subr.msk.bf16.mxu1 %vm5340_vm11, %v4061_v33  ;;  %v4044_v50 = vpack.c.bf16 %v682_v49, %v674_v47  ;;  %v4054_v2 = vpack.c.bf16 %v684_v62, %v676_v61  ;;  %v96_v29 = vld [vmem:[#allocation5 + $0xa8] sm:$0xff]  ;;  %v98_v30 = vld [vmem:[#allocation5 + $0xb8] sm:$0xff]  ;;  %v5395_v31 = vpack.c.bf16 %v93_v28, %v91_v27  ;;  %v95_v33 = vld [vmem:[#allocation5 + $0xa0] sm:$0xff] }
  0xf3   :  { %4036 = vmatpush1.bf16.msk.msra.mxu0 %vm5340_vm11, %v4034_v34  ;;  %4066 = vmatpush1.bf16.msk.msra.mxu1 %vm5340_vm11, %v4064_v37  ;;  %v5398_v32 = vpack.c.bf16 %v98_v30, %v96_v29  ;;  %v97_v34 = vld [vmem:[#allocation5 + $0xb0] sm:$0xff]  ;;  %v100_v35 = vld [vmem:[#allocation5 + $0xc8] sm:$0xff]  ;;  %v102_v36 = vld [vmem:[#allocation5 + $0xd8] sm:$0xff] }
  0xf4   :  { %4038 = vmatprep.subr.bf16.mxu0 %v4037_v39  ;;  %v5401_v37 = vpack.c.bf16 %v97_v34, %v95_v33  ;;  %v5404_v38 = vpack.c.bf16 %v102_v36, %v100_v35  ;;  %v99_v39 = vld [vmem:[#allocation5 + $0xc0] sm:$0xff]  ;;  %v106_v42 = vld [vmem:[#allocation5 + $0xf8] sm:$0xff]  ;;  %v108_v47 = vld [vmem:[#allocation5 + $0x108] sm:$0xff] }
  0xf5   :  { %v5407_v43 = vpack.c.bf16 %v101_v40, %v99_v39  ;;  %v103_v45 = vld [vmem:[#allocation5 + $0xe0] sm:$0xff]  ;;  %v114_v54 = vld [vmem:[#allocation5 + $0x138] sm:$0xff]  ;;  %v125_v20 = vld [vmem:[#allocation5 + $0x190] sm:$0xff] }
  0xf6   :  { %3845 = vmatmul.mubr.msk.f32.vlgmr.msra.gmra.mrb[0].mxu0 %vm7034_vm12, %v73_v41  ;;  %3854 = vmatmul.mubr.msk.f32.vlgmr.msra.gmra.mrb[0].mxu1 %vm7034_vm12, %v73_v41  ;;  %v111_v57 = vld [vmem:[#allocation5 + $0x120] sm:$0xff]  ;;  %v126_v14 = vld [vmem:[#allocation5 + $0x198] sm:$0xff]  ;;  %v128_v22 = vld [vmem:[#allocation5 + $0x1a8] sm:$0xff] }
  0xf7   :  { %4040 = vmatpush1.bf16.msra.mxu0 %v4039_v44  ;;  %857 = vmatprep.mubr.f32.mxu0 %v6917_v5  ;;  %v5425_v61 = vpack.c.bf16 %v113_v58, %v111_v57  ;;  %v5440_v16 = vpack.c.bf16 %v126_v14, %v124_v11  ;;  %v123_v17 = vld [vmem:[#allocation5 + $0x180] sm:$0xff]  ;;  %v130_v23 = vld [vmem:[#allocation5 + $0x1b8] sm:$0xff]  ;;  %v129_v29 = vld [vmem:[#allocation5 + $0x1b0] sm:$0xff] }
  0xf8   :  { %4043 = vmatprep.subr.msk.bf16.mxu0 %vm5340_vm11, %v4041_v46  ;;  %v105_v46 = vld [vmem:[#allocation5 + $0xf0] sm:$0xff]  ;;  %v5444_v21 = vpack.c.bf16 %v125_v20, %v123_v17  ;;  %v5447_v27 = vpack.c.bf16 %v130_v23, %v128_v22  ;;  %v127_v28 = vld [vmem:[#allocation5 + $0x1a0] sm:$0xff]  ;;  %v132_v33 = vld [vmem:[#allocation5 + $0x1c8] sm:$0xff] }
  0xf9   :  { %v5413_v49 = vpack.c.bf16 %v105_v46, %v103_v45  ;;  %v5449_v30 = vpack.c.bf16 %v129_v29, %v127_v28  ;;  %v134_v34 = vld [vmem:[#allocation5 + $0x1d8] sm:$0xff]  ;;  %v131_v36 = vld [vmem:[#allocation5 + $0x1c0] sm:$0xff]  ;;  %v133_v39 = vld [vmem:[#allocation5 + $0x1d0] sm:$0xff] }
  0xfa   :  { %v5453_v35 = vpack.c.bf16 %v134_v34, %v132_v33  ;;  %v5455_v40 = vpack.c.bf16 %v133_v39, %v131_v36  ;;  %v135_v46 = vld [vmem:[#allocation5 + $0x1e0] sm:$0xff]  ;;  %v141_v11 = vld [vmem:[#allocation5 + $0x210] sm:$0xff]  ;;  %v144_v14 = vld [vmem:[#allocation5 + $0x228] sm:$0xff] }
  0xfb   :  { %4046 = vmatpush1.bf16.msk.msra.mxu0 %vm5340_vm11, %v4044_v50  ;;  %v5416_v50 = vpack.c.bf16 %v110_v48, %v108_v47  ;;  %v137_v47 = vld [vmem:[#allocation5 + $0x1f0] sm:$0xff]  ;;  %v139_v10 = vld [vmem:[#allocation5 + $0x200] sm:$0xff]  ;;  %v146_v17 = vld [vmem:[#allocation5 + $0x238] sm:$0xff] }
  0xfc   :  { %4048 = vmatprep.subr.bf16.mxu0 %v4047_v52  ;;  %v109_v52 = vld [vmem:[#allocation5 + $0x110] sm:$0xff]  ;;  %v5461_v48 = vpack.c.bf16 %v137_v47, %v135_v46  ;;  %v5479_v20 = vpack.c.bf16 %v141_v11, %v139_v10  ;;  %v5481_v23 = vpack.c.bf16 %v146_v17, %v144_v14  ;;  %v143_v28 = vld [vmem:[#allocation5 + $0x220] sm:$0xff]  ;;  %v148_v36 = vld [vmem:[#allocation5 + $0x248] sm:$0xff] }
  0xfd   :  { %v5419_v55 = vpack.c.bf16 %v109_v52, %v107_v51  ;;  %v140_v51 = vld [vmem:[#allocation5 + $0x208] sm:$0xff]  ;;  %v142_v52 = vld [vmem:[#allocation5 + $0x218] sm:$0xff]  ;;  %v145_v29 = vld [vmem:[#allocation5 + $0x230] sm:$0xff] }
  0xfe   :  { %3848 = vmatmul.mubr.msk.f32.vlgmr.msra.gmra.mrb[2].mxu0 %vm7034_vm12, %v73_v41  ;;  %v150_v39 = vld [vmem:[#allocation5 + $0x258] sm:$0xff]  ;;  %v147_v47 = vld [vmem:[#allocation5 + $0x240] sm:$0xff]  ;;  %v156_v10 = vld [vmem:[#allocation5 + $0x288] sm:$0xff] }
  0xff   :  { %4050 = vmatpush1.bf16.msra.mxu0 %v4049_v56  ;;  %928 = vmatprep.mubr.f32.mxu0 %v6917_v5  ;;  %v5422_v56 = vpack.c.bf16 %v114_v54, %v112_v53  ;;  %v5465_v53 = vpack.c.bf16 %v142_v52, %v140_v51  ;;  %v5468_v54 = vpop.permute.xlu0 %690  ;;  %v5491_v46 = vpack.c.bf16 %v150_v39, %v148_v36  ;;  %v149_v51 = vld [vmem:[#allocation5 + $0x250] sm:$0xff]  ;;  %v152_v52 = vld [vmem:[#allocation5 + $0x268] sm:$0xff]  ;;  %v158_v11 = vld [vmem:[#allocation5 + $0x298] sm:$0xff] }
 0x100   :  { %4053 = vmatprep.subr.msk.bf16.mxu0 %vm5340_vm11, %v4051_v60  ;;  %v118_v60 = vld [vmem:[#allocation5 + $0x158] sm:$0xff]  ;;  %v5503_v17 = vpack.c.bf16 %v158_v11, %v156_v10  ;;  %v165_v10 = vld [vmem:[#allocation5 + $0x2d0] sm:$0xff]  ;;  %v168_v11 = vld [vmem:[#allocation5 + $0x2e8] sm:$0xff] }
 0x101   :  { %v5428_v62 = vpack.c.bf16 %v118_v60, %v116_v59  ;;  %7097 = vst [vmem:[#allocation15_spill] sm:$0xff] %v5491_v46  ;;  %v169_v5 = vld [vmem:[#allocation5 + $0x2f0] sm:$0xff] }
 0x102   :  { %7101 = vst [vmem:[#allocation19_spill] sm:$0xff] %v5503_v17 }
 0x103   :  { %4056 = vmatpush1.bf16.msk.msra.mxu0 %vm5340_vm11, %v4054_v2  ;;  %v120_v2 = vld [vmem:[#allocation5 + $0x168] sm:$0xff] }
 0x104   :  { %4068 = vmatprep.subr.bf16.mxu0 %v5366_v63  ;;  %v5434_v8 = vpack.c.bf16 %v122_v3, %v120_v2 }
 0x106   :  { %3851 = vmatmul.mubr.msk.f32.vlgmr.msra.gmra.mrb[4].mxu0 %vm7034_vm12, %v73_v41  ;;  %v104_v41 = vld [vmem:[#allocation5 + $0xe8] sm:$0xff]  ;;  %vm7084_vm12 = vcmask 179200  }
 0x107   :  { %4070 = vmatpush1.bf16.msra.mxu0 %v5370_v6  ;;  %v5410_v44 = vpack.c.bf16 %v106_v42, %v104_v41  ;;  %v136_v41 = vld [vmem:[#allocation5 + $0x1e8] sm:$0xff]  ;;  %v138_v42 = vld [vmem:[#allocation5 + $0x1f8] sm:$0xff] }
 0x108   :  { %4072 = vmatprep.subr.bf16.mxu0 %v5373_v7  ;;  %v5459_v45 = vpack.c.bf16 %v138_v42, %v136_v41  ;;  %v5488_v42 = vpack.c.bf16 %v145_v29, %v143_v28  ;;  %v157_v28 = vld [vmem:[#allocation5 + $0x290] sm:$0xff]  ;;  %v160_v29 = vld [vmem:[#allocation5 + $0x2a8] sm:$0xff] }
 0x10a   :  { %7096 = vst [vmem:[#allocation14_spill] sm:$0xff] %v5488_v42 }
 0x10b   :  { %4074 = vmatpush1.bf16.msra.mxu0 %v5377_v12 }
 0x10c   :  { %4076 = vmatprep.subr.bf16.mxu0 %v5380_v13 }
 0x10f   :  { %4078 = vmatpush1.bf16.msra.mxu0 %v5383_v18 }
 0x110   :  { %4080 = vmatprep.subr.bf16.mxu0 %v5386_v19 }
 0x113   :  { %4082 = vmatpush1.bf16.msra.mxu0 %v5389_v24 }
 0x114   :  { %4084 = vmatprep.subr.bf16.mxu0 %v5392_v26 }
 0x117   :  { %4086 = vmatpush1.bf16.msra.mxu0 %v5395_v31 }
 0x118   :  { %4088 = vmatprep.subr.bf16.mxu0 %v5398_v32 }
 0x11b   :  { %4090 = vmatpush1.bf16.msra.mxu0 %v5401_v37 }
 0x11c   :  { %4092 = vmatprep.subr.bf16.mxu0 %v5404_v38 }
 0x11f   :  { %4094 = vmatpush1.bf16.msra.mxu0 %v5407_v43 }
 0x120   :  { %4096 = vmatprep.subr.bf16.mxu0 %v5410_v44 }
 0x123   :  { %4098 = vmatpush1.bf16.msra.mxu0 %v5413_v49 }
 0x124   :  { %4100 = vmatprep.subr.bf16.mxu0 %v5416_v50 }
 0x127   :  { %4102 = vmatpush1.bf16.msra.mxu0 %v5419_v55 }
 0x128   :  { %4104 = vmatprep.subr.bf16.mxu0 %v5422_v56 }
 0x12b   :  { %4106 = vmatpush1.bf16.msra.mxu0 %v5425_v61 }
 0x12c   :  { %4108 = vmatprep.subr.bf16.mxu0 %v5428_v62 }
 0x12f   :  { %4110 = vmatpush1.bf16.msra.mxu0 %v5431_v4 }
 0x130   :  { %4112 = vmatprep.subr.bf16.mxu0 %v5434_v8 }
 0x133   :  { %4114 = vmatpush1.bf16.msra.mxu0 %v5437_v15 }
 0x134   :  { %4116 = vmatprep.subr.bf16.mxu0 %v5440_v16 }
 0x137   :  { %4118 = vmatpush1.bf16.msra.mxu0 %v5444_v21 }
 0x138   :  { %4120 = vmatprep.subr.bf16.mxu0 %v5447_v27 }
 0x13b   :  { %4122 = vmatpush1.bf16.msra.mxu0 %v5449_v30 }
 0x13c   :  { %4124 = vmatprep.subr.bf16.mxu0 %v5453_v35 }
 0x13f   :  { %4126 = vmatpush1.bf16.msra.mxu0 %v5455_v40 }
 0x140   :  { %4128 = vmatprep.subr.bf16.mxu0 %v5459_v45 }
 0x143   :  { %4130 = vmatpush1.bf16.msra.mxu0 %v5461_v48 }
 0x144   :  { %4132 = vmatprep.subr.bf16.mxu0 %v5465_v53 }
 0x1c9   :  { %v788_v57 = vpop.f32.mrb[0].mxu0  ;;  %v5470_v58 = vpop.f32.mrb[0].mxu1 }
 0x1ca   :  { %v790_v59 = vpop.f32.mrb[1].mxu0  ;;  %v5472_v60 = vpop.f32.mrb[1].mxu1  ;;  %v789_v0 = vadd.f32 %v788_v57, %v5468_v54  ;;  %v154_v57 = vld [vmem:[#allocation5 + $0x278] sm:$0xff] }
 0x1cb   :  { %v791_v1 = vadd.f32 %v790_v59, %v5468_v54 }
 0x1cd   :  { %4933 = vtanh.f32 %v791_v1  ;;  %v5497_v1 = vpack.c.bf16 %v154_v57, %v152_v52  ;;  %v164_v52 = vld [vmem:[#allocation5 + $0x2c8] sm:$0xff]  ;;  %v166_v57 = vld [vmem:[#allocation5 + $0x2d8] sm:$0xff] }
 0x1ce   :  { %4935 = vtanh.f32 %v789_v0  ;;  %v5494_v0 = vpack.c.bf16 %v149_v51, %v147_v47  ;;  %v159_v47 = vld [vmem:[#allocation5 + $0x2a0] sm:$0xff]  ;;  %v161_v51 = vld [vmem:[#allocation5 + $0x2b0] sm:$0xff] }
 0x1cf   :  { %7099 = vst [vmem:[#allocation17_spill] sm:$0xff] %v5497_v1 }
 0x1d0   :  { %7098 = vst [vmem:[#allocation16_spill] sm:$0xff] %v5494_v0 }
 0x1d1   :  { %v5476_v2 = vpop.f32.mrb[2].mxu0 }
 0x1d2   :  { %v861_v3 = vpop.f32.mrb[3].mxu0 }
 0x1d3   :  { %v862_v9 = vadd.f32 %v861_v3, %v5468_v54  ;;  %v151_v3 = vld [vmem:[#allocation5 + $0x260] sm:$0xff] }
 0x1d5   :  { %4937 = vtanh.f32 %v862_v9  ;;  %v153_v9 = vld [vmem:[#allocation5 + $0x270] sm:$0xff] }
 0x1d6   :  { %v5500_v14 = vpack.c.bf16 %v153_v9, %v151_v3  ;;  %v5515_v3 = vpack.c.bf16 %v166_v57, %v164_v52  ;;  %v163_v9 = vld [vmem:[#allocation5 + $0x2c0] sm:$0xff] }
 0x1d7   :  { %v4934_v22 = vpop.eup %4933 }
 0x1d8   :  { %v4936_v33 = vpop.eup %4935  ;;  %1078 = vmatprep.mubr.f32.mxu0 %v4934_v22  ;;  %7100 = vst [vmem:[#allocation18_spill] sm:$0xff] %v5500_v14  ;;  %v155_v22 = vld [vmem:[#allocation5 + $0x280] sm:$0xff]  ;;  %7105 = vst [vmem:[#allocation23_spill] sm:$0xff] %v5515_v3 }
 0x1d9   :  { %v5483_v34 = vpop.f32.mrb[4].mxu0  ;;  %1079 = vmatmul.mubr.f32.vlgmr.msra.gmra.mrb[6].mxu0 %v4936_v33  ;;  %v162_v33 = vld [vmem:[#allocation5 + $0x2b8] sm:$0xff]  ;;  %v5506_v36 = vpack.c.bf16 %v157_v28, %v155_v22  ;;  %v5518_v28 = vpack.c.bf16 %v165_v10, %v163_v9  ;;  %v176_v9 = vld [vmem:[#allocation5 + $0x328] sm:$0xff] }
 0x1da   :  { %v5485_v41 = vpop.f32.mrb[5].mxu0  ;;  %4134 = vmatpush1.bf16.msra.mxu0 %v5479_v20  ;;  %v5509_v39 = vpack.c.bf16 %v162_v33, %v160_v29  ;;  %v170_v22 = vld [vmem:[#allocation5 + $0x2f8] sm:$0xff]  ;;  %v167_v33 = vld [vmem:[#allocation5 + $0x2e0] sm:$0xff] }
 0x1db   :  { %4136 = vmatprep.subr.bf16.mxu0 %v5481_v23  ;;  %7102 = vst [vmem:[#allocation20_spill] sm:$0xff] %v5506_v36  ;;  %7106 = vst [vmem:[#allocation24_spill] sm:$0xff] %v5518_v28  ;;  %v5521_v29 = vpack.c.bf16 %v170_v22, %v168_v11  ;;  %v5524_v52 = vpack.c.bf16 %v169_v5, %v167_v33  ;;  %v178_v10 = vld [vmem:[#allocation5 + $0x338] sm:$0xff]  ;;  %v180_v5 = vld [vmem:[#allocation5 + $0x348] sm:$0xff] }
 0x1dc   :  { %7103 = vst [vmem:[#allocation21_spill] sm:$0xff] %v5509_v39  ;;  %v5533_v22 = vpack.c.bf16 %v178_v10, %v176_v9  ;;  %v182_v33 = vld [vmem:[#allocation5 + $0x358] sm:$0xff] }
 0x1dd   :  { %7107 = vst [vmem:[#allocation25_spill] sm:$0xff] %v5521_v29  ;;  %7108 = vst [vmem:[#allocation26_spill] sm:$0xff] %v5524_v52 }
 0x1de   :  { %4138 = vmatpush1.bf16.msra.mxu0 %v5488_v42  ;;  %7111 = vst [vmem:[#allocation29_spill] sm:$0xff] %v5533_v22 }
 0x1df   :  { %v4938_v59 = vpop.eup %4937  ;;  %4140 = vmatprep.subr.bf16.mxu0 %v5491_v46 }
 0x1e0   :  { %1149 = vmatprep.mubr.f32.mxu0 %v4938_v59  ;;  %v5512_v59 = vpack.c.bf16 %v161_v51, %v159_v47  ;;  %v172_v47 = vld [vmem:[#allocation5 + $0x308] sm:$0xff]  ;;  %v174_v51 = vld [vmem:[#allocation5 + $0x318] sm:$0xff] }
 0x1e1   :  { %v5527_v57 = vpack.c.bf16 %v174_v51, %v172_v47  ;;  %v5539_v51 = vpack.c.bf16 %v182_v33, %v180_v5 }
 0x1e2   :  { %4142 = vmatpush1.bf16.msra.mxu0 %v5494_v0  ;;  %7104 = vst [vmem:[#allocation22_spill] sm:$0xff] %v5512_v59 }
 0x1e3   :  { %4144 = vmatprep.subr.bf16.mxu0 %v5497_v1  ;;  %7109 = vst [vmem:[#allocation27_spill] sm:$0xff] %v5527_v57  ;;  %7113 = vst [vmem:[#allocation31_spill] sm:$0xff] %v5539_v51 }
 0x1e6   :  { %4146 = vmatpush1.bf16.msra.mxu0 %v5500_v14 }
 0x1e7   :  { %4148 = vmatprep.subr.bf16.mxu0 %v5503_v17 }
 0x1ea   :  { %4150 = vmatpush1.bf16.msra.mxu0 %v5506_v36 }
 0x1eb   :  { %4152 = vmatprep.subr.bf16.mxu0 %v5509_v39  ;;  %v171_v39 = vld [vmem:[#allocation5 + $0x300] sm:$0xff] }
 0x1ee   :  { %4154 = vmatpush1.bf16.msra.mxu0 %v5512_v59  ;;  %v173_v59 = vld [vmem:[#allocation5 + $0x310] sm:$0xff] }
 0x1ef   :  { %4156 = vmatprep.subr.bf16.mxu0 %v5515_v3  ;;  %v5530_v11 = vpack.c.bf16 %v173_v59, %v171_v39  ;;  %v175_v3 = vld [vmem:[#allocation5 + $0x320] sm:$0xff]  ;;  %v184_v39 = vld [vmem:[#allocation5 + $0x368] sm:$0xff]  ;;  %v186_v59 = vld [vmem:[#allocation5 + $0x378] sm:$0xff] }
 0x1f0   :  { %v5545_v10 = vpack.c.bf16 %v186_v59, %v184_v39 }
 0x1f1   :  { %7110 = vst [vmem:[#allocation28_spill] sm:$0xff] %v5530_v11 }
 0x1f2   :  { %4158 = vmatpush1.bf16.msra.mxu0 %v5518_v28  ;;  %v177_v28 = vld [vmem:[#allocation5 + $0x330] sm:$0xff]  ;;  %7115 = vst [vmem:[#allocation33_spill] sm:$0xff] %v5545_v10 }
 0x1f3   :  { %4160 = vmatprep.subr.bf16.mxu0 %v5521_v29  ;;  %v5536_v47 = vpack.c.bf16 %v177_v28, %v175_v3  ;;  %v179_v29 = vld [vmem:[#allocation5 + $0x340] sm:$0xff]  ;;  %v188_v3 = vld [vmem:[#allocation5 + $0x388] sm:$0xff]  ;;  %v190_v28 = vld [vmem:[#allocation5 + $0x398] sm:$0xff] }
 0x1f4   :  { %v5551_v33 = vpack.c.bf16 %v190_v28, %v188_v3  ;;  %v860_v3 = vadd.f32 %v5476_v2, %v5468_v54 }
 0x1f5   :  { %7112 = vst [vmem:[#allocation30_spill] sm:$0xff] %v5536_v47 }
 0x1f6   :  { %4162 = vmatpush1.bf16.msra.mxu0 %v5524_v52  ;;  %v181_v52 = vld [vmem:[#allocation5 + $0x350] sm:$0xff]  ;;  %7117 = vst [vmem:[#allocation35_spill] sm:$0xff] %v5551_v33  ;;  %4939 = vtanh.f32 %v860_v3  ;;  %v203_v3 = vld [vmem:[#allocation5 + $0x400] sm:$0xff] }
 0x1f7   :  { %4164 = vmatprep.subr.bf16.mxu0 %v5527_v57  ;;  %v5542_v9 = vpack.c.bf16 %v181_v52, %v179_v29  ;;  %v183_v57 = vld [vmem:[#allocation5 + $0x360] sm:$0xff]  ;;  %v192_v29 = vld [vmem:[#allocation5 + $0x3a8] sm:$0xff]  ;;  %v194_v52 = vld [vmem:[#allocation5 + $0x3b8] sm:$0xff] }
 0x1f8   :  { %v5557_v59 = vpack.c.bf16 %v194_v52, %v192_v29  ;;  %v197_v29 = vld [vmem:[#allocation5 + $0x3d0] sm:$0xff]  ;;  %v200_v52 = vld [vmem:[#allocation5 + $0x3e8] sm:$0xff] }
 0x1f9   :  { %7114 = vst [vmem:[#allocation32_spill] sm:$0xff] %v5542_v9 }
 0x1fa   :  { %4166 = vmatpush1.bf16.msra.mxu0 %v5530_v11  ;;  %v185_v11 = vld [vmem:[#allocation5 + $0x370] sm:$0xff]  ;;  %7119 = vst [vmem:[#allocation37_spill] sm:$0xff] %v5557_v59 }
 0x1fb   :  { %4168 = vmatprep.subr.bf16.mxu0 %v5533_v22  ;;  %v5548_v5 = vpack.c.bf16 %v185_v11, %v183_v57  ;;  %v187_v22 = vld [vmem:[#allocation5 + $0x380] sm:$0xff]  ;;  %v196_v57 = vld [vmem:[#allocation5 + $0x3c8] sm:$0xff]  ;;  %v198_v11 = vld [vmem:[#allocation5 + $0x3d8] sm:$0xff] }
 0x1fd   :  { %7116 = vst [vmem:[#allocation34_spill] sm:$0xff] %v5548_v5 }
 0x1fe   :  { %4170 = vmatpush1.bf16.msra.mxu0 %v5536_v47  ;;  %v189_v47 = vld [vmem:[#allocation5 + $0x390] sm:$0xff] }
 0x1ff   :  { %4172 = vmatprep.subr.bf16.mxu0 %v5539_v51  ;;  %v5554_v39 = vpack.c.bf16 %v189_v47, %v187_v22  ;;  %v191_v51 = vld [vmem:[#allocation5 + $0x3a0] sm:$0xff]  ;;  %v5567_v22 = vpack.c.bf16 %v198_v11, %v196_v57 }
 0x200   :  { %v195_v47 = vld [vmem:[#allocation5 + $0x3c0] sm:$0xff] }
 0x201   :  { %7118 = vst [vmem:[#allocation36_spill] sm:$0xff] %v5554_v39  ;;  %7121 = vst [vmem:[#allocation39_spill] sm:$0xff] %v5567_v22 }
 0x202   :  { %4174 = vmatpush1.bf16.msra.mxu0 %v5542_v9  ;;  %v193_v9 = vld [vmem:[#allocation5 + $0x3b0] sm:$0xff] }
 0x203   :  { %4176 = vmatprep.subr.bf16.mxu0 %v5545_v10  ;;  %v5562_v28 = vpack.c.bf16 %v193_v9, %v191_v51  ;;  %v5570_v10 = vpack.c.bf16 %v197_v29, %v195_v47  ;;  %v199_v51 = vld [vmem:[#allocation5 + $0x3e0] sm:$0xff]  ;;  %v204_v9 = vld [vmem:[#allocation5 + $0x408] sm:$0xff]  ;;  %v205_v47 = vld [vmem:[#allocation5 + $0x410] sm:$0xff] }
 0x204   :  { %v208_v29 = vld [vmem:[#allocation5 + $0x428] sm:$0xff] }
 0x205   :  { %7120 = vst [vmem:[#allocation38_spill] sm:$0xff] %v5562_v28  ;;  %7122 = vst [vmem:[#allocation40_spill] sm:$0xff] %v5570_v10 }
 0x206   :  { %4178 = vmatpush1.bf16.msra.mxu0 %v5548_v5  ;;  %v933_v5 = vadd.f32 %v5485_v41, %v5468_v54  ;;  %v201_v41 = vld [vmem:[#allocation5 + $0x3f0] sm:$0xff] }
 0x207   :  { %4180 = vmatprep.subr.bf16.mxu0 %v5551_v33  ;;  %v202_v33 = vld [vmem:[#allocation5 + $0x3f8] sm:$0xff]  ;;  %v5576_v57 = vpack.c.bf16 %v201_v41, %v199_v51  ;;  %v4940_v51 = vpop.eup %4939  ;;  %v212_v41 = vld [vmem:[#allocation5 + $0x448] sm:$0xff] }
 0x208   :  { %4941 = vtanh.f32 %v933_v5  ;;  %v5573_v2 = vpack.c.bf16 %v202_v33, %v200_v52  ;;  %v210_v5 = vld [vmem:[#allocation5 + $0x438] sm:$0xff]  ;;  %v5582_v33 = vpack.c.bf16 %v205_v47, %v203_v3  ;;  %v211_v3 = vld [vmem:[#allocation5 + $0x440] sm:$0xff]  ;;  %v213_v47 = vld [vmem:[#allocation5 + $0x450] sm:$0xff] }
 0x209   :  { %7124 = vst [vmem:[#allocation42_spill] sm:$0xff] %v5576_v57  ;;  %v5585_v52 = vpack.c.bf16 %v210_v5, %v208_v29  ;;  %v216_v29 = vld [vmem:[#allocation5 + $0x468] sm:$0xff]  ;;  %v218_v5 = vld [vmem:[#allocation5 + $0x478] sm:$0xff] }
 0x20a   :  { %4182 = vmatpush1.bf16.msra.mxu0 %v5554_v39  ;;  %7123 = vst [vmem:[#allocation41_spill] sm:$0xff] %v5573_v2  ;;  %7126 = vst [vmem:[#allocation44_spill] sm:$0xff] %v5582_v33 }
 0x20b   :  { %4184 = vmatprep.subr.bf16.mxu0 %v5557_v59  ;;  %v206_v59 = vld [vmem:[#allocation5 + $0x418] sm:$0xff]  ;;  %7127 = vst [vmem:[#allocation45_spill] sm:$0xff] %v5585_v52 }
 0x20c   :  { %v5579_v11 = vpack.c.bf16 %v206_v59, %v204_v9 }
 0x20e   :  { %4186 = vmatpush1.bf16.msra.mxu0 %v5562_v28  ;;  %7125 = vst [vmem:[#allocation43_spill] sm:$0xff] %v5579_v11  ;;  %v214_v28 = vld [vmem:[#allocation5 + $0x458] sm:$0xff] }
 0x20f   :  { %4188 = vmatprep.subr.bf16.mxu0 %v5567_v22  ;;  %v207_v22 = vld [vmem:[#allocation5 + $0x420] sm:$0xff]  ;;  %v5591_v9 = vpack.c.bf16 %v214_v28, %v212_v41 }
 0x211   :  { %7129 = vst [vmem:[#allocation47_spill] sm:$0xff] %v5591_v9 }
 0x212   :  { %4190 = vmatpush1.bf16.msra.mxu0 %v5570_v10  ;;  %v209_v10 = vld [vmem:[#allocation5 + $0x430] sm:$0xff] }
 0x213   :  { %4192 = vmatprep.subr.bf16.mxu0 %v5573_v2  ;;  %v4942_v2 = vpop.eup %4941  ;;  %v5588_v59 = vpack.c.bf16 %v209_v10, %v207_v22  ;;  %v220_v10 = vld [vmem:[#allocation5 + $0x488] sm:$0xff]  ;;  %v222_v22 = vld [vmem:[#allocation5 + $0x498] sm:$0xff] }
 0x214   :  { %v5603_v41 = vpack.c.bf16 %v222_v22, %v220_v10 }
 0x215   :  { %7128 = vst [vmem:[#allocation46_spill] sm:$0xff] %v5588_v59 }
 0x216   :  { %4194 = vmatpush1.bf16.msra.mxu0 %v5576_v57  ;;  %7133 = vst [vmem:[#allocation51_spill] sm:$0xff] %v5603_v41 }
 0x217   :  { %4196 = vmatprep.subr.bf16.mxu0 %v5579_v11  ;;  %v5594_v11 = vpack.c.bf16 %v213_v47, %v211_v3  ;;  %v224_v3 = vld [vmem:[#allocation5 + $0x4a8] sm:$0xff]  ;;  %v226_v47 = vld [vmem:[#allocation5 + $0x4b8] sm:$0xff] }
 0x219   :  { %1150 = vmatmul.mubr.f32.vlgmr.msra.gmra.mrb[6].mxu0 %v4940_v51  ;;  %7130 = vst [vmem:[#allocation48_spill] sm:$0xff] %v5594_v11  ;;  %v5597_v51 = vpack.c.bf16 %v218_v5, %v216_v29  ;;  %v5609_v5 = vpack.c.bf16 %v226_v47, %v224_v3 }
 0x21a   :  { %4198 = vmatpush1.bf16.msra.mxu0 %v5582_v33  ;;  %1220 = vmatprep.mubr.f32.mxu0 %v4942_v2  ;;  %v215_v33 = vld [vmem:[#allocation5 + $0x460] sm:$0xff]  ;;  %v217_v2 = vld [vmem:[#allocation5 + $0x470] sm:$0xff] }
 0x21b   :  { %4200 = vmatprep.subr.bf16.mxu0 %v5585_v52  ;;  %7131 = vst [vmem:[#allocation49_spill] sm:$0xff] %v5597_v51  ;;  %v5600_v28 = vpack.c.bf16 %v217_v2, %v215_v33  ;;  %v219_v52 = vld [vmem:[#allocation5 + $0x480] sm:$0xff]  ;;  %7135 = vst [vmem:[#allocation53_spill] sm:$0xff] %v5609_v5  ;;  %v228_v33 = vld [vmem:[#allocation5 + $0x4c8] sm:$0xff] }
 0x21c   :  { %v230_v2 = vld [vmem:[#allocation5 + $0x4d8] sm:$0xff] }
 0x21d   :  { %7132 = vst [vmem:[#allocation50_spill] sm:$0xff] %v5600_v28  ;;  %v5615_v22 = vpack.c.bf16 %v230_v2, %v228_v33 }
 0x21e   :  { %4202 = vmatpush1.bf16.msra.mxu0 %v5588_v59  ;;  %v221_v59 = vld [vmem:[#allocation5 + $0x490] sm:$0xff] }
 0x21f   :  { %4204 = vmatprep.subr.bf16.mxu0 %v5591_v9  ;;  %v5606_v29 = vpack.c.bf16 %v221_v59, %v219_v52  ;;  %v223_v9 = vld [vmem:[#allocation5 + $0x4a0] sm:$0xff]  ;;  %7137 = vst [vmem:[#allocation55_spill] sm:$0xff] %v5615_v22  ;;  %v232_v52 = vld [vmem:[#allocation5 + $0x4e8] sm:$0xff]  ;;  %v234_v59 = vld [vmem:[#allocation5 + $0x4f8] sm:$0xff] }
 0x220   :  { %v5621_v47 = vpack.c.bf16 %v234_v59, %v232_v52 }
 0x221   :  { %7134 = vst [vmem:[#allocation52_spill] sm:$0xff] %v5606_v29 }
 0x222   :  { %4206 = vmatpush1.bf16.msra.mxu0 %v5594_v11  ;;  %v225_v11 = vld [vmem:[#allocation5 + $0x4b0] sm:$0xff]  ;;  %7139 = vst [vmem:[#allocation57_spill] sm:$0xff] %v5621_v47 }
 0x223   :  { %4208 = vmatprep.subr.bf16.mxu0 %v5597_v51  ;;  %v5612_v10 = vpack.c.bf16 %v225_v11, %v223_v9  ;;  %v227_v51 = vld [vmem:[#allocation5 + $0x4c0] sm:$0xff]  ;;  %v236_v11 = vld [vmem:[#allocation5 + $0x508] sm:$0xff]  ;;  %v238_v9 = vld [vmem:[#allocation5 + $0x518] sm:$0xff] }
 0x224   :  { %v5627_v2 = vpack.c.bf16 %v238_v9, %v236_v11 }
 0x225   :  { %7136 = vst [vmem:[#allocation54_spill] sm:$0xff] %v5612_v10 }
 0x226   :  { %4210 = vmatpush1.bf16.msra.mxu0 %v5600_v28  ;;  %v229_v28 = vld [vmem:[#allocation5 + $0x4d0] sm:$0xff]  ;;  %7141 = vst [vmem:[#allocation59_spill] sm:$0xff] %v5627_v2 }
 0x227   :  { %4212 = vmatprep.subr.bf16.mxu0 %v5603_v41  ;;  %v5618_v3 = vpack.c.bf16 %v229_v28, %v227_v51  ;;  %v231_v41 = vld [vmem:[#allocation5 + $0x4e0] sm:$0xff]  ;;  %v240_v51 = vld [vmem:[#allocation5 + $0x528] sm:$0xff]  ;;  %v242_v28 = vld [vmem:[#allocation5 + $0x538] sm:$0xff] }
 0x228   :  { %v5633_v59 = vpack.c.bf16 %v242_v28, %v240_v51 }
 0x229   :  { %7138 = vst [vmem:[#allocation56_spill] sm:$0xff] %v5618_v3 }
 0x22a   :  { %4214 = vmatpush1.bf16.msra.mxu0 %v5606_v29  ;;  %v233_v29 = vld [vmem:[#allocation5 + $0x4f0] sm:$0xff]  ;;  %7143 = vst [vmem:[#allocation61_spill] sm:$0xff] %v5633_v59 }
 0x22b   :  { %4216 = vmatprep.subr.bf16.mxu0 %v5609_v5  ;;  %v5624_v33 = vpack.c.bf16 %v233_v29, %v231_v41  ;;  %v235_v5 = vld [vmem:[#allocation5 + $0x500] sm:$0xff]  ;;  %v244_v41 = vld [vmem:[#allocation5 + $0x548] sm:$0xff]  ;;  %v246_v29 = vld [vmem:[#allocation5 + $0x558] sm:$0xff] }
 0x22c   :  { %v5639_v9 = vpack.c.bf16 %v246_v29, %v244_v41 }
 0x22d   :  { %7140 = vst [vmem:[#allocation58_spill] sm:$0xff] %v5624_v33 }
 0x22e   :  { %4218 = vmatpush1.bf16.msra.mxu0 %v5612_v10  ;;  %v237_v10 = vld [vmem:[#allocation5 + $0x510] sm:$0xff]  ;;  %7145 = vst [vmem:[#allocation63_spill] sm:$0xff] %v5639_v9 }
 0x22f   :  { %4220 = vmatprep.subr.bf16.mxu0 %v5615_v22  ;;  %v5630_v52 = vpack.c.bf16 %v237_v10, %v235_v5  ;;  %v239_v22 = vld [vmem:[#allocation5 + $0x520] sm:$0xff]  ;;  %v248_v5 = vld [vmem:[#allocation5 + $0x568] sm:$0xff]  ;;  %v250_v10 = vld [vmem:[#allocation5 + $0x578] sm:$0xff] }
 0x230   :  { %v5645_v28 = vpack.c.bf16 %v250_v10, %v248_v5 }
 0x231   :  { %7142 = vst [vmem:[#allocation60_spill] sm:$0xff] %v5630_v52 }
 0x232   :  { %4222 = vmatpush1.bf16.msra.mxu0 %v5618_v3  ;;  %v241_v3 = vld [vmem:[#allocation5 + $0x530] sm:$0xff]  ;;  %7147 = vst [vmem:[#allocation65_spill] sm:$0xff] %v5645_v28 }
 0x233   :  { %4224 = vmatprep.subr.bf16.mxu0 %v5621_v47  ;;  %v5636_v11 = vpack.c.bf16 %v241_v3, %v239_v22  ;;  %v243_v47 = vld [vmem:[#allocation5 + $0x540] sm:$0xff]  ;;  %v252_v22 = vld [vmem:[#allocation5 + $0x588] sm:$0xff]  ;;  %v254_v3 = vld [vmem:[#allocation5 + $0x598] sm:$0xff] }
 0x234   :  { %v5651_v29 = vpack.c.bf16 %v254_v3, %v252_v22  ;;  %v931_v22 = vadd.f32 %v5483_v34, %v5468_v54 }
 0x235   :  { %7144 = vst [vmem:[#allocation62_spill] sm:$0xff] %v5636_v11 }
 0x236   :  { %4226 = vmatpush1.bf16.msra.mxu0 %v5624_v33  ;;  %v245_v33 = vld [vmem:[#allocation5 + $0x550] sm:$0xff]  ;;  %7149 = vst [vmem:[#allocation67_spill] sm:$0xff] %v5651_v29  ;;  %4943 = vtanh.f32 %v931_v22  ;;  %v267_v22 = vld [vmem:[#allocation5 + $0x600] sm:$0xff] }
 0x237   :  { %4228 = vmatprep.subr.bf16.mxu0 %v5627_v2  ;;  %v5642_v51 = vpack.c.bf16 %v245_v33, %v243_v47  ;;  %v247_v2 = vld [vmem:[#allocation5 + $0x560] sm:$0xff]  ;;  %v256_v47 = vld [vmem:[#allocation5 + $0x5a8] sm:$0xff]  ;;  %v258_v33 = vld [vmem:[#allocation5 + $0x5b8] sm:$0xff] }
 0x238   :  { %v5657_v10 = vpack.c.bf16 %v258_v33, %v256_v47  ;;  %v261_v47 = vld [vmem:[#allocation5 + $0x5d0] sm:$0xff]  ;;  %v264_v33 = vld [vmem:[#allocation5 + $0x5e8] sm:$0xff] }
 0x239   :  { %7146 = vst [vmem:[#allocation64_spill] sm:$0xff] %v5642_v51 }
 0x23a   :  { %4230 = vmatpush1.bf16.msra.mxu0 %v5630_v52  ;;  %v249_v52 = vld [vmem:[#allocation5 + $0x570] sm:$0xff]  ;;  %7151 = vst [vmem:[#allocation69_spill] sm:$0xff] %v5657_v10 }
 0x23b   :  { %4232 = vmatprep.subr.bf16.mxu0 %v5633_v59  ;;  %v5648_v41 = vpack.c.bf16 %v249_v52, %v247_v2  ;;  %v251_v59 = vld [vmem:[#allocation5 + $0x580] sm:$0xff]  ;;  %v260_v2 = vld [vmem:[#allocation5 + $0x5c8] sm:$0xff]  ;;  %v262_v52 = vld [vmem:[#allocation5 + $0x5d8] sm:$0xff] }
 0x23d   :  { %7148 = vst [vmem:[#allocation66_spill] sm:$0xff] %v5648_v41 }
 0x23e   :  { %4234 = vmatpush1.bf16.msra.mxu0 %v5636_v11  ;;  %v253_v11 = vld [vmem:[#allocation5 + $0x590] sm:$0xff] }
 0x23f   :  { %4236 = vmatprep.subr.bf16.mxu0 %v5639_v9  ;;  %v5654_v5 = vpack.c.bf16 %v253_v11, %v251_v59  ;;  %v255_v9 = vld [vmem:[#allocation5 + $0x5a0] sm:$0xff]  ;;  %v5667_v59 = vpack.c.bf16 %v262_v52, %v260_v2 }
 0x240   :  { %v259_v11 = vld [vmem:[#allocation5 + $0x5c0] sm:$0xff] }
 0x241   :  { %7150 = vst [vmem:[#allocation68_spill] sm:$0xff] %v5654_v5  ;;  %7153 = vst [vmem:[#allocation71_spill] sm:$0xff] %v5667_v59 }
 0x242   :  { %4238 = vmatpush1.bf16.msra.mxu0 %v5642_v51  ;;  %v257_v51 = vld [vmem:[#allocation5 + $0x5b0] sm:$0xff] }
 0x243   :  { %4240 = vmatprep.subr.bf16.mxu0 %v5645_v28  ;;  %v5662_v3 = vpack.c.bf16 %v257_v51, %v255_v9  ;;  %v5670_v28 = vpack.c.bf16 %v261_v47, %v259_v11  ;;  %v263_v9 = vld [vmem:[#allocation5 + $0x5e0] sm:$0xff]  ;;  %v268_v51 = vld [vmem:[#allocation5 + $0x608] sm:$0xff]  ;;  %v269_v11 = vld [vmem:[#allocation5 + $0x610] sm:$0xff] }
 0x244   :  { %v272_v47 = vld [vmem:[#allocation5 + $0x628] sm:$0xff] }
 0x245   :  { %7152 = vst [vmem:[#allocation70_spill] sm:$0xff] %v5662_v3  ;;  %7154 = vst [vmem:[#allocation72_spill] sm:$0xff] %v5670_v28 }
 0x246   :  { %4242 = vmatpush1.bf16.msra.mxu0 %v5648_v41  ;;  %v1004_v41 = vadd.f32 %v5472_v60, %v5468_v54  ;;  %v265_v60 = vld [vmem:[#allocation5 + $0x5f0] sm:$0xff] }
 0x247   :  { %4244 = vmatprep.subr.bf16.mxu0 %v5651_v29  ;;  %v266_v29 = vld [vmem:[#allocation5 + $0x5f8] sm:$0xff]  ;;  %v5676_v2 = vpack.c.bf16 %v265_v60, %v263_v9  ;;  %v4944_v9 = vpop.eup %4943  ;;  %v276_v60 = vld [vmem:[#allocation5 + $0x648] sm:$0xff] }
 0x248   :  { %4945 = vtanh.f32 %v1004_v41  ;;  %v5673_v34 = vpack.c.bf16 %v266_v29, %v264_v33  ;;  %v274_v41 = vld [vmem:[#allocation5 + $0x638] sm:$0xff]  ;;  %v5682_v29 = vpack.c.bf16 %v269_v11, %v267_v22  ;;  %v275_v22 = vld [vmem:[#allocation5 + $0x640] sm:$0xff]  ;;  %v277_v11 = vld [vmem:[#allocation5 + $0x650] sm:$0xff] }
 0x249   :  { %7156 = vst [vmem:[#allocation74_spill] sm:$0xff] %v5676_v2  ;;  %v5685_v33 = vpack.c.bf16 %v274_v41, %v272_v47  ;;  %v280_v47 = vld [vmem:[#allocation5 + $0x668] sm:$0xff]  ;;  %v282_v41 = vld [vmem:[#allocation5 + $0x678] sm:$0xff] }
 0x24a   :  { %4246 = vmatpush1.bf16.msra.mxu0 %v5654_v5  ;;  %7155 = vst [vmem:[#allocation73_spill] sm:$0xff] %v5673_v34  ;;  %7158 = vst [vmem:[#allocation76_spill] sm:$0xff] %v5682_v29 }
 0x24b   :  { %4248 = vmatprep.subr.bf16.mxu0 %v5657_v10  ;;  %v270_v10 = vld [vmem:[#allocation5 + $0x618] sm:$0xff]  ;;  %7159 = vst [vmem:[#allocation77_spill] sm:$0xff] %v5685_v33 }
 0x24c   :  { %v5679_v52 = vpack.c.bf16 %v270_v10, %v268_v51 }
 0x24e   :  { %4250 = vmatpush1.bf16.msra.mxu0 %v5662_v3  ;;  %7157 = vst [vmem:[#allocation75_spill] sm:$0xff] %v5679_v52  ;;  %v278_v3 = vld [vmem:[#allocation5 + $0x658] sm:$0xff] }
 0x24f   :  { %4252 = vmatprep.subr.bf16.mxu0 %v5667_v59  ;;  %v271_v59 = vld [vmem:[#allocation5 + $0x620] sm:$0xff]  ;;  %v5691_v51 = vpack.c.bf16 %v278_v3, %v276_v60 }
 0x251   :  { %7161 = vst [vmem:[#allocation79_spill] sm:$0xff] %v5691_v51 }
 0x252   :  { %4254 = vmatpush1.bf16.msra.mxu0 %v5670_v28  ;;  %v273_v28 = vld [vmem:[#allocation5 + $0x630] sm:$0xff] }
 0x253   :  { %4256 = vmatprep.subr.bf16.mxu0 %v5673_v34  ;;  %v4946_v34 = vpop.eup %4945  ;;  %v5688_v10 = vpack.c.bf16 %v273_v28, %v271_v59  ;;  %v284_v28 = vld [vmem:[#allocation5 + $0x688] sm:$0xff]  ;;  %v286_v59 = vld [vmem:[#allocation5 + $0x698] sm:$0xff] }
 0x254   :  { %v5703_v60 = vpack.c.bf16 %v286_v59, %v284_v28 }
 0x255   :  { %7160 = vst [vmem:[#allocation78_spill] sm:$0xff] %v5688_v10 }
 0x256   :  { %4258 = vmatpush1.bf16.msra.mxu0 %v5676_v2  ;;  %7165 = vst [vmem:[#allocation83_spill] sm:$0xff] %v5703_v60 }
 0x257   :  { %4260 = vmatprep.subr.bf16.mxu0 %v5679_v52  ;;  %v5694_v52 = vpack.c.bf16 %v277_v11, %v275_v22  ;;  %v288_v22 = vld [vmem:[#allocation5 + $0x6a8] sm:$0xff]  ;;  %v290_v11 = vld [vmem:[#allocation5 + $0x6b8] sm:$0xff] }
 0x259   :  { %1221 = vmatmul.mubr.f32.vlgmr.msra.gmra.mrb[6].mxu0 %v4944_v9  ;;  %7162 = vst [vmem:[#allocation80_spill] sm:$0xff] %v5694_v52  ;;  %v5697_v9 = vpack.c.bf16 %v282_v41, %v280_v47  ;;  %v5709_v41 = vpack.c.bf16 %v290_v11, %v288_v22 }
 0x25a   :  { %4262 = vmatpush1.bf16.msra.mxu0 %v5682_v29  ;;  %1291 = vmatprep.mubr.f32.mxu0 %v4946_v34  ;;  %v279_v29 = vld [vmem:[#allocation5 + $0x660] sm:$0xff]  ;;  %v281_v34 = vld [vmem:[#allocation5 + $0x670] sm:$0xff] }
 0x25b   :  { %4264 = vmatprep.subr.bf16.mxu0 %v5685_v33  ;;  %7163 = vst [vmem:[#allocation81_spill] sm:$0xff] %v5697_v9  ;;  %v5700_v3 = vpack.c.bf16 %v281_v34, %v279_v29  ;;  %v283_v33 = vld [vmem:[#allocation5 + $0x680] sm:$0xff]  ;;  %7167 = vst [vmem:[#allocation85_spill] sm:$0xff] %v5709_v41  ;;  %v292_v29 = vld [vmem:[#allocation5 + $0x6c8] sm:$0xff] }
 0x25c   :  { %v294_v34 = vld [vmem:[#allocation5 + $0x6d8] sm:$0xff] }
 0x25d   :  { %7164 = vst [vmem:[#allocation82_spill] sm:$0xff] %v5700_v3  ;;  %v5715_v59 = vpack.c.bf16 %v294_v34, %v292_v29 }
 0x25e   :  { %4266 = vmatpush1.bf16.msra.mxu0 %v5688_v10  ;;  %v285_v10 = vld [vmem:[#allocation5 + $0x690] sm:$0xff] }
 0x25f   :  { %4268 = vmatprep.subr.bf16.mxu0 %v5691_v51  ;;  %v5706_v47 = vpack.c.bf16 %v285_v10, %v283_v33  ;;  %v287_v51 = vld [vmem:[#allocation5 + $0x6a0] sm:$0xff]  ;;  %7169 = vst [vmem:[#allocation87_spill] sm:$0xff] %v5715_v59  ;;  %v296_v33 = vld [vmem:[#allocation5 + $0x6e8] sm:$0xff]  ;;  %v298_v10 = vld [vmem:[#allocation5 + $0x6f8] sm:$0xff] }
 0x260   :  { %v5721_v11 = vpack.c.bf16 %v298_v10, %v296_v33 }
 0x261   :  { %7166 = vst [vmem:[#allocation84_spill] sm:$0xff] %v5706_v47 }
 0x262   :  { %4270 = vmatpush1.bf16.msra.mxu0 %v5694_v52  ;;  %v289_v52 = vld [vmem:[#allocation5 + $0x6b0] sm:$0xff]  ;;  %7171 = vst [vmem:[#allocation89_spill] sm:$0xff] %v5721_v11 }
 0x263   :  { %4272 = vmatprep.subr.bf16.mxu0 %v5697_v9  ;;  %v5712_v28 = vpack.c.bf16 %v289_v52, %v287_v51  ;;  %v291_v9 = vld [vmem:[#allocation5 + $0x6c0] sm:$0xff]  ;;  %v300_v52 = vld [vmem:[#allocation5 + $0x708] sm:$0xff]  ;;  %v302_v51 = vld [vmem:[#allocation5 + $0x718] sm:$0xff] }
 0x264   :  { %v5727_v34 = vpack.c.bf16 %v302_v51, %v300_v52 }
 0x265   :  { %7168 = vst [vmem:[#allocation86_spill] sm:$0xff] %v5712_v28 }
 0x266   :  { %4274 = vmatpush1.bf16.msra.mxu0 %v5700_v3  ;;  %v293_v3 = vld [vmem:[#allocation5 + $0x6d0] sm:$0xff]  ;;  %7173 = vst [vmem:[#allocation91_spill] sm:$0xff] %v5727_v34 }
 0x267   :  { %4276 = vmatprep.subr.bf16.mxu0 %v5703_v60  ;;  %v5718_v22 = vpack.c.bf16 %v293_v3, %v291_v9  ;;  %v295_v60 = vld [vmem:[#allocation5 + $0x6e0] sm:$0xff]  ;;  %v304_v9 = vld [vmem:[#allocation5 + $0x728] sm:$0xff]  ;;  %v306_v3 = vld [vmem:[#allocation5 + $0x738] sm:$0xff] }
 0x268   :  { %v5733_v10 = vpack.c.bf16 %v306_v3, %v304_v9 }
 0x269   :  { %7170 = vst [vmem:[#allocation88_spill] sm:$0xff] %v5718_v22 }
 0x26a   :  { %4278 = vmatpush1.bf16.msra.mxu0 %v5706_v47  ;;  %v297_v47 = vld [vmem:[#allocation5 + $0x6f0] sm:$0xff]  ;;  %7175 = vst [vmem:[#allocation93_spill] sm:$0xff] %v5733_v10 }
 0x26b   :  { %4280 = vmatprep.subr.bf16.mxu0 %v5709_v41  ;;  %v5724_v29 = vpack.c.bf16 %v297_v47, %v295_v60  ;;  %v299_v41 = vld [vmem:[#allocation5 + $0x700] sm:$0xff]  ;;  %v308_v60 = vld [vmem:[#allocation5 + $0x748] sm:$0xff]  ;;  %v310_v47 = vld [vmem:[#allocation5 + $0x758] sm:$0xff] }
 0x26c   :  { %v5739_v51 = vpack.c.bf16 %v310_v47, %v308_v60 }
 0x26d   :  { %7172 = vst [vmem:[#allocation90_spill] sm:$0xff] %v5724_v29 }
 0x26e   :  { %4282 = vmatpush1.bf16.msra.mxu0 %v5712_v28  ;;  %v301_v28 = vld [vmem:[#allocation5 + $0x710] sm:$0xff]  ;;  %7177 = vst [vmem:[#allocation95_spill] sm:$0xff] %v5739_v51 }
 0x26f   :  { %4284 = vmatprep.subr.bf16.mxu0 %v5715_v59  ;;  %v5730_v33 = vpack.c.bf16 %v301_v28, %v299_v41  ;;  %v303_v59 = vld [vmem:[#allocation5 + $0x720] sm:$0xff]  ;;  %v312_v41 = vld [vmem:[#allocation5 + $0x768] sm:$0xff]  ;;  %v314_v28 = vld [vmem:[#allocation5 + $0x778] sm:$0xff] }
 0x270   :  { %v5745_v3 = vpack.c.bf16 %v314_v28, %v312_v41 }
 0x271   :  { %7174 = vst [vmem:[#allocation92_spill] sm:$0xff] %v5730_v33 }
 0x272   :  { %4286 = vmatpush1.bf16.msra.mxu0 %v5718_v22  ;;  %v305_v22 = vld [vmem:[#allocation5 + $0x730] sm:$0xff]  ;;  %7179 = vst [vmem:[#allocation97_spill] sm:$0xff] %v5745_v3 }
 0x273   :  { %4288 = vmatprep.subr.bf16.mxu0 %v5721_v11  ;;  %v5736_v52 = vpack.c.bf16 %v305_v22, %v303_v59  ;;  %v307_v11 = vld [vmem:[#allocation5 + $0x740] sm:$0xff]  ;;  %v316_v59 = vld [vmem:[#allocation5 + $0x788] sm:$0xff]  ;;  %v318_v22 = vld [vmem:[#allocation5 + $0x798] sm:$0xff] }
 0x274   :  { %v5751_v47 = vpack.c.bf16 %v318_v22, %v316_v59  ;;  %v1002_v59 = vadd.f32 %v5470_v58, %v5468_v54 }
 0x275   :  { %7176 = vst [vmem:[#allocation94_spill] sm:$0xff] %v5736_v52 }
 0x276   :  { %4290 = vmatpush1.bf16.msra.mxu0 %v5724_v29  ;;  %v309_v29 = vld [vmem:[#allocation5 + $0x750] sm:$0xff]  ;;  %7181 = vst [vmem:[#allocation99_spill] sm:$0xff] %v5751_v47  ;;  %4947 = vtanh.f32 %v1002_v59 }
 0x277   :  { %4292 = vmatprep.subr.bf16.mxu0 %v5727_v34  ;;  %v5742_v9 = vpack.c.bf16 %v309_v29, %v307_v11  ;;  %v311_v34 = vld [vmem:[#allocation5 + $0x760] sm:$0xff]  ;;  %v320_v11 = vld [vmem:[#allocation5 + $0x7a8] sm:$0xff]  ;;  %v322_v29 = vld [vmem:[#allocation5 + $0x7b8] sm:$0xff] }
 0x278   :  { %v5757_v28 = vpack.c.bf16 %v322_v29, %v320_v11  ;;  %v330_v11 = vld [vmem:[#allocation5 + $0x7f8] sm:$0xff] }
 0x279   :  { %7178 = vst [vmem:[#allocation96_spill] sm:$0xff] %v5742_v9 }
 0x27a   :  { %4294 = vmatpush1.bf16.msra.mxu0 %v5730_v33  ;;  %v313_v33 = vld [vmem:[#allocation5 + $0x770] sm:$0xff]  ;;  %7183 = vst [vmem:[#allocation101_spill] sm:$0xff] %v5757_v28 }
 0x27b   :  { %4296 = vmatprep.subr.bf16.mxu0 %v5733_v10  ;;  %v5748_v60 = vpack.c.bf16 %v313_v33, %v311_v34  ;;  %v315_v10 = vld [vmem:[#allocation5 + $0x780] sm:$0xff]  ;;  %v324_v34 = vld [vmem:[#allocation5 + $0x7c8] sm:$0xff]  ;;  %v326_v33 = vld [vmem:[#allocation5 + $0x7d8] sm:$0xff] }
 0x27d   :  { %7180 = vst [vmem:[#allocation98_spill] sm:$0xff] %v5748_v60 }
 0x27e   :  { %4298 = vmatpush1.bf16.msra.mxu0 %v5736_v52  ;;  %v317_v52 = vld [vmem:[#allocation5 + $0x790] sm:$0xff] }
 0x27f   :  { %4300 = vmatprep.subr.bf16.mxu0 %v5739_v51  ;;  %v5754_v41 = vpack.c.bf16 %v317_v52, %v315_v10  ;;  %v319_v51 = vld [vmem:[#allocation5 + $0x7a0] sm:$0xff]  ;;  %v325_v52 = vld [vmem:[#allocation5 + $0x7d0] sm:$0xff] }
 0x280   :  { %v323_v10 = vld [vmem:[#allocation5 + $0x7c0] sm:$0xff] }
 0x281   :  { %7182 = vst [vmem:[#allocation100_spill] sm:$0xff] %v5754_v41  ;;  %v5768_v29 = vpack.c.bf16 %v325_v52, %v323_v10 }
 0x282   :  { %4302 = vmatpush1.bf16.msra.mxu0 %v5742_v9  ;;  %v321_v9 = vld [vmem:[#allocation5 + $0x7b0] sm:$0xff] }
 0x283   :  { %4304 = vmatprep.subr.bf16.mxu0 %v5745_v3  ;;  %v5762_v22 = vpack.c.bf16 %v321_v9, %v319_v51  ;;  %7186 = vst [vmem:[#allocation104_spill] sm:$0xff] %v5768_v29  ;;  %v329_v51 = vld [vmem:[#allocation5 + $0x7f0] sm:$0xff] }
 0x285   :  { %7184 = vst [vmem:[#allocation102_spill] sm:$0xff] %v5762_v22 }
 0x286   :  { %4306 = vmatpush1.bf16.msra.mxu0 %v5748_v60  ;;  %v5765_v60 = vpack.c.bf16 %v326_v33, %v324_v34  ;;  %v4948_v34 = vpop.eup %4947 }
 0x287   :  { %4308 = vmatprep.subr.bf16.mxu0 %v5751_v47  ;;  %v328_v47 = vld [vmem:[#allocation5 + $0x7e8] sm:$0xff] }
 0x288   :  { %7185 = vst [vmem:[#allocation103_spill] sm:$0xff] %v5765_v60  ;;  %v5771_v58 = vpack.c.bf16 %v330_v11, %v328_v47 }
 0x28a   :  { %4310 = vmatpush1.bf16.msra.mxu0 %v5754_v41  ;;  %7187 = vst [vmem:[#allocation105_spill] sm:$0xff] %v5771_v58  ;;  %v327_v41 = vld [vmem:[#allocation5 + $0x7e0] sm:$0xff] }
 0x28b   :  { %4312 = vmatprep.subr.bf16.mxu0 %v5757_v28  ;;  %v5774_v9 = vpack.c.bf16 %v329_v51, %v327_v41 }
 0x28d   :  { %7188 = vst [vmem:[#allocation106_spill] sm:$0xff] %v5774_v9 }
 0x28e   :  { %4314 = vmatpush1.bf16.msra.mxu0 %v5762_v22 }
 0x28f   :  { %4316 = vmatprep.subr.bf16.mxu0 %v5765_v60 }
 0x292   :  { %4318 = vmatpush1.bf16.msra.mxu0 %v5768_v29 }
 0x293   :  { %4320 = vmatprep.subr.bf16.mxu0 %v5771_v58 }
 0x296   :  { %4322 = vmatpush1.bf16.msra.mxu0 %v5774_v9 }
 0x299   :  { %1292 = vmatmul.mubr.f32.vlgmr.msra.gmra.mrb[6].mxu0 %v4948_v34  ;;  %v5832_v34 = vld [vmem:[%s6891_s0 + $0xa] sm:$0xff] }
 0x29a   :  { %1946 = vst [vmem:[#allocation2] ss:$8 sm:$0xf] %v5832_v34  ;;  %1947 = vst [vmem:[#allocation2] ss:$8 sm:$0xf0] %v5832_v34 }
 0x36c   :  { %v5778_v33 = vpop.f32.mrb[6].mxu0 }
 0x36d   :  { %1298 = vst [vmem:[#allocation3] sm:$0x3f] %v5778_v33  ;;  %1345 = vrot.lane.b32.xlu0 %v5778_v33, %s5075_s24  ;;  %v5783_v47 = vpop.f32.mrb[7].mxu0  ;;  %v1318_v41 = vrot.slane %v5778_v33, 4  ;;  %v1303_v59 = vrot.slane %v5778_v33, 2  ;;  %v1333_v10 = vrot.slane %v5778_v33, 6 }
 0x36e   :  { %1300 = vst.msk [vmem:[#allocation3 + $0x8] sm:$0x3f] %vm1299_vm14, %v5783_v47  ;;  %1347 = vrot.lane.b32.xlu1 %v5783_v47, %s5075_s24  ;;  %v1304_v52 = vrot.slane %v5783_v47, 2  ;;  %v1319_v11 = vrot.slane %v5783_v47, 4  ;;  %v1334_v51 = vrot.slane %v5783_v47, 6 }
 0x371   :  { %1388 = vrot.lane.b32.xlu0 %v5778_v33, %s7002_s19 }
 0x372   :  { %1390 = vrot.lane.b32.xlu1 %v5783_v47, %s7002_s19  ;;  %s7016_s19 = smov 110  }
 0x375   :  { %1432 = vrot.lane.b32.xlu0 %v5778_v33, %s7000_s2 }
 0x376   :  { %1434 = vrot.lane.b32.xlu1 %v5783_v47, %s7000_s2  ;;  %s7014_s2 = smov 112  }
 0x379   :  { %1475 = vrot.lane.b32.xlu0 %v5778_v33, %s6996_s18 }
 0x37a   :  { %1477 = vrot.lane.b32.xlu1 %v5783_v47, %s6996_s18  ;;  %s7010_s18 = smov 114  }
 0x37d   :  { %1519 = vrot.lane.b32.xlu0 %v5778_v33, %s6998_s22 }
 0x37e   :  { %1521 = vrot.lane.b32.xlu1 %v5783_v47, %s6998_s22  ;;  %s7028_s22 = smov 113  }
 0x381   :  { %1320 = vrot.lane.b32.xlu0 %v1318_v41, %s5072_s20 }
 0x382   :  { %1305 = vrot.lane.b32.xlu1 %v1303_v59, %s5073_s21 }
 0x385   :  { %1335 = vrot.lane.b32.xlu0 %v1333_v10, %s5074_s23 }
 0x386   :  { %1307 = vrot.lane.b32.xlu1 %v1304_v52, %s5073_s21 }
 0x389   :  { %1354 = vrot.lane.b32.xlu0 %v1303_v59, %s7010_s18 }
 0x38a   :  { %1322 = vrot.lane.b32.xlu1 %v1319_v11, %s5072_s20 }
 0x38d   :  { %1366 = vrot.lane.b32.xlu0 %v1318_v41, %s7028_s22 }
 0x38e   :  { %1337 = vrot.lane.b32.xlu1 %v1334_v51, %s5074_s23 }
 0x391   :  { %1378 = vrot.lane.b32.xlu0 %v1333_v10, %s7014_s2 }
 0x392   :  { %1356 = vrot.lane.b32.xlu1 %v1304_v52, %s7010_s18  ;;  %s7032_s18 = smov 82  }
 0x395   :  { %1398 = vrot.lane.b32.xlu0 %v1303_v59, %s7016_s19 }
 0x396   :  { %1368 = vrot.lane.b32.xlu1 %v1319_v11, %s7028_s22  ;;  %s7328_s22 = smov 99  }
 0x399   :  { %1410 = vrot.lane.b32.xlu0 %v1318_v41, %s7022_s6 }
 0x39a   :  { %1380 = vrot.lane.b32.xlu1 %v1334_v51, %s7014_s2  ;;  %s7024_s2 = smov 86  }
 0x39d   :  { %1422 = vrot.lane.b32.xlu0 %v1333_v10, %s7018_s17 }
 0x39e   :  { %1400 = vrot.lane.b32.xlu1 %v1304_v52, %s7016_s19  ;;  %s7026_s19 = smov 84  }
 0x3a1   :  { %1442 = vrot.lane.b32.xlu0 %v1303_v59, %s7020_s16 }
 0x3a2   :  { %1412 = vrot.lane.b32.xlu1 %v1319_v11, %s7022_s6  ;;  %s5111_s6 = smov 69  }
 0x3a5   :  { %1454 = vrot.lane.b32.xlu0 %v1318_v41, %s5076_s25 }
 0x3a6   :  { %1424 = vrot.lane.b32.xlu1 %v1334_v51, %s7018_s17  ;;  %s5109_s17 = smov 71  }
 0x3a9   :  { %1465 = vrot.lane.b32.xlu0 %v1333_v10, %s7024_s2 }
 0x3aa   :  { %1444 = vrot.lane.b32.xlu1 %v1304_v52, %s7020_s16  ;;  %s5110_s16 = smov 70  }
 0x3ad   :  { %1485 = vrot.lane.b32.xlu0 %v1303_v59, %s7026_s19 }
 0x3ae   :  { %1456 = vrot.lane.b32.xlu1 %v1319_v11, %s5076_s25 }
 0x3b1   :  { %1497 = vrot.lane.b32.xlu0 %v1318_v41, %s7030_s26 }
 0x3b2   :  { %1467 = vrot.lane.b32.xlu1 %v1334_v51, %s7024_s2  ;;  %s5112_s2 = smov 68  }
 0x3b5   :  { %1509 = vrot.lane.b32.xlu0 %v1333_v10, %s7032_s18 }
 0x3b6   :  { %1487 = vrot.lane.b32.xlu1 %v1304_v52, %s7026_s19  ;;  %s7329_s19 = smov 97  }
 0x3b9   :  { %1529 = vrot.lane.b32.xlu0 %v1303_v59, %s5109_s17  ;;  %v335_v59 = vld [vmem:[%s6896_s5] sm:$0xff] }
 0x3ba   :  { %1499 = vrot.lane.b32.xlu1 %v1319_v11, %s7030_s26  ;;  %s7330_s26 = smov 86  }
 0x3bd   :  { %1541 = vrot.lane.b32.xlu0 %v1318_v41, %s5110_s16  ;;  %v332_v41 = vld [vmem:[%s6895_s4 + $0x8] sm:$0xff] }
 0x3be   :  { %1511 = vrot.lane.b32.xlu1 %v1334_v51, %s7032_s18  ;;  %3857 = vmatprep.mubr.msk.f32.mxu1 %vm7084_vm12, %v332_v41  ;;  %s7331_s18 = smov 84  }
 0x3bf   :  { %3886 = vmatprep.mubr.msk.f32.mxu0 %vm7084_vm12, %v332_v41 }
 0x3c1   :  { %1553 = vrot.lane.b32.xlu0 %v1333_v10, %s5111_s6  ;;  %v5876_v10 = vld [vmem:[%s6891_s0 + $0x12] sm:$0x3]  ;;  %s7189_s0 = smov 61  }
 0x3c2   :  { %1531 = vrot.lane.b32.xlu1 %v1304_v52, %s5109_s17 }
 0x3c5   :  { %1563 = vrot.lane.b32.xlu0 %v5778_v33, %s5112_s2  ;;  %v336_v33 = vld [vmem:[%s6896_s5 + $0x8] sm:$0xff]  ;;  %s7190_s5 = smov 60  }
 0x3c6   :  { %1543 = vrot.lane.b32.xlu1 %v1319_v11, %s5110_s16 }
 0x3c9   :  { %1613 = vperm.xlu0 %4930, %v335_v59  }
 0x3ca   :  { %1555 = vrot.lane.b32.xlu1 %v1334_v51, %s5111_s6 }
 0x3cd   :  { %1950 = vrot.lane.b32.xlu0 %v5832_v34, %s5073_s21 }
 0x3ce   :  { %1565 = vrot.lane.b32.xlu1 %v5783_v47, %s5112_s2 }
 0x3d1   :  { %1961 = vrot.lane.b32.xlu0 %v5832_v34, %s5072_s20 }
 0x3d2   :  { %1618 = vperm.xlu1 %4931, %v336_v33  }
 0x3d5   :  { %1972 = vrot.lane.b32.xlu0 %v5832_v34, %s5074_s23 }
 0x3d6   :  { %1952 = vrot.lane.b32.xlu1 %v5876_v10, %s5073_s21 }
 0x3d9   :  { %1983 = vrot.lane.b32.xlu0 %v5832_v34, %s5075_s24 }
 0x3da   :  { %1963 = vrot.lane.b32.xlu1 %v5876_v10, %s5072_s20 }
 0x3dd   :  { %1994 = vrot.lane.b32.xlu0 %v5832_v34, %s5076_s25 }
 0x3de   :  { %1974 = vrot.lane.b32.xlu1 %v5876_v10, %s5074_s23 }
 0x3df   :  { %v1346_v47 = vpop.permute.xlu0 %1345 }
 0x3e0   :  { %v1348_v52 = vpop.permute.xlu1 %1347 }
 0x3e1   :  { %v1349_v11 = vsel %vm7049_vm5, %v1346_v47, %v1348_v52  ;;  %1353 = vst.msk [vmem:[#allocation3 + $0x38] sm:$0x3f] %vm1299_vm14, %v1348_v52  ;;  %2005 = vrot.lane.b32.xlu0 %v5832_v34, %s5077_s27  ;;  %vm7053_vm5 = vcmask 924672  }
 0x3e2   :  { %1352 = vst [vmem:[#allocation3 + $0x30] sm:$0x3f] %v1349_v11  ;;  %1985 = vrot.lane.b32.xlu1 %v5876_v10, %s5075_s24 }
 0x3e3   :  { %v1389_v51 = vpop.permute.xlu0 %1388 }
 0x3e4   :  { %v1391_v59 = vpop.permute.xlu1 %1390 }
 0x3e5   :  { %v1393_v41 = vsel %vm7037_vm15, %v1389_v51, %v1391_v59  ;;  %1397 = vst.msk [vmem:[#allocation3 + $0x68] sm:$0x3f] %vm1299_vm14, %v1391_v59  ;;  %2016 = vrot.lane.b32.xlu0 %v5832_v34, %s5078_s28  ;;  %vm7039_vm15 = vcmask 695296  }
 0x3e6   :  { %1396 = vst [vmem:[#allocation3 + $0x60] sm:$0x3f] %v1393_v41  ;;  %1996 = vrot.lane.b32.xlu1 %v5876_v10, %s5076_s25 }
 0x3e7   :  { %v1433_v33 = vpop.permute.xlu0 %1432 }
 0x3e8   :  { %v1435_v47 = vpop.permute.xlu1 %1434 }
 0x3e9   :  { %v1437_v52 = vsel %vm7038_vm13, %v1433_v33, %v1435_v47  ;;  %1441 = vst.msk [vmem:[#allocation3 + $0x98] sm:$0x3f] %vm1299_vm14, %v1435_v47  ;;  %2027 = vrot.lane.b32.xlu0 %v5832_v34, %s5079_s29  ;;  %vm7041_vm13 = vcmask 588800  }
 0x3ea   :  { %1440 = vst [vmem:[#allocation3 + $0x90] sm:$0x3f] %v1437_v52  ;;  %2007 = vrot.lane.b32.xlu1 %v5876_v10, %s5077_s27  ;;  %s7191_s27 = smov 32  }
 0x3eb   :  { %v1476_v11 = vpop.permute.xlu0 %1475 }
 0x3ec   :  { %v1478_v51 = vpop.permute.xlu1 %1477 }
 0x3ed   :  { %v1480_v59 = vsel %vm7039_vm15, %v1476_v11, %v1478_v51  ;;  %1484 = vst.msk [vmem:[#allocation3 + $0xc8] sm:$0x3f] %vm1299_vm14, %v1478_v51  ;;  %2038 = vrot.lane.b32.xlu0 %v5832_v34, %s5080_s30  ;;  %vm1313_vm15 = vcmask 556038  }
 0x3ee   :  { %1483 = vst [vmem:[#allocation3 + $0xc0] sm:$0x3f] %v1480_v59  ;;  %2018 = vrot.lane.b32.xlu1 %v5876_v10, %s5078_s28 }
 0x3ef   :  { %v1520_v41 = vpop.permute.xlu0 %1519 }
 0x3f0   :  { %v1522_v33 = vpop.permute.xlu1 %1521 }
 0x3f1   :  { %v1524_v47 = vsel %vm7041_vm13, %v1520_v41, %v1522_v33  ;;  %1528 = vst.msk [vmem:[#allocation3 + $0xf8] sm:$0x3f] %vm1299_vm14, %v1522_v33  ;;  %2049 = vrot.lane.b32.xlu0 %v5832_v34, %s5081_s14  ;;  %vm1328_vm13 = vcmask 556036  }
 0x3f2   :  { %1527 = vst [vmem:[#allocation3 + $0xf0] sm:$0x3f] %v1524_v47  ;;  %2029 = vrot.lane.b32.xlu1 %v5876_v10, %s5079_s29  ;;  %s7192_s29 = smov 31  }
 0x3f3   :  { %v1321_v52 = vpop.permute.xlu0 %1320 }
 0x3f4   :  { %v1306_v11 = vpop.permute.xlu1 %1305 }
 0x3f5   :  { %2060 = vrot.lane.b32.xlu0 %v5832_v34, %s5082_s15 }
 0x3f6   :  { %2040 = vrot.lane.b32.xlu1 %v5876_v10, %s5080_s30  ;;  %s7193_s30 = smov 30  }
 0x3f7   :  { %v1336_v51 = vpop.permute.xlu0 %1335 }
 0x3f8   :  { %v1308_v59 = vpop.permute.xlu1 %1307 }
 0x3f9   :  { %v1309_v41 = vsel %vm376_vm3, %v1306_v11, %v1308_v59  ;;  %1314 = vst.msk [vmem:[#allocation3 + $0x8] sm:$0xc0] %vm1313_vm15, %v1308_v59  ;;  %2071 = vrot.lane.b32.xlu0 %v5832_v34, %s5083_s3 }
 0x3fa   :  { %1317 = vst.msk [vmem:[#allocation3 + $0x18] sm:$0xf] %vm1316_vm10, %v1308_v59  ;;  %1312 = vst [vmem:[#allocation3 + $0x10] ss:$-12 sps:$4 sm:$0xcf] %v1309_v41   ;;  %2051 = vrot.lane.b32.xlu1 %v5876_v10, %s5081_s14  ;;  %s7194_s14 = smov 29  }
 0x3fb   :  { %v1355_v33 = vpop.permute.xlu0 %1354 }
 0x3fc   :  { %v1323_v47 = vpop.permute.xlu1 %1322 }
 0x3fd   :  { %v1324_v9 = vsel %vm389_vm1, %v1321_v52, %v1323_v47  ;;  %1329 = vst.msk [vmem:[#allocation3 + $0x18] sm:$0xf0] %vm1328_vm13, %v1323_v47  ;;  %2082 = vrot.lane.b32.xlu0 %v5832_v34, %s7189_s0 }
 0x3fe   :  { %1332 = vst.msk [vmem:[#allocation3 + $0x28] sm:$0x3] %vm1331_vm9, %v1323_v47  ;;  %1327 = vst [vmem:[#allocation3 + $0x20] ss:$-12 sps:$4 sm:$0xf3] %v1324_v9   ;;  %2062 = vrot.lane.b32.xlu1 %v5876_v10, %s5082_s15  ;;  %s7195_s15 = smov 28  }
 0x3ff   :  { %v1367_v11 = vpop.permute.xlu0 %1366 }
 0x400   :  { %v1338_v59 = vpop.permute.xlu1 %1337  ;;  %v1574_v47 = vld [vmem:[#allocation3 + $0x8] sm:$0xff] }
 0x401   :  { %v1339_v41 = vsel %vm402_vm4, %v1336_v51, %v1338_v59  ;;  %1344 = vst.msk [vmem:[#allocation3 + $0x28] sm:$0xfc] %vm1343_vm8, %v1338_v59  ;;  %2093 = vrot.lane.b32.xlu0 %v5832_v34, %s7190_s5  ;;  %v1573_v59 = vld [vmem:[#allocation3] sm:$0xff] }
 0x402   :  { %1342 = vst [vmem:[#allocation3 + $0x20] sm:$0xfc] %v1339_v41  ;;  %2073 = vrot.lane.b32.xlu1 %v5876_v10, %s5083_s3  ;;  %s7327_s3 = smov 100  }
 0x403   :  { %v1379_v52 = vpop.permute.xlu0 %1378 }
 0x404   :  { %v1357_v9 = vpop.permute.xlu1 %1356  ;;  %v1576_v58 = vld [vmem:[#allocation3 + $0x18] sm:$0xff] }
 0x405   :  { %v1359_v29 = vsel %vm7052_vm7, %v1355_v33, %v1357_v9  ;;  %1363 = vst.msk [vmem:[#allocation3 + $0x38] sm:$0xc0] %vm1313_vm15, %v1357_v9  ;;  %v4323_v51 = vpack.c.bf16 %v1576_v58, %v1574_v47  ;;  %v1575_v60 = vld [vmem:[#allocation3 + $0x10] sm:$0xff]  ;;  %2104 = vrot.lane.b32.xlu0 %v5832_v34, %s7191_s27  ;;  %vm7054_vm7 = vcmask 916480  }
 0x406   :  { %1365 = vst.msk [vmem:[#allocation3 + $0x48] sm:$0xf] %vm1316_vm10, %v1357_v9  ;;  %1362 = vst [vmem:[#allocation3 + $0x40] ss:$-12 sps:$4 sm:$0xcf] %v1359_v29   ;;  %v4325_v41 = vpack.c.bf16 %v1575_v60, %v1573_v59  ;;  %2084 = vrot.lane.b32.xlu1 %v5876_v10, %s7189_s0  ;;  %s7332_s0 = smov 83  }
 0x407   :  { %v1399_v22 = vpop.permute.xlu0 %1398  ;;  %4324 = vmatprep.subr.bf16.mxu1 %v4323_v51 }
 0x408   :  { %v1369_v28 = vpop.permute.xlu1 %1368  ;;  %4326 = vmatpush1.bf16.msra.mxu1 %v4325_v41  ;;  %v1578_v58 = vld [vmem:[#allocation3 + $0x28] sm:$0xff] }
 0x409   :  { %v1371_v33 = vsel %vm7053_vm5, %v1367_v11, %v1369_v28  ;;  %1375 = vst.msk [vmem:[#allocation3 + $0x48] sm:$0xf0] %vm1328_vm13, %v1369_v28  ;;  %2115 = vrot.lane.b32.xlu0 %v5832_v34, %s7192_s29  ;;  %v1577_v51 = vld [vmem:[#allocation3 + $0x20] sm:$0xff]  ;;  %vm7055_vm5 = vcmask 900096  }
 0x40a   :  { %1377 = vst.msk [vmem:[#allocation3 + $0x58] sm:$0x3] %vm1331_vm9, %v1369_v28  ;;  %1374 = vst [vmem:[#allocation3 + $0x50] ss:$-12 sps:$4 sm:$0xf3] %v1371_v33   ;;  %2095 = vrot.lane.b32.xlu1 %v5876_v10, %s7190_s5  ;;  %s7333_s5 = smov 82  }
 0x40b   :  { %v1411_v60 = vpop.permute.xlu0 %1410 }
 0x40c   :  { %v1381_v29 = vpop.permute.xlu1 %1380  ;;  %v1580_v9 = vld [vmem:[#allocation3 + $0x38] sm:$0xff] }
 0x40d   :  { %v1383_v47 = vsel %vm7054_vm7, %v1379_v52, %v1381_v29  ;;  %1387 = vst.msk [vmem:[#allocation3 + $0x58] sm:$0xfc] %vm1343_vm8, %v1381_v29  ;;  %v4327_v11 = vpack.c.bf16 %v1580_v9, %v1578_v58  ;;  %v1579_v59 = vld [vmem:[#allocation3 + $0x30] sm:$0xff]  ;;  %2126 = vrot.lane.b32.xlu0 %v5832_v34, %s7193_s30  ;;  %vm7056_vm7 = vcmask 818176  }
 0x40e   :  { %1386 = vst [vmem:[#allocation3 + $0x50] sm:$0xfc] %v1383_v47  ;;  %v4329_v28 = vpack.c.bf16 %v1579_v59, %v1577_v51  ;;  %2106 = vrot.lane.b32.xlu1 %v5876_v10, %s7191_s27  ;;  %s5119_s27 = smov 119  }
 0x40f   :  { %v1423_v41 = vpop.permute.xlu0 %1422  ;;  %4328 = vmatprep.subr.bf16.mxu1 %v4327_v11 }
 0x410   :  { %v1401_v33 = vpop.permute.xlu1 %1400  ;;  %4330 = vmatpush1.bf16.msra.mxu1 %v4329_v28  ;;  %v1582_v9 = vld [vmem:[#allocation3 + $0x48] sm:$0xff] }
 0x411   :  { %v1403_v52 = vsel %vm7055_vm5, %v1399_v22, %v1401_v33  ;;  %1407 = vst.msk [vmem:[#allocation3 + $0x68] sm:$0xc0] %vm1313_vm15, %v1401_v33  ;;  %2137 = vrot.lane.b32.xlu0 %v5832_v34, %s7194_s14  ;;  %v1581_v51 = vld [vmem:[#allocation3 + $0x40] sm:$0xff]  ;;  %vm7059_vm5 = vcmask 809984  }
 0x412   :  { %1409 = vst.msk [vmem:[#allocation3 + $0x78] sm:$0xf] %vm1316_vm10, %v1401_v33  ;;  %1406 = vst [vmem:[#allocation3 + $0x70] ss:$-12 sps:$4 sm:$0xcf] %v1403_v52   ;;  %2117 = vrot.lane.b32.xlu1 %v5876_v10, %s7192_s29  ;;  %s7320_s29 = smov 98  }
 0x413   :  { %v1443_v29 = vpop.permute.xlu0 %1442 }
 0x414   :  { %v1413_v58 = vpop.permute.xlu1 %1412  ;;  %v1584_v47 = vld [vmem:[#allocation3 + $0x58] sm:$0xff] }
 0x415   :  { %v1415_v11 = vsel %vm7056_vm7, %v1411_v60, %v1413_v58  ;;  %1419 = vst.msk [vmem:[#allocation3 + $0x78] sm:$0xf0] %vm1328_vm13, %v1413_v58  ;;  %v4331_v22 = vpack.c.bf16 %v1584_v47, %v1582_v9  ;;  %v1583_v59 = vld [vmem:[#allocation3 + $0x50] sm:$0xff]  ;;  %2148 = vrot.lane.b32.xlu0 %v5832_v34, %s7195_s15  ;;  %vm7058_vm7 = vcmask 793600  }
 0x416   :  { %1421 = vst.msk [vmem:[#allocation3 + $0x88] sm:$0x3] %vm1331_vm9, %v1413_v58  ;;  %1418 = vst [vmem:[#allocation3 + $0x80] ss:$-12 sps:$4 sm:$0xf3] %v1415_v11   ;;  %v4333_v28 = vpack.c.bf16 %v1583_v59, %v1581_v51  ;;  %2128 = vrot.lane.b32.xlu1 %v5876_v10, %s7193_s30  ;;  %s7321_s30 = smov 85  }
 0x417   :  { %v1455_v33 = vpop.permute.xlu0 %1454  ;;  %4332 = vmatprep.subr.bf16.mxu1 %v4331_v22 }
 0x418   :  { %v1425_v52 = vpop.permute.xlu1 %1424  ;;  %4334 = vmatpush1.bf16.msra.mxu1 %v4333_v28  ;;  %v1586_v47 = vld [vmem:[#allocation3 + $0x68] sm:$0xff] }
 0x419   :  { %v1427_v60 = vsel %vm7059_vm5, %v1423_v41, %v1425_v52  ;;  %1431 = vst.msk [vmem:[#allocation3 + $0x88] sm:$0xfc] %vm1343_vm8, %v1425_v52  ;;  %v1585_v59 = vld [vmem:[#allocation3 + $0x60] sm:$0xff]  ;;  %vm7062_vm5 = vcmask 687104  }
 0x41a   :  { %1430 = vst [vmem:[#allocation3 + $0x80] sm:$0xfc] %v1427_v60  ;;  %2139 = vrot.lane.b32.xlu1 %v5876_v10, %s7194_s14  ;;  %s7322_s14 = smov 72  }
 0x41b   :  { %v1466_v58 = vpop.permute.xlu0 %1465 }
 0x41c   :  { %v1445_v9 = vpop.permute.xlu1 %1444  ;;  %v1588_v11 = vld [vmem:[#allocation3 + $0x78] sm:$0xff] }
 0x41d   :  { %v1447_v51 = vsel %vm7058_vm7, %v1443_v29, %v1445_v9  ;;  %1451 = vst.msk [vmem:[#allocation3 + $0x98] sm:$0xc0] %vm1313_vm15, %v1445_v9  ;;  %v4335_v22 = vpack.c.bf16 %v1588_v11, %v1586_v47  ;;  %v1587_v41 = vld [vmem:[#allocation3 + $0x70] sm:$0xff]  ;;  %vm7061_vm7 = vcmask 703488  }
 0x41e   :  { %1453 = vst.msk [vmem:[#allocation3 + $0xa8] sm:$0xf] %vm1316_vm10, %v1445_v9  ;;  %1450 = vst [vmem:[#allocation3 + $0xa0] ss:$-12 sps:$4 sm:$0xcf] %v1447_v51   ;;  %v4337_v28 = vpack.c.bf16 %v1587_v41, %v1585_v59  ;;  %2150 = vrot.lane.b32.xlu1 %v5876_v10, %s7195_s15  ;;  %s7325_s15 = smov 112  }
 0x41f   :  { %v1486_v52 = vpop.permute.xlu0 %1485  ;;  %4336 = vmatprep.subr.bf16.mxu1 %v4335_v22 }
 0x420   :  { %v1457_v60 = vpop.permute.xlu1 %1456  ;;  %4338 = vmatpush1.bf16.msra.mxu1 %v4337_v28  ;;  %v1590_v47 = vld [vmem:[#allocation3 + $0x88] sm:$0xff] }
 0x421   :  { %v1458_v3 = vsel %vm7064_vm6, %v1455_v33, %v1457_v60  ;;  %1462 = vst.msk [vmem:[#allocation3 + $0xa8] sm:$0xf0] %vm1328_vm13, %v1457_v60  ;;  %v1589_v22 = vld [vmem:[#allocation3 + $0x80] sm:$0xff]  ;;  %vm1545_vm6 = vcmask 572416  }
 0x422   :  { %1464 = vst.msk [vmem:[#allocation3 + $0xb8] sm:$0x3] %vm1331_vm9, %v1457_v60  ;;  %1461 = vst [vmem:[#allocation3 + $0xb0] ss:$-12 sps:$4 sm:$0xf3] %v1458_v3  }
 0x423   :  { %v1498_v29 = vpop.permute.xlu0 %1497 }
 0x424   :  { %v1468_v9 = vpop.permute.xlu1 %1467  ;;  %v1592_v11 = vld [vmem:[#allocation3 + $0x98] sm:$0xff] }
 0x425   :  { %v1470_v51 = vsel %vm7061_vm7, %v1466_v58, %v1468_v9  ;;  %1474 = vst.msk [vmem:[#allocation3 + $0xb8] sm:$0xfc] %vm1343_vm8, %v1468_v9  ;;  %v4339_v59 = vpack.c.bf16 %v1592_v11, %v1590_v47  ;;  %v1591_v41 = vld [vmem:[#allocation3 + $0x90] sm:$0xff]  ;;  %vm7063_vm7 = vcmask 678912  }
 0x426   :  { %1473 = vst [vmem:[#allocation3 + $0xb0] sm:$0xfc] %v1470_v51  ;;  %v4341_v33 = vpack.c.bf16 %v1591_v41, %v1589_v22 }
 0x427   :  { %4340 = vmatprep.subr.bf16.mxu1 %v4339_v59  ;;  %v1510_v28 = vpop.permute.xlu0 %1509 }
 0x428   :  { %v1488_v2 = vpop.permute.xlu1 %1487  ;;  %4342 = vmatpush1.bf16.msra.mxu1 %v4341_v33  ;;  %v1594_v60 = vld [vmem:[#allocation3 + $0xa8] sm:$0xff] }
 0x429   :  { %v1490_v3 = vsel %vm7062_vm5, %v1486_v52, %v1488_v2  ;;  %1494 = vst.msk [vmem:[#allocation3 + $0xc8] sm:$0xc0] %vm1313_vm15, %v1488_v2  ;;  %v1593_v51 = vld [vmem:[#allocation3 + $0xa0] sm:$0xff]  ;;  %vm7066_vm5 = vcmask 670720  }
 0x42a   :  { %1496 = vst.msk [vmem:[#allocation3 + $0xd8] sm:$0xf] %vm1316_vm10, %v1488_v2  ;;  %1493 = vst [vmem:[#allocation3 + $0xd0] ss:$-12 sps:$4 sm:$0xcf] %v1490_v3  }
 0x42b   :  { %v1530_v22 = vpop.permute.xlu0 %1529 }
 0x42c   :  { %v1500_v58 = vpop.permute.xlu1 %1499  ;;  %v1596_v9 = vld [vmem:[#allocation3 + $0xb8] sm:$0xff] }
 0x42d   :  { %v1502_v47 = vsel %vm7063_vm7, %v1498_v29, %v1500_v58  ;;  %1506 = vst.msk [vmem:[#allocation3 + $0xd8] sm:$0xf0] %vm1328_vm13, %v1500_v58  ;;  %v4343_v11 = vpack.c.bf16 %v1596_v9, %v1594_v60  ;;  %v1595_v59 = vld [vmem:[#allocation3 + $0xb0] sm:$0xff]  ;;  %vm7065_vm7 = vcmask 580608  }
 0x42e   :  { %1508 = vst.msk [vmem:[#allocation3 + $0xe8] sm:$0x3] %vm1331_vm9, %v1500_v58  ;;  %1505 = vst [vmem:[#allocation3 + $0xe0] ss:$-12 sps:$4 sm:$0xf3] %v1502_v47   ;;  %v4345_v52 = vpack.c.bf16 %v1595_v59, %v1593_v51 }
 0x42f   :  { %4344 = vmatprep.subr.bf16.mxu1 %v4343_v11  ;;  %v1542_v29 = vpop.permute.xlu0 %1541 }
 0x430   :  { %v1512_v2 = vpop.permute.xlu1 %1511  ;;  %4346 = vmatpush1.bf16.msra.mxu1 %v4345_v52  ;;  %v1598_v3 = vld [vmem:[#allocation3 + $0xc8] sm:$0xff] }
 0x431   :  { %v1514_v41 = vsel %vm7066_vm5, %v1510_v28, %v1512_v2  ;;  %1518 = vst.msk [vmem:[#allocation3 + $0xe8] sm:$0xfc] %vm1343_vm8, %v1512_v2  ;;  %v1597_v47 = vld [vmem:[#allocation3 + $0xc0] sm:$0xff]  ;;  %vm1567_vm5 = vcmask 556032  }
 0x432   :  { %1517 = vst [vmem:[#allocation3 + $0xe0] sm:$0xfc] %v1514_v41 }
 0x434   :  { %v1532_v33 = vpop.permute.xlu1 %1531  ;;  %v1600_v58 = vld [vmem:[#allocation3 + $0xd8] sm:$0xff] }
 0x435   :  { %v1534_v60 = vsel %vm7065_vm7, %v1530_v22, %v1532_v33  ;;  %1538 = vst.msk [vmem:[#allocation3 + $0xf8] sm:$0xc0] %vm1313_vm15, %v1532_v33  ;;  %v4347_v9 = vpack.c.bf16 %v1600_v58, %v1598_v3  ;;  %v1599_v11 = vld [vmem:[#allocation3 + $0xd0] sm:$0xff]  ;;  %v1554_v22 = vpop.permute.xlu0 %1553  ;;  %vm7085_vm7 = vcmask 564224  }
 0x436   :  { %1540 = vst.msk [vmem:[#allocation3 + $0x108] sm:$0xf] %vm1316_vm10, %v1532_v33  ;;  %1537 = vst [vmem:[#allocation3 + $0x100] ss:$-12 sps:$4 sm:$0xcf] %v1534_v60   ;;  %v4349_v28 = vpack.c.bf16 %v1599_v11, %v1597_v47 }
 0x437   :  { %4348 = vmatprep.subr.bf16.mxu1 %v4347_v9 }
 0x438   :  { %v1544_v51 = vpop.permute.xlu1 %1543  ;;  %4350 = vmatpush1.bf16.msra.mxu1 %v4349_v28  ;;  %v1602_v2 = vld [vmem:[#allocation3 + $0xe8] sm:$0xff] }
 0x439   :  { %v1546_v59 = vsel %vm1545_vm6, %v1542_v29, %v1544_v51  ;;  %1550 = vst.msk [vmem:[#allocation3 + $0x108] sm:$0xf0] %vm1328_vm13, %v1544_v51  ;;  %v1601_v58 = vld [vmem:[#allocation3 + $0xe0] sm:$0xff]  ;;  %v1564_v9 = vpop.permute.xlu0 %1563 }
 0x43a   :  { %1552 = vst.msk [vmem:[#allocation3 + $0x118] sm:$0x3] %vm1331_vm9, %v1544_v51  ;;  %1549 = vst [vmem:[#allocation3 + $0x110] ss:$-12 sps:$4 sm:$0xf3] %v1546_v59  }
 0x43c   :  { %v1556_v52 = vpop.permute.xlu1 %1555  ;;  %v1604_v41 = vld [vmem:[#allocation3 + $0xf8] sm:$0xff] }
 0x43d   :  { %v1558_v33 = vsel %vm7085_vm7, %v1554_v22, %v1556_v52  ;;  %1562 = vst.msk [vmem:[#allocation3 + $0x118] sm:$0xfc] %vm1343_vm8, %v1556_v52  ;;  %v4351_v3 = vpack.c.bf16 %v1604_v41, %v1602_v2  ;;  %v1603_v60 = vld [vmem:[#allocation3 + $0xf0] sm:$0xff]  ;;  %v337_v41 = vld [vmem:[#allocation8] sm:$0xff] }
 0x43e   :  { %1561 = vst [vmem:[#allocation3 + $0x110] sm:$0xfc] %v1558_v33  ;;  %v4353_v29 = vpack.c.bf16 %v1603_v60, %v1601_v58  ;;  %v338_v33 = vld [vmem:[#allocation8 + $0x8] sm:$0xff]  ;;  %v334_v60 = vld [vmem:[%s6895_s4 + $0x18] sm:$0xff] }
 0x43f   :  { %4352 = vmatprep.subr.bf16.mxu1 %v4351_v3  ;;  %v331_v58 = vld [vmem:[%s6895_s4] sm:$0xff] }
 0x440   :  { %v1566_v47 = vpop.permute.xlu1 %1565  ;;  %4354 = vmatpush1.bf16.msra.mxu1 %v4353_v29  ;;  %v1606_v28 = vld [vmem:[#allocation3 + $0x108] sm:$0xff]  ;;  %v6019_v29 = vpack.c.bf16 %v338_v33, %v337_v41 }
 0x441   :  { %v1568_v11 = vsel %vm1567_vm5, %v1564_v9, %v1566_v47  ;;  %1572 = vst.msk [vmem:[#allocation3 + $0x128] sm:$0x3f] %vm1299_vm14, %v1566_v47  ;;  %v1605_v22 = vld [vmem:[#allocation3 + $0x100] sm:$0xff]  ;;  %v339_v47 = vld [vmem:[#allocation8 + $0x10] sm:$0xff] }
 0x442   :  { %1571 = vst [vmem:[#allocation3 + $0x120] sm:$0x3f] %v1568_v11  ;;  %7196 = vst [vmem:[#allocation107_spill] sm:$0xff] %v6019_v29  ;;  %v340_v11 = vld [vmem:[#allocation8 + $0x18] sm:$0xff] }
 0x444   :  { %v1608_v51 = vld [vmem:[#allocation3 + $0x118] sm:$0xff] }
 0x445   :  { %v4355_v59 = vpack.c.bf16 %v1608_v51, %v1606_v28  ;;  %v1607_v52 = vld [vmem:[#allocation3 + $0x110] sm:$0xff]  ;;  %v7079_v51 = vmov 0.0|0.0  }
 0x446   :  { %v4357_v2 = vpack.c.bf16 %v1607_v52, %v1605_v22  ;;  %v6028_v22 = vpack.c.bf16 %v340_v11, %v339_v47  ;;  %v341_v52 = vld [vmem:[#allocation8 + $0x20] sm:$0xff] }
 0x447   :  { %4356 = vmatprep.subr.bf16.mxu1 %v4355_v59  ;;  %v333_v59 = vld [vmem:[%s6895_s4 + $0x10] sm:$0xff] }
 0x448   :  { %v6010_v5 = vpop.permute.xlu0 %1613  ;;  %4358 = vmatpush1.bf16.msra.mxu1 %v4357_v2  ;;  %v1610_v3 = vld [vmem:[#allocation3 + $0x128] sm:$0x3f]  ;;  %7197 = vst [vmem:[#allocation108_spill] sm:$0xff] %v6028_v22  ;;  %v342_v2 = vld [vmem:[#allocation8 + $0x28] sm:$0xff] }
 0x449   :  { %3855 = vmatprep.subr.msk.mxu1 %vm7086_vm2, %v1610_v3  ;;  %v1609_v9 = vld [vmem:[#allocation3 + $0x120] sm:$0x3f]  ;;  %v6034_v3 = vpack.c.bf16 %v342_v2, %v341_v52 }
 0x44b   :  { %7198 = vst [vmem:[#allocation109_spill] sm:$0xff] %v6034_v3 }
 0x44c   :  { %3856 = vmatpush1.msk.msra.mxu1 %vm7086_vm2, %v1609_v9  ;;  %v1951_v28 = vpop.permute.xlu0 %1950 }
 0x44d   :  { %1699 = vmatmul.mubr.f32.vlgmr.msra.gmra.mrb[2].mxu1 %v331_v58  ;;  %4359 = vmatprep.subr.bf16.mxu1 %v7079_v51  ;;  %v343_v58 = vld [vmem:[#allocation8 + $0x30] sm:$0xff]  ;;  %v1954_v9 = vrot.slane %v1951_v28, 1 }
 0x44e   :  { %3858 = vmatprep.mubr.msk.f32.mxu1 %vm7084_vm12, %v334_v60  ;;  %4361 = vmatpush1.bf16.msra.mxu1 %v6019_v29  ;;  %v344_v60 = vld [vmem:[#allocation8 + $0x38] sm:$0xff]  ;;  %v2165_v29 = vrot.slane %v1951_v28, 2  ;;  %vm7202_vm12 = vcmask 1014784  }
 0x44f   :  { %4362 = vmatprep.subr.bf16.mxu1 %v7079_v51  ;;  %v6038_v36 = vpack.c.bf16 %v344_v60, %v343_v58  ;;  %vm7203_vm7 = vmmov %vm7202_vm12 }
 0x450   :  { %v1962_v41 = vpop.permute.xlu0 %1961 }
 0x451   :  { %1705 = vmatmul.mubr.f32.gmra.mrb[4].mxu1 %v333_v59  ;;  %v6031_v33 = vpop.permute.xlu1 %1618  ;;  %7199 = vst [vmem:[#allocation110_spill] sm:$0xff] %v6038_v36  ;;  %v345_v59 = vld [vmem:[#allocation8 + $0x40] sm:$0xff]  ;;  %v1965_v17 = vrot.slane %v1962_v41, 1  ;;  %v2172_v14 = vrot.slane %v1962_v41, 2 }
 0x452   :  { %4364 = vmatpush1.bf16.msra.mxu1 %v6028_v22  ;;  %v346_v22 = vld [vmem:[#allocation8 + $0x48] sm:$0xff] }
 0x453   :  { %4365 = vmatprep.subr.bf16.mxu1 %v7079_v51 }
 0x454   :  { %v1973_v47 = vpop.permute.xlu0 %1972 }
 0x455   :  { %v1953_v11 = vpop.permute.xlu1 %1952 }
 0x456   :  { %v1955_v57 = vrot.slane %v1953_v11, 1  ;;  %v2166_v39 = vrot.slane %v1953_v11, 2  ;;  %4367 = vmatpush1.bf16.msra.mxu1 %v6034_v3 }
 0x457   :  { %4368 = vmatprep.subr.bf16.mxu1 %v7079_v51 }
 0x458   :  { %v1956_v52 = vsel %vm374_vm0, %v1954_v9, %v1955_v57  ;;  %v2167_v2 = vsel %vm7086_vm2, %v2165_v29, %v2166_v39  ;;  %v6043_v1 = vpop.permute.xlu0 %1983  ;;  %v6048_v57 = vpack.c.bf16 %v346_v22, %v345_v59  ;;  %v347_v39 = vld [vmem:[#allocation8 + $0x50] sm:$0xff]  ;;  %v348_v29 = vld [vmem:[#allocation8 + $0x58] sm:$0xff] }
 0x459   :  { %v1957_v0 = vsel %vm376_vm3, %v1951_v28, %v1956_v52  ;;  %v2168_v11 = vsel %vm376_vm3, %v1956_v52, %v2167_v2  ;;  %v1964_v46 = vpop.permute.xlu1 %1963  ;;  %v1976_v52 = vrot.slane %v1973_v47, 1  ;;  %v2179_v2 = vrot.slane %v1973_v47, 2 }
 0x45a   :  { %1959 = vst [vmem:[#allocation2 + $0x1] ss:$8 sm:$0xf] %v1957_v0  ;;  %1960 = vst [vmem:[#allocation2 + $0x1] ss:$8 sm:$0xf0] %v1957_v0  ;;  %4370 = vmatpush1.bf16.msra.mxu1 %v6038_v36 }
 0x45b   :  { %2170 = vst [vmem:[#allocation2 + $0x85] ss:$8 sm:$0xf] %v2168_v11  ;;  %2171 = vst [vmem:[#allocation2 + $0x85] ss:$8 sm:$0xf0] %v2168_v11  ;;  %4371 = vmatprep.subr.bf16.mxu1 %v7079_v51  ;;  %v6056_v51 = vpack.c.bf16 %v348_v29, %v347_v39 }
 0x45c   :  { %v1966_v58 = vrot.slane %v1964_v46, 1  ;;  %v2173_v60 = vrot.slane %v1964_v46, 2  ;;  %7200 = vst [vmem:[#allocation111_spill] sm:$0xff] %v6048_v57  ;;  %v1995_v3 = vpop.permute.xlu0 %1994 }
 0x45d   :  { %v1975_v46 = vpop.permute.xlu1 %1974 }
 0x45e   :  { %v1967_v9 = vsel %vm374_vm0, %v1965_v17, %v1966_v58  ;;  %v2174_v28 = vsel %vm7086_vm2, %v2172_v14, %v2173_v60  ;;  %v1977_v22 = vrot.slane %v1975_v46, 1  ;;  %v2180_v59 = vrot.slane %v1975_v46, 2  ;;  %4373 = vmatpush1.bf16.msra.mxu1 %v6048_v57  ;;  %v350_v60 = vld [vmem:[#allocation8 + $0x68] sm:$0xff] }
 0x45f   :  { %v1968_v0 = vsel %vm389_vm1, %v1962_v41, %v1967_v9  ;;  %v2175_v11 = vsel %vm389_vm1, %v1967_v9, %v2174_v28  ;;  %v1987_v14 = vrot.slane %v6043_v1, 1  ;;  %v2186_v17 = vrot.slane %v6043_v1, 2  ;;  %v349_v41 = vld [vmem:[#allocation8 + $0x60] sm:$0xff] }
 0x460   :  { %1970 = vst [vmem:[#allocation2 + $0x2] ss:$8 sm:$0xf] %v1968_v0  ;;  %1971 = vst [vmem:[#allocation2 + $0x2] ss:$8 sm:$0xf0] %v1968_v0  ;;  %v1978_v9 = vsel %vm374_vm0, %v1976_v52, %v1977_v22  ;;  %v2181_v28 = vsel %vm7086_vm2, %v2179_v2, %v2180_v59  ;;  %v2006_v0 = vpop.permute.xlu0 %2005  ;;  %v6068_v52 = vpack.c.bf16 %v350_v60, %v349_v41 }
 0x461   :  { %2177 = vst [vmem:[#allocation2 + $0x86] ss:$8 sm:$0xf] %v2175_v11  ;;  %2178 = vst [vmem:[#allocation2 + $0x86] ss:$8 sm:$0xf0] %v2175_v11  ;;  %v1979_v39 = vsel %vm402_vm4, %v1973_v47, %v1978_v9  ;;  %v2182_v29 = vsel %vm402_vm4, %v1978_v9, %v2181_v28  ;;  %v1986_v57 = vpop.permute.xlu1 %1985 }
 0x462   :  { %v7201_v58 = vmov 0.0|0.0   ;;  %v2159_v11 = vrot.slane %v5832_v34, 1  ;;  %v2160_v46 = vrot.slane %v5876_v10, 1  ;;  %1981 = vst [vmem:[#allocation2 + $0x3] ss:$8 sm:$0xf] %v1979_v39 }
 0x463   :  { %4374 = vmatprep.subr.bf16.mxu1 %v7201_v58  ;;  %1982 = vst [vmem:[#allocation2 + $0x3] ss:$8 sm:$0xf0] %v1979_v39  ;;  %2184 = vst [vmem:[#allocation2 + $0x87] ss:$8 sm:$0xf] %v2182_v29 }
 0x464   :  { %2185 = vst [vmem:[#allocation2 + $0x87] ss:$8 sm:$0xf0] %v2182_v29  ;;  %v1988_v36 = vrot.slane %v1986_v57, 1  ;;  %v2187_v42 = vrot.slane %v1986_v57, 2  ;;  %4376 = vmatpush1.bf16.msra.mxu1 %v6056_v51  ;;  %v2161_v2 = vsel %vm374_vm0, %v2159_v11, %v2160_v46  ;;  %v351_v34 = vld [vmem:[#allocation8 + $0x70] sm:$0xff]  ;;  %v2017_v9 = vpop.permute.xlu0 %2016 }
 0x465   :  { %4377 = vmatprep.subr.bf16.mxu1 %v7201_v58  ;;  %v352_v10 = vld [vmem:[#allocation8 + $0x78] sm:$0xff]  ;;  %2163 = vst [vmem:[#allocation2 + $0x84] ss:$8 sm:$0xf] %v2161_v2  ;;  %v1998_v59 = vrot.slane %v1995_v3, 1  ;;  %v1997_v60 = vpop.permute.xlu1 %1996 }
 0x466   :  { %2164 = vst [vmem:[#allocation2 + $0x84] ss:$8 sm:$0xf0] %v2161_v2  ;;  %v1989_v47 = vsel %vm374_vm0, %v1987_v14, %v1988_v36  ;;  %v2188_v22 = vsel %vm7086_vm2, %v2186_v17, %v2187_v42  ;;  %v1999_v28 = vrot.slane %v1997_v60, 1  ;;  %v6078_v11 = vpack.c.bf16 %v352_v10, %v351_v34  ;;  %v353_v42 = vld [vmem:[#allocation8 + $0x80] sm:$0xff]  ;;  %v354_v36 = vld [vmem:[#allocation8 + $0x88] sm:$0xff] }
 0x467   :  { %v1990_v57 = vsel %vm7202_vm12, %v6043_v1, %v1989_v47  ;;  %v2189_v41 = vsel %vm7203_vm7, %v1989_v47, %v2188_v22  ;;  %v2009_v17 = vrot.slane %v2006_v0, 1  ;;  %vm7204_vm12 = vcmask 785408   ;;  %v355_v34 = vld [vmem:[#allocation8 + $0x90] sm:$0xff]  ;;  %v356_v10 = vld [vmem:[#allocation8 + $0x98] sm:$0xff] }
 0x468   :  { %1992 = vst [vmem:[#allocation2 + $0x4] ss:$8 sm:$0xf] %v1990_v57  ;;  %1993 = vst [vmem:[#allocation2 + $0x4] ss:$8 sm:$0xf0] %v1990_v57  ;;  %4379 = vmatpush1.bf16.msra.mxu1 %v6068_v52  ;;  %v2000_v14 = vsel %vm374_vm0, %v1998_v59, %v1999_v28  ;;  %v2028_v1 = vpop.permute.xlu0 %2027  ;;  %v6084_v2 = vpack.c.bf16 %v354_v36, %v353_v42  ;;  %v6090_v60 = vpack.c.bf16 %v356_v10, %v355_v34 }
 0x469   :  { %2191 = vst [vmem:[#allocation2 + $0xc0] ss:$8 sm:$0xf] %v2189_v41  ;;  %2192 = vst [vmem:[#allocation2 + $0xc0] ss:$8 sm:$0xf0] %v2189_v41  ;;  %4380 = vmatprep.subr.bf16.mxu1 %v7201_v58  ;;  %v2001_v46 = vsel %vm7204_vm12, %v1995_v3, %v2000_v14  ;;  %v2008_v39 = vpop.permute.xlu1 %2007 }
 0x46a   :  { %2003 = vst [vmem:[#allocation2 + $0x5] ss:$8 sm:$0xf] %v2001_v46  ;;  %2004 = vst [vmem:[#allocation2 + $0x5] ss:$8 sm:$0xf0] %v2001_v46 }
 0x46b   :  { %v2010_v29 = vrot.slane %v2008_v39, 1  ;;  %v2020_v22 = vrot.slane %v2017_v9, 1  ;;  %vm7205_vm7 = vcmask 777216   ;;  %v357_v28 = vld [vmem:[#allocation8 + $0xa0] sm:$0xff]  ;;  %v358_v42 = vld [vmem:[#allocation8 + $0xa8] sm:$0xff]  ;;  %v2031_v14 = vrot.slane %v2028_v1, 1 }
 0x46c   :  { %4382 = vmatpush1.bf16.msra.mxu1 %v6078_v11  ;;  %v2039_v59 = vpop.permute.xlu0 %2038  ;;  %vm7206_vm12 = vcmask 769024   ;;  %v359_v34 = vld [vmem:[#allocation8 + $0xb0] sm:$0xff]  ;;  %v360_v10 = vld [vmem:[#allocation8 + $0xb8] sm:$0xff]  ;;  %vm7212_vm2 = vcmask 523264  }
 0x46d   :  { %4383 = vmatprep.subr.bf16.mxu1 %v7201_v58  ;;  %v2011_v47 = vsel %vm374_vm0, %v2009_v17, %v2010_v29  ;;  %v2019_v41 = vpop.permute.xlu1 %2018  ;;  %v6096_v29 = vpack.c.bf16 %v358_v42, %v357_v28 }
 0x46e   :  { %v2012_v57 = vsel %vm7205_vm7, %v2006_v0, %v2011_v47  ;;  %v2021_v3 = vrot.slane %v2019_v41, 1  ;;  %vm7208_vm7 = vcmask 760832  }
 0x46f   :  { %2014 = vst [vmem:[#allocation2 + $0x6] ss:$8 sm:$0xf] %v2012_v57  ;;  %2015 = vst [vmem:[#allocation2 + $0x6] ss:$8 sm:$0xf0] %v2012_v57 }
 0x470   :  { %4385 = vmatpush1.bf16.msra.mxu1 %v6084_v2  ;;  %v2022_v36 = vsel %vm374_vm0, %v2020_v22, %v2021_v3  ;;  %v2050_v17 = vpop.permute.xlu0 %2049  ;;  %7207 = vst [vmem:[#allocation112_spill] sm:$0xff] %v6096_v29  ;;  %v2042_v57 = vrot.slane %v2039_v59, 1 }
 0x471   :  { %4386 = vmatprep.subr.bf16.mxu1 %v7201_v58  ;;  %v2023_v46 = vsel %vm7206_vm12, %v2017_v9, %v2022_v36  ;;  %v2030_v39 = vpop.permute.xlu1 %2029  ;;  %v6102_v36 = vpack.c.bf16 %v360_v10, %v359_v34  ;;  %v2053_v42 = vrot.slane %v2050_v17, 1  ;;  %vm7210_vm12 = vcmask 752640  }
 0x472   :  { %2025 = vst [vmem:[#allocation2 + $0x7] ss:$8 sm:$0xf] %v2023_v46  ;;  %2026 = vst [vmem:[#allocation2 + $0x7] ss:$8 sm:$0xf0] %v2023_v46 }
 0x473   :  { %v2032_v0 = vrot.slane %v2030_v39, 1  ;;  %7209 = vst [vmem:[#allocation113_spill] sm:$0xff] %v6102_v36 }
 0x474   :  { %4388 = vmatpush1.bf16.msra.mxu1 %v6090_v60  ;;  %v2061_v22 = vpop.permute.xlu0 %2060 }
 0x475   :  { %4389 = vmatprep.subr.bf16.mxu1 %v7201_v58  ;;  %v2033_v47 = vsel %vm374_vm0, %v2031_v14, %v2032_v0  ;;  %v2041_v3 = vpop.permute.xlu1 %2040  ;;  %v7211_v0 = vmov 0.0   ;;  %v2064_v10 = vrot.slane %v2061_v22, 1 }
 0x476   :  { %v2034_v41 = vsel %vm7208_vm7, %v2028_v1, %v2033_v47  ;;  %v2043_v9 = vrot.slane %v2041_v3, 1  ;;  %v361_v47 = vld [vmem:[#allocation8 + $0xc0] sm:$0xf]  ;;  %vm7089_vm7 = vcmask 1043456  }
 0x477   :  { %2036 = vst [vmem:[#allocation2 + $0x40] ss:$8 sm:$0xf] %v2034_v41  ;;  %2037 = vst [vmem:[#allocation2 + $0x40] ss:$8 sm:$0xf0] %v2034_v41 }
 0x478   :  { %4391 = vmatpush1.bf16.msra.mxu1 %v6096_v29  ;;  %v2044_v28 = vsel %vm374_vm0, %v2042_v57, %v2043_v9  ;;  %v2072_v46 = vpop.permute.xlu0 %2071 }
 0x479   :  { %4392 = vmatprep.subr.bf16.mxu1 %v7201_v58  ;;  %v2045_v14 = vsel %vm7210_vm12, %v2039_v59, %v2044_v28  ;;  %v2052_v39 = vpop.permute.xlu1 %2051  ;;  %v2075_v28 = vrot.slane %v2072_v46, 1  ;;  %vm7213_vm12 = vcmask 515072  }
 0x47a   :  { %2047 = vst [vmem:[#allocation2 + $0x41] ss:$8 sm:$0xf] %v2045_v14  ;;  %2048 = vst [vmem:[#allocation2 + $0x41] ss:$8 sm:$0xf0] %v2045_v14 }
 0x47b   :  { %v2054_v1 = vrot.slane %v2052_v39, 1 }
 0x47c   :  { %4394 = vmatpush1.bf16.msra.mxu1 %v6102_v36  ;;  %v2083_v41 = vpop.permute.xlu0 %2082 }
 0x47d   :  { %1773 = vmatprep.subr.mxu1 %v7211_v0  ;;  %v2055_v34 = vsel %vm374_vm0, %v2053_v42, %v2054_v1  ;;  %v2063_v3 = vpop.permute.xlu1 %2062  ;;  %v2086_v29 = vrot.slane %v2083_v41, 1 }
 0x47e   :  { %v2056_v57 = vsel %vm7212_vm2, %v2050_v17, %v2055_v34  ;;  %v2065_v59 = vrot.slane %v2063_v3, 1  ;;  %vm7214_vm2 = vcmask 506880  }
 0x47f   :  { %2058 = vst [vmem:[#allocation2 + $0x42] ss:$8 sm:$0xf] %v2056_v57  ;;  %2059 = vst [vmem:[#allocation2 + $0x42] ss:$8 sm:$0xf0] %v2056_v57 }
 0x480   :  { %3859 = vmatpush1.msk.msra.mxu1 %vm7089_vm7, %v361_v47  ;;  %v2066_v9 = vsel %vm374_vm0, %v2064_v10, %v2065_v59  ;;  %v2094_v14 = vpop.permute.xlu0 %2093  ;;  %vm7215_vm7 = vcmask 498688  }
 0x481   :  { %v2067_v39 = vsel %vm7213_vm12, %v2061_v22, %v2066_v9  ;;  %v2074_v36 = vpop.permute.xlu1 %2073  ;;  %v2097_v3 = vrot.slane %v2094_v14, 1  ;;  %vm7216_vm12 = vcmask 490496  }
 0x482   :  { %2069 = vst [vmem:[#allocation2 + $0x43] ss:$8 sm:$0xf] %v2067_v39  ;;  %2070 = vst [vmem:[#allocation2 + $0x43] ss:$8 sm:$0xf0] %v2067_v39 }
 0x483   :  { %v2076_v42 = vrot.slane %v2074_v36, 1 }
 0x484   :  { %v2105_v17 = vpop.permute.xlu0 %2104 }
 0x485   :  { %v2077_v1 = vsel %vm374_vm0, %v2075_v28, %v2076_v42  ;;  %v2085_v57 = vpop.permute.xlu1 %2084  ;;  %v2108_v39 = vrot.slane %v2105_v17, 1 }
 0x486   :  { %v2078_v34 = vsel %vm7214_vm2, %v2072_v46, %v2077_v1  ;;  %v2087_v47 = vrot.slane %v2085_v57, 1  ;;  %vm7217_vm2 = vcmask 261120  }
 0x487   :  { %2080 = vst [vmem:[#allocation2 + $0x44] ss:$8 sm:$0xf] %v2078_v34  ;;  %2081 = vst [vmem:[#allocation2 + $0x44] ss:$8 sm:$0xf0] %v2078_v34 }
 0x488   :  { %v2088_v10 = vsel %vm374_vm0, %v2086_v29, %v2087_v47  ;;  %v2116_v59 = vpop.permute.xlu0 %2115 }
 0x489   :  { %v2089_v22 = vsel %vm7215_vm7, %v2083_v41, %v2088_v10  ;;  %v2096_v9 = vpop.permute.xlu1 %2095  ;;  %v2119_v57 = vrot.slane %v2116_v59, 1  ;;  %vm7218_vm7 = vcmask 252928  }
 0x48a   :  { %2091 = vst [vmem:[#allocation2 + $0x45] ss:$8 sm:$0xf] %v2089_v22  ;;  %2092 = vst [vmem:[#allocation2 + $0x45] ss:$8 sm:$0xf0] %v2089_v22 }
 0x48b   :  { %v2098_v36 = vrot.slane %v2096_v9, 1 }
 0x48c   :  { %v2127_v1 = vpop.permute.xlu0 %2126 }
 0x48d   :  { %v2099_v28 = vsel %vm374_vm0, %v2097_v3, %v2098_v36  ;;  %v2107_v46 = vpop.permute.xlu1 %2106  ;;  %v2130_v9 = vrot.slane %v2127_v1, 1 }
 0x48e   :  { %v2100_v42 = vsel %vm7216_vm12, %v2094_v14, %v2099_v28  ;;  %v2109_v34 = vrot.slane %v2107_v46, 1  ;;  %vm7219_vm12 = vcmask 244736  }
 0x48f   :  { %2102 = vst [vmem:[#allocation2 + $0x46] ss:$8 sm:$0xf] %v2100_v42  ;;  %2103 = vst [vmem:[#allocation2 + $0x46] ss:$8 sm:$0xf0] %v2100_v42 }
 0x490   :  { %v2110_v29 = vsel %vm374_vm0, %v2108_v39, %v2109_v34  ;;  %v2138_v22 = vpop.permute.xlu0 %2137  ;;  %v2194_v42 = vld [vmem:[#allocation2 + $0x8] sm:$0xff] }
 0x491   :  { %v2111_v47 = vsel %vm7217_vm2, %v2105_v17, %v2110_v29  ;;  %v2118_v41 = vpop.permute.xlu1 %2117  ;;  %v2141_v46 = vrot.slane %v2138_v22, 1  ;;  %vm7220_vm2 = vcmask 236544  }
 0x492   :  { %2113 = vst [vmem:[#allocation2 + $0x47] ss:$8 sm:$0xf] %v2111_v47  ;;  %2114 = vst [vmem:[#allocation2 + $0x47] ss:$8 sm:$0xf0] %v2111_v47 }
 0x493   :  { %v2120_v10 = vrot.slane %v2118_v41, 1 }
 0x494   :  { %v2149_v29 = vpop.permute.xlu0 %2148 }
 0x495   :  { %v2121_v3 = vsel %vm374_vm0, %v2119_v57, %v2120_v10  ;;  %v2129_v36 = vpop.permute.xlu1 %2128 }
 0x496   :  { %v2122_v14 = vsel %vm7218_vm7, %v2116_v59, %v2121_v3  ;;  %v2131_v28 = vrot.slane %v2129_v36, 1  ;;  %v2152_v59 = vrot.slane %v2149_v29, 1  ;;  %vm7221_vm7 = vcmask 228352  }
 0x497   :  { %2124 = vst [vmem:[#allocation2 + $0x80] ss:$8 sm:$0xf] %v2122_v14  ;;  %2125 = vst [vmem:[#allocation2 + $0x80] ss:$8 sm:$0xf0] %v2122_v14 }
 0x498   :  { %v2132_v39 = vsel %vm374_vm0, %v2130_v9, %v2131_v28 }
 0x499   :  { %v2133_v17 = vsel %vm7219_vm12, %v2127_v1, %v2132_v39  ;;  %v2140_v34 = vpop.permute.xlu1 %2139  ;;  %v2202_v47 = vld [vmem:[#allocation2 + $0x48] sm:$0xff] }
 0x49a   :  { %2135 = vst [vmem:[#allocation2 + $0x81] ss:$8 sm:$0xf] %v2133_v17  ;;  %2136 = vst [vmem:[#allocation2 + $0x81] ss:$8 sm:$0xf0] %v2133_v17  ;;  %v4395_v57 = vpack.c.bf16 %v2202_v47, %v2194_v42 }
 0x49b   :  { %v2142_v41 = vrot.slane %v2140_v34, 1 }
 0x49c   :  { %4396 = vmatprep.subr.bf16.mxu1 %v4395_v57 }
 0x49d   :  { %v2143_v10 = vsel %vm374_vm0, %v2141_v46, %v2142_v41  ;;  %v2151_v14 = vpop.permute.xlu1 %2150  ;;  %v2193_v41 = vld [vmem:[#allocation2] sm:$0xff] }
 0x49e   :  { %v2144_v3 = vsel %vm7220_vm2, %v2138_v22, %v2143_v10  ;;  %v2153_v9 = vrot.slane %v2151_v14, 1  ;;  %v2218_v10 = vld [vmem:[#allocation2 + $0xc8] sm:$0x1] }
 0x49f   :  { %2146 = vst [vmem:[#allocation2 + $0x82] ss:$8 sm:$0xf] %v2144_v3  ;;  %2147 = vst [vmem:[#allocation2 + $0x82] ss:$8 sm:$0xf0] %v2144_v3 }
 0x4a0   :  { %v2154_v36 = vsel %vm374_vm0, %v2152_v59, %v2153_v9  ;;  %vm7222_vm0 = vcmask 203776  }
 0x4a1   :  { %v2155_v1 = vsel %vm7221_vm7, %v2149_v29, %v2154_v36  ;;  %v2201_v29 = vld [vmem:[#allocation2 + $0x40] sm:$0xff]  ;;  %vm7223_vm12 = vmmov %vm7222_vm0 }
 0x4a2   :  { %2157 = vst [vmem:[#allocation2 + $0x83] ss:$8 sm:$0xf] %v2155_v1  ;;  %2158 = vst [vmem:[#allocation2 + $0x83] ss:$8 sm:$0xf0] %v2155_v1  ;;  %v4397_v14 = vpack.c.bf16 %v2201_v29, %v2193_v41 }
 0x4a3   :  { %v2217_v1 = vld [vmem:[#allocation2 + $0xc0] sm:$0x1]  ;;  %v2220_v29 = vld [vmem:[#allocation2 + $0xd8] sm:$0x1]  ;;  %vm7224_vm2 = vmmov %vm7222_vm0 }
 0x4a4   :  { %vm7225_vm7 = vmmov %vm7222_vm0 }
 0x4a9   :  { %v2210_v57 = vld [vmem:[#allocation2 + $0x88] sm:$0xff]  ;;  %v2209_v36 = vld [vmem:[#allocation2 + $0x80] sm:$0xff]  ;;  %v2212_v41 = vld [vmem:[#allocation2 + $0x98] sm:$0xff] }
 0x4aa   :  { %v4399_v9 = vpack.c.bf16 %v2218_v10, %v2210_v57  ;;  %v4989_v10 = vld [vmem:[%s6892_s1] sm:$0x3f]  ;;  %s7319_s1 = smov 111  }
 0x520   :  { %v1700_v28 = vpop.f32.mrb[2].mxu1 }
 0x521   :  { %v1701_v39 = vadd.f32 %v1700_v28, %v6010_v5  ;;  %v1702_v42 = vpop.f32.mrb[3].mxu1  ;;  %v2196_v28 = vld [vmem:[#allocation2 + $0x18] sm:$0xff] }
 0x522   :  { %v1703_v46 = vadd.f32 %v1702_v42, %v6010_v5 }
 0x524   :  { %4949 = vtanh.f32 %v1703_v46  ;;  %v1706_v17 = vpop.f32.mrb[4].mxu1 }
 0x525   :  { %4951 = vtanh.f32 %v1701_v39  ;;  %v1707_v22 = vadd.f32 %v1706_v17, %v6031_v33  ;;  %v1708_v34 = vpop.f32.mrb[5].mxu1  ;;  %v2204_v39 = vld [vmem:[#allocation2 + $0x58] sm:$0xff]  ;;  %v4402_v17 = vpack.c.bf16 %v2217_v1, %v2209_v36  ;;  %v2206_v36 = vld [vmem:[#allocation2 + $0x68] sm:$0xff] }
 0x526   :  { %v1709_v47 = vadd.f32 %v1708_v34, %v6031_v33  ;;  %v2195_v34 = vld [vmem:[#allocation2 + $0x10] sm:$0xff] }
 0x528   :  { %4953 = vtanh.f32 %v1709_v47  ;;  %v2203_v47 = vld [vmem:[#allocation2 + $0x50] sm:$0xff] }
 0x529   :  { %4955 = vtanh.f32 %v1707_v22  ;;  %v4405_v22 = vpack.c.bf16 %v2204_v39, %v2196_v28  ;;  %v4407_v57 = vpack.c.bf16 %v2203_v47, %v2195_v34  ;;  %v2197_v39 = vld [vmem:[#allocation2 + $0x20] sm:$0xff] }
 0x52a   :  { %v2213_v47 = vld [vmem:[#allocation2 + $0xa0] sm:$0xff] }
 0x52e   :  { %v4950_v59 = vpop.eup %4949 }
 0x52f   :  { %v4952_v3 = vpop.eup %4951  ;;  %3860 = vmatprep.mubr.msk.f32.mxu1 %vm1567_vm5, %v4950_v59  ;;  %v4409_v59 = vpack.c.bf16 %v2220_v29, %v2212_v41  ;;  %v2221_v41 = vld [vmem:[#allocation2 + $0xe0] sm:$0x1]  ;;  %v2200_v29 = vld [vmem:[#allocation2 + $0x38] sm:$0xff] }
 0x530   :  { %1790 = vmatmul.mubr.f32.vlgmr.msra.gmra.mrb[6].mxu1 %v4952_v3  ;;  %v2211_v3 = vld [vmem:[#allocation2 + $0x90] sm:$0xff] }
 0x531   :  { %4398 = vmatpush1.bf16.msra.mxu1 %v4397_v14  ;;  %v2219_v14 = vld [vmem:[#allocation2 + $0xd0] sm:$0x1] }
 0x532   :  { %v4954_v42 = vpop.eup %4953  ;;  %4401 = vmatprep.subr.msk.bf16.mxu1 %vm5340_vm11, %v4399_v9  ;;  %v2198_v9 = vld [vmem:[#allocation2 + $0x28] sm:$0xff]  ;;  %v4412_v1 = vpack.c.bf16 %v2219_v14, %v2211_v3  ;;  %v2199_v14 = vld [vmem:[#allocation2 + $0x30] sm:$0xff] }
 0x533   :  { %v4956_v46 = vpop.eup %4955  ;;  %3861 = vmatprep.mubr.msk.f32.mxu1 %vm1567_vm5, %v4954_v42  ;;  %v4415_v28 = vpack.c.bf16 %v2206_v36, %v2198_v9  ;;  %v2205_v42 = vld [vmem:[#allocation2 + $0x60] sm:$0xff]  ;;  %v2207_v9 = vld [vmem:[#allocation2 + $0x70] sm:$0xff]  ;;  %v2216_v36 = vld [vmem:[#allocation2 + $0xb8] sm:$0xff] }
 0x534   :  { %1795 = vmatmul.mubr.f32.gmra.mrb[8].mxu1 %v4956_v46  ;;  %v2214_v46 = vld [vmem:[#allocation2 + $0xa8] sm:$0xff] }
 0x535   :  { %4404 = vmatpush1.bf16.msk.msra.mxu1 %vm5340_vm11, %v4402_v17  ;;  %2313 = vmatprep.mubr.f32.mxu1 %v7211_v0  ;;  %v2222_v17 = vld [vmem:[#allocation2 + $0xe8] sm:$0x1] }
 0x536   :  { %4406 = vmatprep.subr.bf16.mxu1 %v4405_v22  ;;  %v4417_v22 = vpack.c.bf16 %v2205_v42, %v2197_v39  ;;  %v4419_v34 = vpack.c.bf16 %v2222_v17, %v2214_v46  ;;  %v2215_v42 = vld [vmem:[#allocation2 + $0xb0] sm:$0xff] }
 0x537   :  { %v2223_v46 = vld [vmem:[#allocation2 + $0xf0] sm:$0x1] }
 0x538   :  { %3874 = vmatmul.mubr.msk.f32.vlgmr.msra.gmra.mrb[10].mxu1 %vm7222_vm0, %v4989_v10  ;;  %v4432_v17 = vpack.c.bf16 %v2223_v46, %v2215_v42  ;;  %v7256_v46 = vld [vmem:[#allocation44_spill] sm:$0xff]  ;;  %vm7334_vm0 = vcmask 1014784  }
 0x539   :  { %4408 = vmatpush1.bf16.msra.mxu1 %v4407_v57  ;;  %2384 = vmatprep.mubr.f32.mxu1 %v7211_v0  ;;  %v2208_v57 = vld [vmem:[#allocation2 + $0x78] sm:$0xff] }
 0x53a   :  { %4411 = vmatprep.subr.msk.bf16.mxu1 %vm5340_vm11, %v4409_v59  ;;  %v4422_v59 = vpack.c.bf16 %v2221_v41, %v2213_v47  ;;  %v4425_v3 = vpack.c.bf16 %v2208_v57, %v2200_v29  ;;  %v7247_v47 = vld [vmem:[#allocation35_spill] sm:$0xff]  ;;  %v7248_v29 = vld [vmem:[#allocation36_spill] sm:$0xff] }
 0x53d   :  { %4414 = vmatpush1.bf16.msk.msra.mxu1 %vm5340_vm11, %v4412_v1  ;;  %v2224_v1 = vld [vmem:[#allocation2 + $0xf8] sm:$0x1] }
 0x53e   :  { %4416 = vmatprep.subr.bf16.mxu1 %v4415_v28  ;;  %v4427_v28 = vpack.c.bf16 %v2207_v9, %v2199_v14  ;;  %v4429_v39 = vpack.c.bf16 %v2224_v1, %v2216_v36  ;;  %v7251_v14 = vld [vmem:[#allocation39_spill] sm:$0xff]  ;;  %v7252_v9 = vld [vmem:[#allocation40_spill] sm:$0xff]  ;;  %v7253_v36 = vld [vmem:[#allocation41_spill] sm:$0xff] }
 0x53f   :  { %v7254_v1 = vld [vmem:[#allocation42_spill] sm:$0xff] }
 0x540   :  { %3877 = vmatmul.mubr.msk.f32.vlgmr.msra.gmra.mrb[12].mxu1 %vm7223_vm12, %v4989_v10  ;;  %vm7335_vm12 = vcmask 908288  }
 0x541   :  { %4418 = vmatpush1.bf16.msra.mxu1 %v4417_v22  ;;  %2455 = vmatprep.mubr.f32.mxu1 %v7211_v0  ;;  %v7245_v22 = vld [vmem:[#allocation33_spill] sm:$0xff] }
 0x542   :  { %4421 = vmatprep.subr.msk.bf16.mxu1 %vm5340_vm11, %v4419_v34  ;;  %v7246_v34 = vld [vmem:[#allocation34_spill] sm:$0xff] }
 0x545   :  { %4424 = vmatpush1.bf16.msk.msra.mxu1 %vm5340_vm11, %v4422_v59  ;;  %v7249_v59 = vld [vmem:[#allocation37_spill] sm:$0xff] }
 0x546   :  { %4426 = vmatprep.subr.bf16.mxu1 %v4425_v3  ;;  %v7250_v3 = vld [vmem:[#allocation38_spill] sm:$0xff] }
 0x548   :  { %3880 = vmatmul.mubr.msk.f32.vlgmr.msra.gmra.mrb[14].mxu1 %vm7224_vm2, %v4989_v10  ;;  %vm7336_vm2 = vcmask 801792  }
 0x549   :  { %4428 = vmatpush1.bf16.msra.mxu1 %v4427_v28  ;;  %2526 = vmatprep.mubr.f32.mxu1 %v7211_v0  ;;  %v7255_v28 = vld [vmem:[#allocation43_spill] sm:$0xff] }
 0x54a   :  { %4431 = vmatprep.subr.msk.bf16.mxu1 %vm5340_vm11, %v4429_v39 }
 0x54d   :  { %4434 = vmatpush1.bf16.msk.msra.mxu1 %vm5340_vm11, %v4432_v17  ;;  %vm1800_vm11 = vcmask 196608   ;;  %v7257_v17 = vld [vmem:[#allocation45_spill] sm:$0xff] }
 0x54e   :  { %4436 = vmatprep.subr.bf16.mxu1 %v5366_v63 }
 0x550   :  { %3883 = vmatmul.mubr.msk.f32.vlgmr.msra.gmra.mrb[16].mxu1 %vm7225_vm7, %v4989_v10  ;;  %v7244_v10 = vld [vmem:[#allocation32_spill] sm:$0xff]  ;;  %vm7337_vm7 = vcmask 695296  }
 0x551   :  { %4438 = vmatpush1.bf16.msra.mxu1 %v5370_v6 }
 0x552   :  { %4440 = vmatprep.subr.bf16.mxu1 %v5373_v7 }
 0x555   :  { %4442 = vmatpush1.bf16.msra.mxu1 %v5377_v12 }
 0x556   :  { %4444 = vmatprep.subr.bf16.mxu1 %v5380_v13 }
 0x559   :  { %4446 = vmatpush1.bf16.msra.mxu1 %v5383_v18 }
 0x55a   :  { %4448 = vmatprep.subr.bf16.mxu1 %v5386_v19 }
 0x55d   :  { %4450 = vmatpush1.bf16.msra.mxu1 %v5389_v24 }
 0x55e   :  { %4452 = vmatprep.subr.bf16.mxu1 %v5392_v26 }
 0x561   :  { %4454 = vmatpush1.bf16.msra.mxu1 %v5395_v31 }
 0x562   :  { %4456 = vmatprep.subr.bf16.mxu1 %v5398_v32 }
 0x565   :  { %4458 = vmatpush1.bf16.msra.mxu1 %v5401_v37 }
 0x566   :  { %4460 = vmatprep.subr.bf16.mxu1 %v5404_v38 }
 0x569   :  { %4462 = vmatpush1.bf16.msra.mxu1 %v5407_v43 }
 0x56a   :  { %4464 = vmatprep.subr.bf16.mxu1 %v5410_v44  ;;  %v7226_v44 = vld [vmem:[#allocation14_spill] sm:$0xff] }
 0x56d   :  { %4466 = vmatpush1.bf16.msra.mxu1 %v5413_v49 }
 0x56e   :  { %4468 = vmatprep.subr.bf16.mxu1 %v5416_v50  ;;  %v7227_v50 = vld [vmem:[#allocation15_spill] sm:$0xff] }
 0x571   :  { %4470 = vmatpush1.bf16.msra.mxu1 %v5419_v55 }
 0x572   :  { %4472 = vmatprep.subr.bf16.mxu1 %v5422_v56 }
 0x575   :  { %4474 = vmatpush1.bf16.msra.mxu1 %v5425_v61  ;;  %v7228_v61 = vld [vmem:[#allocation16_spill] sm:$0xff] }
 0x576   :  { %4476 = vmatprep.subr.bf16.mxu1 %v5428_v62  ;;  %v7229_v62 = vld [vmem:[#allocation17_spill] sm:$0xff] }
 0x579   :  { %4478 = vmatpush1.bf16.msra.mxu1 %v5431_v4  ;;  %v7230_v4 = vld [vmem:[#allocation18_spill] sm:$0xff] }
 0x57a   :  { %4480 = vmatprep.subr.bf16.mxu1 %v5434_v8  ;;  %v7231_v8 = vld [vmem:[#allocation19_spill] sm:$0xff] }
 0x57d   :  { %4482 = vmatpush1.bf16.msra.mxu1 %v5437_v15  ;;  %v7232_v15 = vld [vmem:[#allocation20_spill] sm:$0xff] }
 0x57e   :  { %4484 = vmatprep.subr.bf16.mxu1 %v5440_v16  ;;  %v7233_v16 = vld [vmem:[#allocation21_spill] sm:$0xff] }
 0x581   :  { %4486 = vmatpush1.bf16.msra.mxu1 %v5444_v21  ;;  %v7234_v21 = vld [vmem:[#allocation22_spill] sm:$0xff] }
 0x582   :  { %4488 = vmatprep.subr.bf16.mxu1 %v5447_v27  ;;  %v7235_v27 = vld [vmem:[#allocation23_spill] sm:$0xff] }
 0x585   :  { %4490 = vmatpush1.bf16.msra.mxu1 %v5449_v30  ;;  %v7236_v30 = vld [vmem:[#allocation24_spill] sm:$0xff] }
 0x586   :  { %4492 = vmatprep.subr.bf16.mxu1 %v5453_v35  ;;  %v7237_v35 = vld [vmem:[#allocation25_spill] sm:$0xff] }
 0x589   :  { %4494 = vmatpush1.bf16.msra.mxu1 %v5455_v40  ;;  %v7238_v40 = vld [vmem:[#allocation26_spill] sm:$0xff] }
 0x58a   :  { %4496 = vmatprep.subr.bf16.mxu1 %v5459_v45  ;;  %v7239_v45 = vld [vmem:[#allocation27_spill] sm:$0xff] }
 0x58d   :  { %4498 = vmatpush1.bf16.msra.mxu1 %v5461_v48  ;;  %v7240_v48 = vld [vmem:[#allocation28_spill] sm:$0xff] }
 0x58e   :  { %4500 = vmatprep.subr.bf16.mxu1 %v5465_v53  ;;  %v7241_v53 = vld [vmem:[#allocation29_spill] sm:$0xff] }
 0x603   :  { %v6196_v25 = vpop.f32.mrb[6].mxu1 }
 0x604   :  { %1801 = vst.msk [vmem:[#allocation4] sm:$0x1] %vm1800_vm11, %v6196_v25  ;;  %v1793_v63 = vpop.f32.mrb[7].mxu1 }
 0x605   :  { %v7258_v63 = vld [vmem:[#allocation46_spill] sm:$0xff] }
 0x607   :  { %v6200_v6 = vpop.f32.mrb[8].mxu1 }
 0x608   :  { %v1798_v7 = vpop.f32.mrb[9].mxu1 }
 0x609   :  { %v7259_v7 = vld [vmem:[#allocation47_spill] sm:$0xff] }
 0x60b   :  { %v2315_v12 = vpop.f32.mrb[10].mxu1 }
 0x60c   :  { %v2316_v13 = vadd.f32 %v2315_v12, %v5468_v54  ;;  %v2317_v18 = vpop.f32.mrb[11].mxu1  ;;  %v7260_v12 = vld [vmem:[#allocation48_spill] sm:$0xff] }
 0x60d   :  { %v2318_v19 = vadd.f32 %v2317_v18, %v5468_v54  ;;  %v7262_v18 = vld [vmem:[#allocation50_spill] sm:$0xff] }
 0x60f   :  { %4957 = vtanh.f32 %v2318_v19  ;;  %v7263_v19 = vld [vmem:[#allocation51_spill] sm:$0xff] }
 0x610   :  { %4959 = vtanh.f32 %v2316_v13  ;;  %v7261_v13 = vld [vmem:[#allocation49_spill] sm:$0xff] }
 0x613   :  { %v2386_v24 = vpop.f32.mrb[12].mxu1 }
 0x614   :  { %v2388_v26 = vpop.f32.mrb[13].mxu1  ;;  %v2387_v41 = vadd.f32 %v2386_v24, %v5468_v54  ;;  %v7264_v24 = vld [vmem:[#allocation52_spill] sm:$0xff] }
 0x615   :  { %v2389_v31 = vadd.f32 %v2388_v26, %v5468_v54  ;;  %v7265_v26 = vld [vmem:[#allocation53_spill] sm:$0xff] }
 0x617   :  { %4961 = vtanh.f32 %v2389_v31  ;;  %v7266_v31 = vld [vmem:[#allocation54_spill] sm:$0xff] }
 0x618   :  { %4963 = vtanh.f32 %v2387_v41  ;;  %v7291_v41 = vld [vmem:[#allocation79_spill] sm:$0xff] }
 0x619   :  { %v4958_v32 = vpop.eup %4957 }
 0x61a   :  { %v4960_v37 = vpop.eup %4959  ;;  %2605 = vmatprep.mubr.f32.mxu1 %v4958_v32  ;;  %v7267_v32 = vld [vmem:[#allocation55_spill] sm:$0xff] }
 0x61b   :  { %v6205_v38 = vpop.f32.mrb[14].mxu1  ;;  %2606 = vmatmul.mubr.f32.vlgmr.msra.gmra.mrb[18].mxu1 %v4960_v37  ;;  %v7268_v37 = vld [vmem:[#allocation56_spill] sm:$0xff] }
 0x61c   :  { %v2459_v43 = vpop.f32.mrb[15].mxu1  ;;  %4502 = vmatpush1.bf16.msra.mxu1 %v5479_v20  ;;  %v7242_v20 = vld [vmem:[#allocation30_spill] sm:$0xff] }
 0x61d   :  { %4504 = vmatprep.subr.bf16.mxu1 %v5481_v23  ;;  %v7243_v23 = vld [vmem:[#allocation31_spill] sm:$0xff]  ;;  %v2460_v57 = vadd.f32 %v2459_v43, %v5468_v54  ;;  %v7269_v43 = vld [vmem:[#allocation57_spill] sm:$0xff] }
 0x61f   :  { %4965 = vtanh.f32 %v2460_v57  ;;  %v7293_v57 = vld [vmem:[#allocation81_spill] sm:$0xff] }
 0x620   :  { %4506 = vmatpush1.bf16.msra.mxu1 %v7226_v44  ;;  %v7270_v44 = vld [vmem:[#allocation58_spill] sm:$0xff] }
 0x621   :  { %v4962_v49 = vpop.eup %4961  ;;  %4508 = vmatprep.subr.bf16.mxu1 %v7227_v50  ;;  %v7272_v50 = vld [vmem:[#allocation60_spill] sm:$0xff] }
 0x622   :  { %2676 = vmatprep.mubr.f32.mxu1 %v4962_v49  ;;  %v4964_v39 = vpop.eup %4963  ;;  %v7271_v49 = vld [vmem:[#allocation59_spill] sm:$0xff] }
 0x623   :  { %v6211_v55 = vpop.f32.mrb[16].mxu1 }
 0x624   :  { %v6213_v56 = vpop.f32.mrb[17].mxu1  ;;  %4510 = vmatpush1.bf16.msra.mxu1 %v7228_v61  ;;  %v7273_v61 = vld [vmem:[#allocation61_spill] sm:$0xff] }
 0x625   :  { %4512 = vmatprep.subr.bf16.mxu1 %v7229_v62  ;;  %v7274_v62 = vld [vmem:[#allocation62_spill] sm:$0xff] }
 0x628   :  { %4514 = vmatpush1.bf16.msra.mxu1 %v7230_v4  ;;  %v7275_v4 = vld [vmem:[#allocation63_spill] sm:$0xff] }
 0x629   :  { %4516 = vmatprep.subr.bf16.mxu1 %v7231_v8  ;;  %v4966_v42 = vpop.eup %4965  ;;  %v7276_v8 = vld [vmem:[#allocation64_spill] sm:$0xff] }
 0x62c   :  { %4518 = vmatpush1.bf16.msra.mxu1 %v7232_v15  ;;  %v7277_v15 = vld [vmem:[#allocation65_spill] sm:$0xff] }
 0x62d   :  { %4520 = vmatprep.subr.bf16.mxu1 %v7233_v16  ;;  %v7278_v16 = vld [vmem:[#allocation66_spill] sm:$0xff] }
 0x630   :  { %4522 = vmatpush1.bf16.msra.mxu1 %v7234_v21  ;;  %v7279_v21 = vld [vmem:[#allocation67_spill] sm:$0xff] }
 0x631   :  { %4524 = vmatprep.subr.bf16.mxu1 %v7235_v27  ;;  %v2458_v27 = vadd.f32 %v6205_v38, %v5468_v54  ;;  %v7287_v38 = vld [vmem:[#allocation75_spill] sm:$0xff] }
 0x633   :  { %4967 = vtanh.f32 %v2458_v27  ;;  %v5114_v27 = vmov 1983009808  }
 0x634   :  { %4526 = vmatpush1.bf16.msra.mxu1 %v7236_v30  ;;  %v7280_v30 = vld [vmem:[#allocation68_spill] sm:$0xff] }
 0x635   :  { %4528 = vmatprep.subr.bf16.mxu1 %v7237_v35  ;;  %v2531_v35 = vadd.f32 %v6213_v56, %v5468_v54  ;;  %v7288_v56 = vld [vmem:[#allocation76_spill] sm:$0xff] }
 0x637   :  { %4969 = vtanh.f32 %v2531_v35  ;;  %v1806_v35 = vlaneseq }
 0x638   :  { %4530 = vmatpush1.bf16.msra.mxu1 %v7238_v40  ;;  %v7281_v40 = vld [vmem:[#allocation69_spill] sm:$0xff] }
 0x639   :  { %4532 = vmatprep.subr.bf16.mxu1 %v7239_v45  ;;  %v7282_v45 = vld [vmem:[#allocation70_spill] sm:$0xff] }
 0x63c   :  { %4534 = vmatpush1.bf16.msra.mxu1 %v7240_v48  ;;  %v7283_v48 = vld [vmem:[#allocation71_spill] sm:$0xff] }
 0x63d   :  { %4536 = vmatprep.subr.bf16.mxu1 %v7241_v53  ;;  %v7284_v53 = vld [vmem:[#allocation72_spill] sm:$0xff] }
 0x640   :  { %4538 = vmatpush1.bf16.msra.mxu1 %v7242_v20  ;;  %v7285_v20 = vld [vmem:[#allocation73_spill] sm:$0xff] }
 0x641   :  { %4540 = vmatprep.subr.bf16.mxu1 %v7243_v23  ;;  %v7286_v23 = vld [vmem:[#allocation74_spill] sm:$0xff] }
 0x644   :  { %4542 = vmatpush1.bf16.msra.mxu1 %v7244_v10  ;;  %v4968_v10 = vpop.eup %4967 }
 0x645   :  { %4544 = vmatprep.subr.bf16.mxu1 %v7245_v22  ;;  %v4970_v22 = vpop.eup %4969 }
 0x648   :  { %4546 = vmatpush1.bf16.msra.mxu1 %v7246_v34  ;;  %v7289_v34 = vld [vmem:[#allocation77_spill] sm:$0xff] }
 0x649   :  { %4548 = vmatprep.subr.bf16.mxu1 %v7247_v47  ;;  %v7290_v47 = vld [vmem:[#allocation78_spill] sm:$0xff] }
 0x64c   :  { %4550 = vmatpush1.bf16.msra.mxu1 %v7248_v29  ;;  %v7292_v29 = vld [vmem:[#allocation80_spill] sm:$0xff] }
 0x64d   :  { %4552 = vmatprep.subr.bf16.mxu1 %v7249_v59  ;;  %v7294_v59 = vld [vmem:[#allocation82_spill] sm:$0xff] }
 0x650   :  { %4554 = vmatpush1.bf16.msra.mxu1 %v7250_v3  ;;  %v7295_v3 = vld [vmem:[#allocation83_spill] sm:$0xff] }
 0x651   :  { %4556 = vmatprep.subr.bf16.mxu1 %v7251_v14  ;;  %v7296_v14 = vld [vmem:[#allocation84_spill] sm:$0xff] }
 0x654   :  { %4558 = vmatpush1.bf16.msra.mxu1 %v7252_v9  ;;  %v7297_v9 = vld [vmem:[#allocation85_spill] sm:$0xff] }
 0x655   :  { %4560 = vmatprep.subr.bf16.mxu1 %v7253_v36  ;;  %v7298_v36 = vld [vmem:[#allocation86_spill] sm:$0xff] }
 0x658   :  { %4562 = vmatpush1.bf16.msra.mxu1 %v7254_v1  ;;  %v7299_v1 = vld [vmem:[#allocation87_spill] sm:$0xff] }
 0x659   :  { %4564 = vmatprep.subr.bf16.mxu1 %v7255_v28  ;;  %v7300_v28 = vld [vmem:[#allocation88_spill] sm:$0xff] }
 0x65b   :  { %2677 = vmatmul.mubr.f32.vlgmr.msra.gmra.mrb[18].mxu1 %v4964_v39  ;;  %v7301_v39 = vld [vmem:[#allocation89_spill] sm:$0xff] }
 0x65c   :  { %4566 = vmatpush1.bf16.msra.mxu1 %v7256_v46  ;;  %2747 = vmatprep.mubr.f32.mxu1 %v4966_v42  ;;  %v7302_v42 = vld [vmem:[#allocation90_spill] sm:$0xff]  ;;  %v7303_v46 = vld [vmem:[#allocation91_spill] sm:$0xff] }
 0x65d   :  { %4568 = vmatprep.subr.bf16.mxu1 %v7257_v17  ;;  %v7304_v17 = vld [vmem:[#allocation92_spill] sm:$0xff] }
 0x660   :  { %4570 = vmatpush1.bf16.msra.mxu1 %v7258_v63  ;;  %v7305_v63 = vld [vmem:[#allocation93_spill] sm:$0xff] }
 0x661   :  { %4572 = vmatprep.subr.bf16.mxu1 %v7259_v7  ;;  %v7306_v7 = vld [vmem:[#allocation94_spill] sm:$0xff] }
 0x664   :  { %4574 = vmatpush1.bf16.msra.mxu1 %v7260_v12  ;;  %v7307_v12 = vld [vmem:[#allocation95_spill] sm:$0xff] }
 0x665   :  { %4576 = vmatprep.subr.bf16.mxu1 %v7261_v13  ;;  %v7308_v13 = vld [vmem:[#allocation96_spill] sm:$0xff] }
 0x668   :  { %4578 = vmatpush1.bf16.msra.mxu1 %v7262_v18  ;;  %v7309_v18 = vld [vmem:[#allocation97_spill] sm:$0xff] }
 0x669   :  { %4580 = vmatprep.subr.bf16.mxu1 %v7263_v19  ;;  %v7310_v19 = vld [vmem:[#allocation98_spill] sm:$0xff] }
 0x66c   :  { %4582 = vmatpush1.bf16.msra.mxu1 %v7264_v24  ;;  %v7311_v24 = vld [vmem:[#allocation99_spill] sm:$0xff] }
 0x66d   :  { %4584 = vmatprep.subr.bf16.mxu1 %v7265_v26  ;;  %v2529_v26 = vadd.f32 %v6211_v55, %v5468_v54 }
 0x66f   :  { %4971 = vtanh.f32 %v2529_v26 }
 0x670   :  { %4586 = vmatpush1.bf16.msra.mxu1 %v7266_v31  ;;  %v7312_v31 = vld [vmem:[#allocation100_spill] sm:$0xff] }
 0x671   :  { %4588 = vmatprep.subr.bf16.mxu1 %v7267_v32  ;;  %v7313_v32 = vld [vmem:[#allocation101_spill] sm:$0xff] }
 0x674   :  { %4590 = vmatpush1.bf16.msra.mxu1 %v7268_v37  ;;  %v7314_v37 = vld [vmem:[#allocation102_spill] sm:$0xff] }
 0x675   :  { %4592 = vmatprep.subr.bf16.mxu1 %v7269_v43  ;;  %v7315_v43 = vld [vmem:[#allocation103_spill] sm:$0xff] }
 0x678   :  { %4594 = vmatpush1.bf16.msra.mxu1 %v7270_v44  ;;  %v7316_v44 = vld [vmem:[#allocation104_spill] sm:$0xff] }
 0x679   :  { %4596 = vmatprep.subr.bf16.mxu1 %v7271_v49  ;;  %v7317_v49 = vld [vmem:[#allocation105_spill] sm:$0xff] }
 0x67c   :  { %4598 = vmatpush1.bf16.msra.mxu1 %v7272_v50  ;;  %v7318_v50 = vld [vmem:[#allocation106_spill] sm:$0xff] }
 0x67d   :  { %4600 = vmatprep.subr.bf16.mxu1 %v7273_v61  ;;  %v4972_v61 = vpop.eup %4971 }
 0x680   :  { %4602 = vmatpush1.bf16.msra.mxu1 %v7274_v62 }
 0x681   :  { %4604 = vmatprep.subr.bf16.mxu1 %v7275_v4 }
 0x684   :  { %4606 = vmatpush1.bf16.msra.mxu1 %v7276_v8 }
 0x685   :  { %4608 = vmatprep.subr.bf16.mxu1 %v7277_v15 }
 0x688   :  { %4610 = vmatpush1.bf16.msra.mxu1 %v7278_v16 }
 0x689   :  { %4612 = vmatprep.subr.bf16.mxu1 %v7279_v21 }
 0x68c   :  { %4614 = vmatpush1.bf16.msra.mxu1 %v7280_v30  ;;  %v1804_v30 = vunpack.c.l.s4 %v5114_v27 }
 0x68d   :  { %4616 = vmatprep.subr.bf16.mxu1 %v7281_v40 }
 0x68e   :  { %v1805_v40 = vunpack.c.0.s8 %v1804_v30 }
 0x690   :  { %4618 = vmatpush1.bf16.msra.mxu1 %v7282_v45  ;;  %v1807_v45 = vshrl.u32 %v1806_v35, 7 }
 0x691   :  { %4620 = vmatprep.subr.bf16.mxu1 %v7283_v48 }
 0x692   :  { %v6382_v48 = vsub.s32 %v1805_v40, %v1807_v45 }
 0x694   :  { %4622 = vmatpush1.bf16.msra.mxu1 %v7284_v53  ;;  %v1830_v53 = vcombine.high %v6196_v25, %v6196_v25 }
 0x695   :  { %4624 = vmatprep.subr.bf16.mxu1 %v7285_v20  ;;  %v1809_v20 = vrot.slane %v6196_v25, %v6382_v48 }
 0x697   :  { %v1817_v25 = vcombine.high %v1809_v20, %v1809_v20 }
 0x698   :  { %4626 = vmatpush1.bf16.msra.mxu1 %v7286_v23  ;;  %v1837_v23 = vrot.slane %v1830_v53, %v6382_v48 }
 0x699   :  { %4628 = vmatprep.subr.bf16.mxu1 %v7287_v38  ;;  %v1905_v38 = vcombine.high %v6200_v6, %v6200_v6 }
 0x69b   :  { %2748 = vmatmul.mubr.f32.vlgmr.msra.gmra.mrb[18].mxu1 %v4968_v10  ;;  %v3862_v10 = vrot.slane %v1809_v20, 9 }
 0x69c   :  { %4630 = vmatpush1.bf16.msra.mxu1 %v7288_v56  ;;  %2818 = vmatprep.mubr.f32.mxu1 %v4970_v22  ;;  %v1874_v22 = vrot.slane %v6200_v6, %v6382_v48  ;;  %v6400_v56 = vrot.slane %v1905_v38, %v6382_v48  ;;  %v3863_v6 = vrot.slane %v1817_v25, 9 }
 0x69d   :  { %4632 = vmatprep.subr.bf16.mxu1 %v7289_v34  ;;  %v3864_v34 = vrot.slane %v1837_v23, 9 }
 0x6a0   :  { %4634 = vmatpush1.bf16.msra.mxu1 %v7290_v47  ;;  %v1887_v47 = vcombine.high %v1874_v22, %v1874_v22 }
 0x6a1   :  { %4636 = vmatprep.subr.bf16.mxu1 %v7291_v41  ;;  %v6406_v41 = vcombine.high %v6400_v56, %v6400_v56 }
 0x6a4   :  { %4638 = vmatpush1.bf16.msra.mxu1 %v7292_v29  ;;  %v3869_v29 = vrot.slane %v6406_v41, 9 }
 0x6a5   :  { %4640 = vmatprep.subr.bf16.mxu1 %v7293_v57  ;;  %v1854_v57 = vcombine.high %v1837_v23, %v1837_v23 }
 0x6a8   :  { %4642 = vmatpush1.bf16.msra.mxu1 %v7294_v59 }
 0x6a9   :  { %4644 = vmatprep.subr.bf16.mxu1 %v7295_v3  ;;  %v3865_v3 = vrot.slane %v1854_v57, 9 }
 0x6ac   :  { %4646 = vmatpush1.bf16.msra.mxu1 %v7296_v14 }
 0x6ad   :  { %4648 = vmatprep.subr.bf16.mxu1 %v7297_v9 }
 0x6b0   :  { %4650 = vmatpush1.bf16.msra.mxu1 %v7298_v36 }
 0x6b1   :  { %4652 = vmatprep.subr.bf16.mxu1 %v7299_v1 }
 0x6b4   :  { %4654 = vmatpush1.bf16.msra.mxu1 %v7300_v28 }
 0x6b5   :  { %4656 = vmatprep.subr.bf16.mxu1 %v7301_v39  ;;  %v3866_v39 = vrot.slane %v1874_v22, 9 }
 0x6b8   :  { %4658 = vmatpush1.bf16.msra.mxu1 %v7302_v42 }
 0x6b9   :  { %4660 = vmatprep.subr.bf16.mxu1 %v7303_v46 }
 0x6bc   :  { %4662 = vmatpush1.bf16.msra.mxu1 %v7304_v17 }
 0x6bd   :  { %4664 = vmatprep.subr.bf16.mxu1 %v7305_v63 }
 0x6c0   :  { %4666 = vmatpush1.bf16.msra.mxu1 %v7306_v7  ;;  %v3867_v7 = vrot.slane %v1887_v47, 9 }
 0x6c1   :  { %4668 = vmatprep.subr.bf16.mxu1 %v7307_v12 }
 0x6c4   :  { %4670 = vmatpush1.bf16.msra.mxu1 %v7308_v13 }
 0x6c5   :  { %4672 = vmatprep.subr.bf16.mxu1 %v7309_v18 }
 0x6c8   :  { %4674 = vmatpush1.bf16.msra.mxu1 %v7310_v19 }
 0x6c9   :  { %4676 = vmatprep.subr.bf16.mxu1 %v7311_v24 }
 0x6cc   :  { %4678 = vmatpush1.bf16.msra.mxu1 %v7312_v31  ;;  %v3868_v31 = vrot.slane %v6400_v56, 9 }
 0x6cd   :  { %4680 = vmatprep.subr.bf16.mxu1 %v7313_v32 }
 0x6d0   :  { %4682 = vmatpush1.bf16.msra.mxu1 %v7314_v37 }
 0x6d1   :  { %4684 = vmatprep.subr.bf16.mxu1 %v7315_v43 }
 0x6d4   :  { %4686 = vmatpush1.bf16.msra.mxu1 %v7316_v44 }
 0x6d5   :  { %4688 = vmatprep.subr.bf16.mxu1 %v7317_v49 }
 0x6d8   :  { %4690 = vmatpush1.bf16.msra.mxu1 %v7318_v50 }
 0x6d9   :  { %4822 = vmatprep.subr.bf16.mxu1 %v7201_v58 }
 0x6db   :  { %2819 = vmatmul.mubr.f32.vlgmr.msra.gmra.mrb[18].mxu1 %v4972_v61 }
 0x7ae   :  { %v6315_v54 = vpop.f32.mrb[18].mxu1 }
 0x7af   :  { %2825 = vst [vmem:[#allocation3] sm:$0x3f] %v6315_v54  ;;  %2866 = vrot.lane.b32.xlu0 %v6315_v54, %s5075_s24  ;;  %v6320_v55 = vpop.f32.mrb[19].mxu1  ;;  %v2829_v62 = vrot.slane %v6315_v54, 2  ;;  %v2842_v8 = vrot.slane %v6315_v54, 4  ;;  %v2855_v16 = vrot.slane %v6315_v54, 6 }
 0x7b0   :  { %2826 = vst.msk [vmem:[#allocation3 + $0x8] sm:$0x3f] %vm1299_vm14, %v6320_v55  ;;  %2868 = vrot.lane.b32.xlu1 %v6320_v55, %s5075_s24  ;;  %v2830_v4 = vrot.slane %v6320_v55, 2  ;;  %v2843_v15 = vrot.slane %v6320_v55, 4  ;;  %v2856_v21 = vrot.slane %v6320_v55, 6  ;;  %s7323_s24 = smov 114  }
 0x7b3   :  { %2906 = vrot.lane.b32.xlu0 %v6315_v54, %s7319_s1 }
 0x7b4   :  { %2908 = vrot.lane.b32.xlu1 %v6320_v55, %s7319_s1  ;;  %s5120_s1 = smov 22  }
 0x7b7   :  { %2946 = vrot.lane.b32.xlu0 %v6315_v54, %s7320_s29 }
 0x7b8   :  { %2948 = vrot.lane.b32.xlu1 %v6320_v55, %s7320_s29  ;;  %s5121_s29 = smov 47  }
 0x7bb   :  { %2986 = vrot.lane.b32.xlu0 %v6315_v54, %s7321_s30 }
 0x7bc   :  { %2988 = vrot.lane.b32.xlu1 %v6320_v55, %s7321_s30  ;;  %s5122_s30 = smov 19  }
 0x7bf   :  { %3026 = vrot.lane.b32.xlu0 %v6315_v54, %s7322_s14 }
 0x7c0   :  { %3028 = vrot.lane.b32.xlu1 %v6320_v55, %s7322_s14 }
 0x7c3   :  { %2831 = vrot.lane.b32.xlu0 %v2829_v62, %s5073_s21 }
 0x7c4   :  { %2833 = vrot.lane.b32.xlu1 %v2830_v4, %s5073_s21  ;;  %s7324_s21 = smov 113  }
 0x7c7   :  { %2844 = vrot.lane.b32.xlu0 %v2842_v8, %s5072_s20 }
 0x7c8   :  { %2846 = vrot.lane.b32.xlu1 %v2843_v15, %s5072_s20  ;;  %s7326_s20 = smov 110  }
 0x7cb   :  { %2857 = vrot.lane.b32.xlu0 %v2855_v16, %s5074_s23 }
 0x7cc   :  { %2859 = vrot.lane.b32.xlu1 %v2856_v21, %s5074_s23 }
 0x7cf   :  { %2875 = vrot.lane.b32.xlu0 %v2829_v62, %s7323_s24 }
 0x7d0   :  { %2877 = vrot.lane.b32.xlu1 %v2830_v4, %s7323_s24  ;;  %s5123_s24 = smov 44  }
 0x7d3   :  { %2886 = vrot.lane.b32.xlu0 %v2842_v8, %s7324_s21 }
 0x7d4   :  { %2888 = vrot.lane.b32.xlu1 %v2843_v15, %s7324_s21 }
 0x7d7   :  { %2897 = vrot.lane.b32.xlu0 %v2855_v16, %s7325_s15 }
 0x7d8   :  { %2899 = vrot.lane.b32.xlu1 %v2856_v21, %s7325_s15 }
 0x7db   :  { %2915 = vrot.lane.b32.xlu0 %v2829_v62, %s7326_s20 }
 0x7dc   :  { %2917 = vrot.lane.b32.xlu1 %v2830_v4, %s7326_s20 }
 0x7df   :  { %2926 = vrot.lane.b32.xlu0 %v2842_v8, %s7327_s3 }
 0x7e0   :  { %2928 = vrot.lane.b32.xlu1 %v2843_v15, %s7327_s3 }
 0x7e3   :  { %2937 = vrot.lane.b32.xlu0 %v2855_v16, %s7328_s22 }
 0x7e4   :  { %2939 = vrot.lane.b32.xlu1 %v2856_v21, %s7328_s22 }
 0x7e7   :  { %2955 = vrot.lane.b32.xlu0 %v2829_v62, %s7329_s19 }
 0x7e8   :  { %2957 = vrot.lane.b32.xlu1 %v2830_v4, %s7329_s19 }
 0x7eb   :  { %2966 = vrot.lane.b32.xlu0 %v2842_v8, %s5076_s25 }
 0x7ec   :  { %2968 = vrot.lane.b32.xlu1 %v2843_v15, %s5076_s25  ;;  %s5115_s25 = smov 25  }
 0x7ef   :  { %2977 = vrot.lane.b32.xlu0 %v2855_v16, %s7330_s26 }
 0x7f0   :  { %2979 = vrot.lane.b32.xlu1 %v2856_v21, %s7330_s26 }
 0x7f3   :  { %2995 = vrot.lane.b32.xlu0 %v2829_v62, %s7331_s18 }
 0x7f4   :  { %2997 = vrot.lane.b32.xlu1 %v2830_v4, %s7331_s18 }
 0x7f7   :  { %3006 = vrot.lane.b32.xlu0 %v2842_v8, %s7332_s0 }
 0x7f8   :  { %3008 = vrot.lane.b32.xlu1 %v2843_v15, %s7332_s0 }
 0x7fb   :  { %3017 = vrot.lane.b32.xlu0 %v2855_v16, %s7333_s5 }
 0x7fc   :  { %3019 = vrot.lane.b32.xlu1 %v2856_v21, %s7333_s5 }
 0x7ff   :  { %3035 = vrot.lane.b32.xlu0 %v2829_v62, %s5109_s17 }
 0x800   :  { %3037 = vrot.lane.b32.xlu1 %v2830_v4, %s5109_s17  ;;  %s5117_s17 = smov 122  }
 0x803   :  { %3046 = vrot.lane.b32.xlu0 %v2842_v8, %s5110_s16 }
 0x804   :  { %3048 = vrot.lane.b32.xlu1 %v2843_v15, %s5110_s16  ;;  %s5116_s16 = smov 50  }
 0x807   :  { %3057 = vrot.lane.b32.xlu0 %v2855_v16, %s5111_s6 }
 0x808   :  { %3059 = vrot.lane.b32.xlu1 %v2856_v21, %s5111_s6 }
 0x80b   :  { %3066 = vrot.lane.b32.xlu0 %v6315_v54, %s5112_s2 }
 0x80c   :  { %3068 = vrot.lane.b32.xlu1 %v6320_v55, %s5112_s2  ;;  %s5118_s2 = smov 75  }
 0x80f   :  { %1812 = vrot.lane.b32.xlu0 %v3862_v10, %s5115_s25 }
 0x810   :  { %1845 = vrot.lane.b32.xlu1 %v3864_v34, %s5074_s23 }
 0x813   :  { %1818 = vrot.lane.b32.xlu0 %v1817_v25, %s5116_s16 }
 0x814   :  { %1888 = vrot.lane.b32.xlu1 %v1887_v47, %s5117_s17 }
 0x817   :  { %1825 = vrot.lane.b32.xlu0 %v3863_v6, %s5118_s2 }
 0x818   :  { %1933 = vrot.lane.b32.xlu1 %v3869_v29, %s5119_s27 }
 0x81b   :  { %1838 = vrot.lane.b32.xlu0 %v1837_v23, %s7327_s3 }
 0x81f   :  { %1855 = vrot.lane.b32.xlu0 %v1854_v57, %s5120_s1 }
 0x821   :  { %v2867_v59 = vpop.permute.xlu0 %2866 }
 0x822   :  { %v2869_v14 = vpop.permute.xlu1 %2868 }
 0x823   :  { %v2870_v9 = vsel %vm7334_vm0, %v2867_v59, %v2869_v14  ;;  %2874 = vst.msk [vmem:[#allocation3 + $0x38] sm:$0x3f] %vm1299_vm14, %v2869_v14  ;;  %1862 = vrot.lane.b32.xlu0 %v3865_v3, %s5121_s29  ;;  %vm7338_vm0 = vcmask 588800  }
 0x824   :  { %2873 = vst [vmem:[#allocation3 + $0x30] sm:$0x3f] %v2870_v9 }
 0x825   :  { %v2907_v36 = vpop.permute.xlu0 %2906 }
 0x826   :  { %v2909_v1 = vpop.permute.xlu1 %2908 }
 0x827   :  { %v2910_v28 = vsel %vm7335_vm12, %v2907_v36, %v2909_v1  ;;  %2914 = vst.msk [vmem:[#allocation3 + $0x68] sm:$0x3f] %vm1299_vm14, %v2909_v1  ;;  %1875 = vrot.lane.b32.xlu0 %v1874_v22, %s7322_s14  ;;  %vm7341_vm12 = vcmask 916480  }
 0x828   :  { %2913 = vst [vmem:[#allocation3 + $0x60] sm:$0x3f] %v2910_v28 }
 0x829   :  { %v2947_v42 = vpop.permute.xlu0 %2946 }
 0x82a   :  { %v2949_v46 = vpop.permute.xlu1 %2948 }
 0x82b   :  { %v2950_v17 = vsel %vm7336_vm2, %v2947_v42, %v2949_v46  ;;  %2954 = vst.msk [vmem:[#allocation3 + $0x98] sm:$0x3f] %vm1299_vm14, %v2949_v46  ;;  %1882 = vrot.lane.b32.xlu0 %v3866_v39, %s7329_s19  ;;  %vm7342_vm2 = vcmask 900096  }
 0x82c   :  { %2953 = vst [vmem:[#allocation3 + $0x90] sm:$0x3f] %v2950_v17 }
 0x82d   :  { %v2987_v63 = vpop.permute.xlu0 %2986 }
 0x82e   :  { %v2989_v12 = vpop.permute.xlu1 %2988 }
 0x82f   :  { %v2990_v13 = vsel %vm7337_vm7, %v2987_v63, %v2989_v12  ;;  %2994 = vst.msk [vmem:[#allocation3 + $0xc8] sm:$0x3f] %vm1299_vm14, %v2989_v12  ;;  %1900 = vrot.lane.b32.xlu0 %v3867_v7, %s5122_s30  ;;  %vm7343_vm7 = vcmask 818176  }
 0x830   :  { %2993 = vst [vmem:[#allocation3 + $0xc0] sm:$0x3f] %v2990_v13 }
 0x831   :  { %v3027_v18 = vpop.permute.xlu0 %3026 }
 0x832   :  { %v3029_v19 = vpop.permute.xlu1 %3028 }
 0x833   :  { %v3030_v24 = vsel %vm7338_vm0, %v3027_v18, %v3029_v19  ;;  %3034 = vst.msk [vmem:[#allocation3 + $0xf8] sm:$0x3f] %vm1299_vm14, %v3029_v19  ;;  %1913 = vrot.lane.b32.xlu0 %v6400_v56, %s5123_s24  ;;  %vm7344_vm0 = vcmask 809984  }
 0x834   :  { %3033 = vst [vmem:[#allocation3 + $0xf0] sm:$0x3f] %v3030_v24 }
 0x835   :  { %v2832_v26 = vpop.permute.xlu0 %2831 }
 0x836   :  { %v2834_v32 = vpop.permute.xlu1 %2833 }
 0x837   :  { %v2835_v37 = vsel %vm376_vm3, %v2832_v26, %v2834_v32  ;;  %2839 = vst.msk [vmem:[#allocation3 + $0x8] sm:$0xc0] %vm1313_vm15, %v2834_v32  ;;  %1920 = vrot.lane.b32.xlu0 %v3868_v31, %s5111_s6  ;;  %vm7339_vm3 = vcmask 932864  }
 0x838   :  { %2841 = vst.msk [vmem:[#allocation3 + $0x18] sm:$0xf] %vm1316_vm10, %v2834_v32  ;;  %2838 = vst [vmem:[#allocation3 + $0x10] ss:$-12 sps:$4 sm:$0xcf] %v2835_v37  }
 0x839   :  { %v2845_v43 = vpop.permute.xlu0 %2844 }
 0x83a   :  { %v2847_v44 = vpop.permute.xlu1 %2846 }
 0x83b   :  { %v2848_v49 = vsel %vm389_vm1, %v2845_v43, %v2847_v44  ;;  %2852 = vst.msk [vmem:[#allocation3 + $0x18] sm:$0xf0] %vm1328_vm13, %v2847_v44  ;;  %vm7340_vm1 = vcmask 924672  }
 0x83c   :  { %2854 = vst.msk [vmem:[#allocation3 + $0x28] sm:$0x3] %vm1331_vm9, %v2847_v44  ;;  %2851 = vst [vmem:[#allocation3 + $0x20] ss:$-12 sps:$4 sm:$0xf3] %v2848_v49  }
 0x83d   :  { %v2858_v50 = vpop.permute.xlu0 %2857 }
 0x83e   :  { %v2860_v61 = vpop.permute.xlu1 %2859  ;;  %v3076_v4 = vld [vmem:[#allocation3 + $0x8] sm:$0xff] }
 0x83f   :  { %v2861_v54 = vsel %vm402_vm4, %v2858_v50, %v2860_v61  ;;  %2865 = vst.msk [vmem:[#allocation3 + $0x28] sm:$0xfc] %vm1343_vm8, %v2860_v61  ;;  %v3075_v21 = vld [vmem:[#allocation3] sm:$0xff] }
 0x840   :  { %2864 = vst [vmem:[#allocation3 + $0x20] sm:$0xfc] %v2861_v54 }
 0x841   :  { %v2876_v55 = vpop.permute.xlu0 %2875 }
 0x842   :  { %v2878_v62 = vpop.permute.xlu1 %2877  ;;  %v3078_v8 = vld [vmem:[#allocation3 + $0x18] sm:$0xff] }
 0x843   :  { %v2879_v15 = vsel %vm7339_vm3, %v2876_v55, %v2878_v62  ;;  %2883 = vst.msk [vmem:[#allocation3 + $0x38] sm:$0xc0] %vm1313_vm15, %v2878_v62  ;;  %v4691_v16 = vpack.c.bf16 %v3078_v8, %v3076_v4  ;;  %v3077_v27 = vld [vmem:[#allocation3 + $0x10] sm:$0xff]  ;;  %vm7345_vm3 = vcmask 793600  }
 0x844   :  { %2885 = vst.msk [vmem:[#allocation3 + $0x48] sm:$0xf] %vm1316_vm10, %v2878_v62  ;;  %2882 = vst [vmem:[#allocation3 + $0x40] ss:$-12 sps:$4 sm:$0xcf] %v2879_v15   ;;  %v4693_v30 = vpack.c.bf16 %v3077_v27, %v3075_v21 }
 0x845   :  { %v2887_v35 = vpop.permute.xlu0 %2886  ;;  %4692 = vmatprep.subr.bf16.mxu0 %v4691_v16 }
 0x846   :  { %v2889_v40 = vpop.permute.xlu1 %2888  ;;  %4694 = vmatpush1.bf16.msra.mxu0 %v4693_v30  ;;  %v3080_v23 = vld [vmem:[#allocation3 + $0x28] sm:$0xff] }
 0x847   :  { %v2890_v45 = vsel %vm7340_vm1, %v2887_v35, %v2889_v40  ;;  %2894 = vst.msk [vmem:[#allocation3 + $0x48] sm:$0xf0] %vm1328_vm13, %v2889_v40  ;;  %v3079_v56 = vld [vmem:[#allocation3 + $0x20] sm:$0xff]  ;;  %vm7346_vm1 = vcmask 785408  }
 0x848   :  { %2896 = vst.msk [vmem:[#allocation3 + $0x58] sm:$0x3] %vm1331_vm9, %v2889_v40  ;;  %2893 = vst [vmem:[#allocation3 + $0x50] ss:$-12 sps:$4 sm:$0xf3] %v2890_v45  }
 0x849   :  { %v2898_v53 = vpop.permute.xlu0 %2897 }
 0x84a   :  { %v2900_v20 = vpop.permute.xlu1 %2899  ;;  %v3082_v38 = vld [vmem:[#allocation3 + $0x38] sm:$0xff] }
 0x84b   :  { %v2901_v10 = vsel %vm7341_vm12, %v2898_v53, %v2900_v20  ;;  %2905 = vst.msk [vmem:[#allocation3 + $0x58] sm:$0xfc] %vm1343_vm8, %v2900_v20  ;;  %v4695_v22 = vpack.c.bf16 %v3082_v38, %v3080_v23  ;;  %v3081_v34 = vld [vmem:[#allocation3 + $0x30] sm:$0xff]  ;;  %vm7347_vm12 = vcmask 703488  }
 0x84c   :  { %2904 = vst [vmem:[#allocation3 + $0x50] sm:$0xfc] %v2901_v10  ;;  %v4697_v25 = vpack.c.bf16 %v3081_v34, %v3079_v56 }
 0x84d   :  { %v2916_v47 = vpop.permute.xlu0 %2915  ;;  %4696 = vmatprep.subr.bf16.mxu0 %v4695_v22 }
 0x84e   :  { %v2918_v6 = vpop.permute.xlu1 %2917  ;;  %4698 = vmatpush1.bf16.msra.mxu0 %v4697_v25  ;;  %v3084_v3 = vld [vmem:[#allocation3 + $0x48] sm:$0xff] }
 0x84f   :  { %v2919_v29 = vsel %vm7342_vm2, %v2916_v47, %v2918_v6  ;;  %2923 = vst.msk [vmem:[#allocation3 + $0x68] sm:$0xc0] %vm1313_vm15, %v2918_v6  ;;  %v3083_v1 = vld [vmem:[#allocation3 + $0x40] sm:$0xff]  ;;  %vm7348_vm2 = vcmask 687104  }
 0x850   :  { %2925 = vst.msk [vmem:[#allocation3 + $0x78] sm:$0xf] %vm1316_vm10, %v2918_v6  ;;  %2922 = vst [vmem:[#allocation3 + $0x70] ss:$-12 sps:$4 sm:$0xcf] %v2919_v29  }
 0x851   :  { %v2927_v57 = vpop.permute.xlu0 %2926 }
 0x852   :  { %v2929_v59 = vpop.permute.xlu1 %2928  ;;  %v3086_v14 = vld [vmem:[#allocation3 + $0x58] sm:$0xff] }
 0x853   :  { %v2930_v9 = vsel %vm7343_vm7, %v2927_v57, %v2929_v59  ;;  %2934 = vst.msk [vmem:[#allocation3 + $0x78] sm:$0xf0] %vm1328_vm13, %v2929_v59  ;;  %v4699_v36 = vpack.c.bf16 %v3086_v14, %v3084_v3  ;;  %v3085_v28 = vld [vmem:[#allocation3 + $0x50] sm:$0xff]  ;;  %vm7349_vm7 = vcmask 678912  }
 0x854   :  { %2936 = vst.msk [vmem:[#allocation3 + $0x88] sm:$0x3] %vm1331_vm9, %v2929_v59  ;;  %2933 = vst [vmem:[#allocation3 + $0x80] ss:$-12 sps:$4 sm:$0xf3] %v2930_v9   ;;  %v4701_v39 = vpack.c.bf16 %v3085_v28, %v3083_v1 }
 0x855   :  { %v2938_v42 = vpop.permute.xlu0 %2937  ;;  %4700 = vmatprep.subr.bf16.mxu0 %v4699_v36 }
 0x856   :  { %v2940_v46 = vpop.permute.xlu1 %2939  ;;  %4702 = vmatpush1.bf16.msra.mxu0 %v4701_v39  ;;  %v3088_v12 = vld [vmem:[#allocation3 + $0x68] sm:$0xff] }
 0x857   :  { %v2941_v17 = vsel %vm7344_vm0, %v2938_v42, %v2940_v46  ;;  %2945 = vst.msk [vmem:[#allocation3 + $0x88] sm:$0xfc] %vm1343_vm8, %v2940_v46  ;;  %v3087_v24 = vld [vmem:[#allocation3 + $0x60] sm:$0xff]  ;;  %vm7350_vm0 = vcmask 670720  }
 0x858   :  { %2944 = vst [vmem:[#allocation3 + $0x80] sm:$0xfc] %v2941_v17 }
 0x859   :  { %v2956_v63 = vpop.permute.xlu0 %2955 }
 0x85a   :  { %v2958_v7 = vpop.permute.xlu1 %2957  ;;  %v3090_v13 = vld [vmem:[#allocation3 + $0x78] sm:$0xff] }
 0x85b   :  { %v2959_v18 = vsel %vm7345_vm3, %v2956_v63, %v2958_v7  ;;  %2963 = vst.msk [vmem:[#allocation3 + $0x98] sm:$0xc0] %vm1313_vm15, %v2958_v7  ;;  %v4703_v19 = vpack.c.bf16 %v3090_v13, %v3088_v12  ;;  %v3089_v26 = vld [vmem:[#allocation3 + $0x70] sm:$0xff]  ;;  %vm7351_vm3 = vcmask 580608  }
 0x85c   :  { %2965 = vst.msk [vmem:[#allocation3 + $0xa8] sm:$0xf] %vm1316_vm10, %v2958_v7  ;;  %2962 = vst [vmem:[#allocation3 + $0xa0] ss:$-12 sps:$4 sm:$0xcf] %v2959_v18   ;;  %v4705_v31 = vpack.c.bf16 %v3089_v26, %v3087_v24 }
 0x85d   :  { %v2967_v32 = vpop.permute.xlu0 %2966  ;;  %4704 = vmatprep.subr.bf16.mxu0 %v4703_v19 }
 0x85e   :  { %v2969_v37 = vpop.permute.xlu1 %2968  ;;  %4706 = vmatpush1.bf16.msra.mxu0 %v4705_v31  ;;  %v3092_v50 = vld [vmem:[#allocation3 + $0x88] sm:$0xff] }
 0x85f   :  { %v2970_v43 = vsel %vm7346_vm1, %v2967_v32, %v2969_v37  ;;  %2974 = vst.msk [vmem:[#allocation3 + $0xa8] sm:$0xf0] %vm1328_vm13, %v2969_v37  ;;  %v3091_v62 = vld [vmem:[#allocation3 + $0x80] sm:$0xff] }
 0x860   :  { %2976 = vst.msk [vmem:[#allocation3 + $0xb8] sm:$0x3] %vm1331_vm9, %v2969_v37  ;;  %2973 = vst [vmem:[#allocation3 + $0xb0] ss:$-12 sps:$4 sm:$0xf3] %v2970_v43  }
 0x861   :  { %v2978_v44 = vpop.permute.xlu0 %2977 }
 0x862   :  { %v2980_v49 = vpop.permute.xlu1 %2979  ;;  %v3094_v61 = vld [vmem:[#allocation3 + $0x98] sm:$0xff] }
 0x863   :  { %v2981_v54 = vsel %vm7347_vm12, %v2978_v44, %v2980_v49  ;;  %2985 = vst.msk [vmem:[#allocation3 + $0xb8] sm:$0xfc] %vm1343_vm8, %v2980_v49  ;;  %v4707_v55 = vpack.c.bf16 %v3094_v61, %v3092_v50  ;;  %v3093_v4 = vld [vmem:[#allocation3 + $0x90] sm:$0xff]  ;;  %vm1841_vm12 = vcmask 1016608  }
 0x864   :  { %2984 = vst [vmem:[#allocation3 + $0xb0] sm:$0xfc] %v2981_v54  ;;  %v4709_v8 = vpack.c.bf16 %v3093_v4, %v3091_v62 }
 0x865   :  { %v2996_v15 = vpop.permute.xlu0 %2995  ;;  %4708 = vmatprep.subr.bf16.mxu0 %v4707_v55 }
 0x866   :  { %v2998_v16 = vpop.permute.xlu1 %2997  ;;  %4710 = vmatpush1.bf16.msra.mxu0 %v4709_v8  ;;  %v3096_v35 = vld [vmem:[#allocation3 + $0xa8] sm:$0xff]  ;;  %v4990_v8 = vld [vmem:[%s6895_s4] sm:$0xff] }
 0x867   :  { %v2999_v21 = vsel %vm7348_vm2, %v2996_v15, %v2998_v16  ;;  %3003 = vst.msk [vmem:[#allocation3 + $0xc8] sm:$0xc0] %vm1313_vm15, %v2998_v16  ;;  %v3095_v20 = vld [vmem:[#allocation3 + $0xa0] sm:$0xff]  ;;  %v4991_v15 = vld [vmem:[%s6895_s4 + $0x18] sm:$0xff]  ;;  %vm7355_vm2 = vcmask 179200  }
 0x868   :  { %3005 = vst.msk [vmem:[#allocation3 + $0xd8] sm:$0xf] %vm1316_vm10, %v2998_v16  ;;  %3002 = vst [vmem:[#allocation3 + $0xd0] ss:$-12 sps:$4 sm:$0xcf] %v2999_v21   ;;  %v7358_v21 = vld [vmem:[#allocation107_spill] sm:$0xff] }
 0x869   :  { %v3007_v27 = vpop.permute.xlu0 %3006 }
 0x86a   :  { %v3009_v30 = vpop.permute.xlu1 %3008  ;;  %v3098_v40 = vld [vmem:[#allocation3 + $0xb8] sm:$0xff] }
 0x86b   :  { %v3010_v45 = vsel %vm7349_vm7, %v3007_v27, %v3009_v30  ;;  %3014 = vst.msk [vmem:[#allocation3 + $0xd8] sm:$0xf0] %vm1328_vm13, %v3009_v30  ;;  %v4711_v53 = vpack.c.bf16 %v3098_v40, %v3096_v35  ;;  %v3097_v23 = vld [vmem:[#allocation3 + $0xb0] sm:$0xff] }
 0x86c   :  { %3016 = vst.msk [vmem:[#allocation3 + $0xe8] sm:$0x3] %vm1331_vm9, %v3009_v30  ;;  %3013 = vst [vmem:[#allocation3 + $0xe0] ss:$-12 sps:$4 sm:$0xf3] %v3010_v45   ;;  %v4713_v38 = vpack.c.bf16 %v3097_v23, %v3095_v20  ;;  %v4992_v35 = vld [vmem:[%s6895_s4 + $0x10] sm:$0xff] }
 0x86d   :  { %v3018_v10 = vpop.permute.xlu0 %3017  ;;  %4712 = vmatprep.subr.bf16.mxu0 %v4711_v53  ;;  %v7359_v40 = vld [vmem:[#allocation108_spill] sm:$0xff]  ;;  %v7360_v53 = vld [vmem:[#allocation109_spill] sm:$0xff] }
 0x86e   :  { %v3020_v22 = vpop.permute.xlu1 %3019  ;;  %4714 = vmatpush1.bf16.msra.mxu0 %v4713_v38  ;;  %v3100_v47 = vld [vmem:[#allocation3 + $0xc8] sm:$0xff] }
 0x86f   :  { %v3021_v56 = vsel %vm7350_vm0, %v3018_v10, %v3020_v22  ;;  %3025 = vst.msk [vmem:[#allocation3 + $0xe8] sm:$0xfc] %vm1343_vm8, %v3020_v22  ;;  %v3099_v59 = vld [vmem:[#allocation3 + $0xc0] sm:$0xff]  ;;  %vm1858_vm0 = vcmask 377008  }
 0x870   :  { %3024 = vst [vmem:[#allocation3 + $0xe0] sm:$0xfc] %v3021_v56  ;;  %v7361_v38 = vld [vmem:[#allocation110_spill] sm:$0xff] }
 0x871   :  { %v3036_v34 = vpop.permute.xlu0 %3035 }
 0x872   :  { %v3038_v25 = vpop.permute.xlu1 %3037  ;;  %v3102_v6 = vld [vmem:[#allocation3 + $0xd8] sm:$0xff] }
 0x873   :  { %v3039_v29 = vsel %vm7351_vm3, %v3036_v34, %v3038_v25  ;;  %3043 = vst.msk [vmem:[#allocation3 + $0xf8] sm:$0xc0] %vm1313_vm15, %v3038_v25  ;;  %v4715_v57 = vpack.c.bf16 %v3102_v6, %v3100_v47  ;;  %v3101_v3 = vld [vmem:[#allocation3 + $0xd0] sm:$0xff]  ;;  %vm1850_vm15 = vcmask 1041384   ;;  %vm7090_vm3 = vcmask 582008  }
 0x874   :  { %3045 = vst.msk [vmem:[#allocation3 + $0x108] sm:$0xf] %vm1316_vm10, %v3038_v25  ;;  %3042 = vst [vmem:[#allocation3 + $0x100] ss:$-12 sps:$4 sm:$0xcf] %v3039_v29   ;;  %v4717_v14 = vpack.c.bf16 %v3101_v3, %v3099_v59  ;;  %vm7352_vm10 = vcmask 564224  }
 0x875   :  { %v3047_v9 = vpop.permute.xlu0 %3046  ;;  %4716 = vmatprep.subr.bf16.mxu0 %v4715_v57  ;;  %v7364_v34 = vld [vmem:[#allocation111_spill] sm:$0xff] }
 0x876   :  { %v3049_v36 = vpop.permute.xlu1 %3048  ;;  %4718 = vmatpush1.bf16.msra.mxu0 %v4717_v14  ;;  %v3104_v42 = vld [vmem:[#allocation3 + $0xe8] sm:$0xff] }
 0x877   :  { %v3050_v1 = vsel %vm1545_vm6, %v3047_v9, %v3049_v36  ;;  %3054 = vst.msk [vmem:[#allocation3 + $0x108] sm:$0xf0] %vm1328_vm13, %v3049_v36  ;;  %v3103_v7 = vld [vmem:[#allocation3 + $0xe0] sm:$0xff]  ;;  %vm1815_vm6 = vcmask 401608   ;;  %vm1828_vm13 = vcmask 811608  }
 0x878   :  { %3056 = vst.msk [vmem:[#allocation3 + $0x118] sm:$0x3] %vm1331_vm9, %v3049_v36  ;;  %3053 = vst [vmem:[#allocation3 + $0x110] ss:$-12 sps:$4 sm:$0xf3] %v3050_v1   ;;  %vm7353_vm9 = vcmask 1045504  }
 0x879   :  { %v3058_v28 = vpop.permute.xlu0 %3057  ;;  %vm7354_vm1 = vmmov %vm7353_vm9 }
 0x87a   :  { %v3060_v39 = vpop.permute.xlu1 %3059  ;;  %v3106_v46 = vld [vmem:[#allocation3 + $0xf8] sm:$0xff] }
 0x87b   :  { %v3061_v17 = vsel %vm7352_vm10, %v3058_v28, %v3060_v39  ;;  %3065 = vst.msk [vmem:[#allocation3 + $0x118] sm:$0xfc] %vm1343_vm8, %v3060_v39  ;;  %v4719_v63 = vpack.c.bf16 %v3106_v46, %v3104_v42  ;;  %v3105_v12 = vld [vmem:[#allocation3 + $0xf0] sm:$0xff]  ;;  %vm1821_vm8 = vcmask 606608   ;;  %vm1878_vm10 = vcmask 787008  }
 0x87c   :  { %3064 = vst [vmem:[#allocation3 + $0x110] sm:$0xfc] %v3061_v17  ;;  %v4721_v13 = vpack.c.bf16 %v3105_v12, %v3103_v7 }
 0x87d   :  { %v3067_v18 = vpop.permute.xlu0 %3066  ;;  %4720 = vmatprep.subr.bf16.mxu0 %v4719_v63 }
 0x87e   :  { %v3069_v19 = vpop.permute.xlu1 %3068  ;;  %4722 = vmatpush1.bf16.msra.mxu0 %v4721_v13  ;;  %v3108_v31 = vld [vmem:[#allocation3 + $0x108] sm:$0xff] }
 0x87f   :  { %v3070_v24 = vsel %vm1567_vm5, %v3067_v18, %v3069_v19  ;;  %3074 = vst.msk [vmem:[#allocation3 + $0x128] sm:$0x3f] %vm1299_vm14, %v3069_v19  ;;  %v3107_v43 = vld [vmem:[#allocation3 + $0x100] sm:$0xff]  ;;  %vm1851_vm14 = vcmask 174082  }
 0x880   :  { %3073 = vst [vmem:[#allocation3 + $0x120] sm:$0x3f] %v3070_v24  ;;  %vm6496_vm7 = vmor %vm1851_vm14, %vm1850_vm15  ;;  %vm1895_vm15 = vcmask 149506   ;;  %vm1891_vm14 = vcmask 998400  }
 0x881   :  { %v1813_v26 = vpop.permute.xlu0 %1812 }
 0x882   :  { %1816 = vst.msk [vmem:[#allocation4] sm:$0x1] %vm1815_vm6, %v1813_v26  ;;  %v3110_v32 = vld [vmem:[#allocation3 + $0x118] sm:$0xff]  ;;  %v1846_v54 = vpop.permute.xlu1 %1845 }
 0x883   :  { %v4723_v37 = vpack.c.bf16 %v3110_v32, %v3108_v31  ;;  %v3109_v44 = vld [vmem:[#allocation3 + $0x110] sm:$0xff]  ;;  %v1847_v4 = vrot.slane %v1846_v54, 6 }
 0x884   :  { %v4725_v49 = vpack.c.bf16 %v3109_v44, %v3107_v43  ;;  %v3417_v44 = vld [vmem:[%s6898_s7 + $0x80] sm:$0xff] }
 0x885   :  { %v1819_v50 = vpop.permute.xlu0 %1818  ;;  %4724 = vmatprep.subr.bf16.mxu0 %v4723_v37  ;;  %v1848_v30 = vsel %vm402_vm4, %v1847_v4, %v1846_v54  ;;  %v3402_v54 = vld [vmem:[%s6898_s7 + $0x8] sm:$0xff]  ;;  %v3420_v4 = vld [vmem:[%s6898_s7 + $0x98] sm:$0xff] }
 0x886   :  { %1822 = vst.msk [vmem:[#allocation4] sm:$0x1] %vm1821_vm8, %v1819_v50  ;;  %4726 = vmatpush1.bf16.msra.mxu0 %v4725_v49  ;;  %v3112_v61 = vld [vmem:[#allocation3 + $0x128] sm:$0x3f]  ;;  %v1889_v23 = vpop.permute.xlu1 %1888 }
 0x887   :  { %3884 = vmatprep.subr.msk.mxu0 %vm7353_vm9, %v3112_v61  ;;  %v3111_v62 = vld [vmem:[#allocation3 + $0x120] sm:$0x3f]  ;;  %vm1894_vm9 = vcmask 1041360   ;;  %v1890_v22 = vrot.slane %v1889_v23, 6  ;;  %v3418_v49 = vld [vmem:[%s6898_s7 + $0x88] sm:$0xff] }
 0x888   :  { %v4763_v50 = vpack.c.bf16 %v3418_v49, %v3417_v44  ;;  %v3401_v61 = vld [vmem:[%s6898_s7] sm:$0xff] }
 0x889   :  { %v1826_v55 = vpop.permute.xlu0 %1825  ;;  %v1892_v47 = vsel %vm1891_vm14, %v1890_v22, %v1889_v23 }
 0x88a   :  { %1829 = vst.msk [vmem:[#allocation4] sm:$0x1] %vm1828_vm13, %v1826_v55  ;;  %3885 = vmatpush1.msk.msra.mxu0 %vm7354_vm1, %v3111_v62  ;;  %vm1885_vm1 = vcmask 992008   ;;  %v4765_v55 = vpack.c.bf16 %v3402_v54, %v3401_v61  ;;  %v3419_v62 = vld [vmem:[%s6898_s7 + $0x90] sm:$0xff] }
 0x88b   :  { %3184 = vmatmul.mubr.f32.vlgmr.msra.gmra.mrb[8].mxu0 %v4990_v8  ;;  %4727 = vmatprep.subr.bf16.mxu0 %v7201_v58  ;;  %v4767_v8 = vpack.c.bf16 %v3420_v4, %v3419_v62 }
 0x88c   :  { %3887 = vmatprep.mubr.msk.f32.mxu0 %vm7355_vm2, %v4991_v15  ;;  %4729 = vmatpush1.bf16.msra.mxu0 %v7358_v21  ;;  %vm6518_vm2 = vmor %vm1895_vm15, %vm1894_vm9  ;;  %vm7091_vm9 = vcmask 557408   ;;  %vm7092_vm15 = vcmask 762408   ;;  %v3403_v15 = vld [vmem:[%s6898_s7 + $0x10] sm:$0xff] }
 0x88d   :  { %v1839_v27 = vpop.permute.xlu0 %1838  ;;  %4730 = vmatprep.subr.bf16.mxu0 %v7201_v58 }
 0x88e   :  { %1842 = vst.msk [vmem:[#allocation4] sm:$0x1] %vm1841_vm12, %v1839_v27 }
 0x88f   :  { %3190 = vmatmul.mubr.f32.gmra.mrb[10].mxu0 %v4992_v35  ;;  %1853 = vst.msk [vmem:[#allocation4] sm:$0x5] %vm6496_vm7, %v1848_v30  ;;  %v3421_v30 = vld [vmem:[%s6898_s7 + $0xa0] sm:$0xff]  ;;  %v3422_v35 = vld [vmem:[%s6898_s7 + $0xa8] sm:$0xff] }
 0x890   :  { %4732 = vmatpush1.bf16.msra.mxu0 %v7359_v40  ;;  %v4771_v40 = vpack.c.bf16 %v3422_v35, %v3421_v30 }
 0x891   :  { %v1856_v45 = vpop.permute.xlu0 %1855  ;;  %4733 = vmatprep.subr.bf16.mxu0 %v7201_v58 }
 0x892   :  { %1859 = vst.msk [vmem:[#allocation4 + $0x2] sm:$0x1] %vm1858_vm0, %v1856_v45  ;;  %v3405_v45 = vld [vmem:[%s6898_s7 + $0x20] sm:$0xff] }
 0x894   :  { %4735 = vmatpush1.bf16.msra.mxu0 %v7360_v53  ;;  %v3406_v53 = vld [vmem:[%s6898_s7 + $0x28] sm:$0xff] }
 0x895   :  { %v1863_v20 = vpop.permute.xlu0 %1862  ;;  %4736 = vmatprep.subr.bf16.mxu0 %v7201_v58 }
 0x896   :  { %1866 = vst.msk [vmem:[#allocation4 + $0x2] sm:$0x1] %vm7090_vm3, %v1863_v20  ;;  %vm7093_vm3 = vcmask 352408   ;;  %v4773_v20 = vpack.c.bf16 %v3406_v53, %v3405_v45 }
 0x898   :  { %4738 = vmatpush1.bf16.msra.mxu0 %v7361_v38  ;;  %v3423_v38 = vld [vmem:[%s6898_s7 + $0xb0] sm:$0xff] }
 0x899   :  { %v1876_v10 = vpop.permute.xlu0 %1875  ;;  %4739 = vmatprep.subr.bf16.mxu0 %v7201_v58 }
 0x89a   :  { %1879 = vst.msk [vmem:[#allocation4 + $0x2] sm:$0x1] %vm1878_vm10, %v1876_v10  ;;  %v3424_v10 = vld [vmem:[%s6898_s7 + $0xb8] sm:$0xff] }
 0x89b   :  { %v4775_v22 = vpack.c.bf16 %v3424_v10, %v3423_v38  ;;  %v3433_v10 = vld [vmem:[%s6898_s7 + $0x100] sm:$0xff] }
 0x89c   :  { %4741 = vmatpush1.bf16.msra.mxu0 %v7364_v34  ;;  %v3407_v34 = vld [vmem:[%s6898_s7 + $0x30] sm:$0xff] }
 0x89d   :  { %v1883_v25 = vpop.permute.xlu0 %1882  ;;  %4742 = vmatprep.subr.bf16.mxu0 %v7201_v58 }
 0x89e   :  { %1886 = vst.msk [vmem:[#allocation4 + $0x2] sm:$0x1] %vm1885_vm1, %v1883_v25  ;;  %v3408_v25 = vld [vmem:[%s6898_s7 + $0x38] sm:$0xff] }
 0x89f   :  { %1897 = vst.msk [vmem:[#allocation4 + $0x2] sm:$0x5] %vm6518_vm2, %v1892_v47  ;;  %v4777_v47 = vpack.c.bf16 %v3408_v25, %v3407_v34 }
 0x8a0   :  { %4744 = vmatpush1.bf16.msra.mxu0 %v6056_v51  ;;  %v7365_v51 = vld [vmem:[#allocation112_spill] sm:$0xff] }
 0x8a1   :  { %v1901_v6 = vpop.permute.xlu0 %1900  ;;  %4745 = vmatprep.subr.bf16.mxu0 %v7201_v58 }
 0x8a2   :  { %1904 = vst.msk [vmem:[#allocation4 + $0x4] sm:$0x1] %vm7093_vm3, %v1901_v6 }
 0x8a4   :  { %4747 = vmatpush1.bf16.msra.mxu0 %v6068_v52  ;;  %v7366_v52 = vld [vmem:[#allocation113_spill] sm:$0xff] }
 0x8a5   :  { %v1914_v29 = vpop.permute.xlu0 %1913  ;;  %4748 = vmatprep.subr.bf16.mxu0 %v7201_v58 }
 0x8a6   :  { %1917 = vst.msk [vmem:[#allocation4 + $0x4] sm:$0x1] %vm7091_vm9, %v1914_v29  ;;  %vm7367_vm9 = vcmask 1043456   ;;  %v3425_v29 = vld [vmem:[%s6898_s7 + $0xc0] sm:$0xff] }
 0x8a8   :  { %4750 = vmatpush1.bf16.msra.mxu0 %v6078_v11  ;;  %v4993_v11 = vld [vmem:[#allocation8 + $0xc0] sm:$0xf] }
 0x8a9   :  { %v1921_v57 = vpop.permute.xlu0 %1920  ;;  %4751 = vmatprep.subr.bf16.mxu0 %v7201_v58 }
 0x8aa   :  { %1924 = vst.msk [vmem:[#allocation4 + $0x4] sm:$0x1] %vm7092_vm15, %v1921_v57  ;;  %v3426_v57 = vld [vmem:[%s6898_s7 + $0xc8] sm:$0xff]  ;;  %vm1929_vm15 = vcmask 967408  }
 0x8ac   :  { %4753 = vmatpush1.bf16.msra.mxu0 %v6084_v2 }
 0x8ad   :  { %4754 = vmatprep.subr.bf16.mxu0 %v7201_v58 }
 0x8b0   :  { %4756 = vmatpush1.bf16.msra.mxu0 %v6090_v60 }
 0x8b1   :  { %4757 = vmatprep.subr.bf16.mxu0 %v7201_v58 }
 0x8b4   :  { %4759 = vmatpush1.bf16.msra.mxu0 %v7365_v51  ;;  %v4779_v51 = vpack.c.bf16 %v3426_v57, %v3425_v29  ;;  %v3435_v57 = vld [vmem:[%s6898_s7 + $0x110] sm:$0xff] }
 0x8b5   :  { %4760 = vmatprep.subr.bf16.mxu0 %v7201_v58 }
 0x8b8   :  { %4762 = vmatpush1.bf16.msra.mxu0 %v7366_v52  ;;  %v3409_v52 = vld [vmem:[%s6898_s7 + $0x40] sm:$0xff] }
 0x8b9   :  { %3254 = vmatprep.subr.mxu0 %v7211_v0 }
 0x8bc   :  { %3888 = vmatpush1.msk.msra.mxu0 %vm7367_vm9, %v4993_v11  ;;  %v3410_v11 = vld [vmem:[%s6898_s7 + $0x48] sm:$0xff]  ;;  %vm1936_vm9 = vcmask 973824  }
 0x8bd   :  { %4764 = vmatprep.subr.bf16.mxu0 %v4763_v50 }
 0x95e   :  { %v3185_v59 = vpop.f32.mrb[8].mxu0 }
 0x95f   :  { %v3186_v2 = vadd.f32 %v3185_v59, %v6010_v5  ;;  %v3187_v3 = vpop.f32.mrb[9].mxu0  ;;  %v4781_v59 = vpack.c.bf16 %v3410_v11, %v3409_v52 }
 0x960   :  { %v3188_v14 = vadd.f32 %v3187_v3, %v6010_v5  ;;  %v3427_v3 = vld [vmem:[%s6898_s7 + $0xd0] sm:$0xff] }
 0x962   :  { %4973 = vtanh.f32 %v3188_v14  ;;  %v3191_v60 = vpop.f32.mrb[10].mxu0  ;;  %v3428_v14 = vld [vmem:[%s6898_s7 + $0xd8] sm:$0xff] }
 0x963   :  { %4975 = vtanh.f32 %v3186_v2  ;;  %v3192_v9 = vadd.f32 %v3191_v60, %v6031_v33  ;;  %v3193_v36 = vpop.f32.mrb[11].mxu0  ;;  %v4783_v60 = vpack.c.bf16 %v3428_v14, %v3427_v3  ;;  %v3439_v3 = vld [vmem:[%s6898_s7 + $0x130] sm:$0xff]  ;;  %v3440_v14 = vld [vmem:[%s6898_s7 + $0x138] sm:$0xff] }
 0x964   :  { %v3194_v1 = vadd.f32 %v3193_v36, %v6031_v33  ;;  %v3412_v36 = vld [vmem:[%s6898_s7 + $0x58] sm:$0xff] }
 0x966   :  { %4977 = vtanh.f32 %v3194_v1 }
 0x967   :  { %4979 = vtanh.f32 %v3192_v9  ;;  %v3411_v9 = vld [vmem:[%s6898_s7 + $0x50] sm:$0xff] }
 0x968   :  { %v4785_v1 = vpack.c.bf16 %v3412_v36, %v3411_v9  ;;  %v3441_v9 = vld [vmem:[%s6898_s7 + $0x140] sm:$0xff]  ;;  %v3442_v36 = vld [vmem:[%s6898_s7 + $0x148] sm:$0xff] }
 0x96c   :  { %v4974_v28 = vpop.eup %4973 }
 0x96d   :  { %v4976_v39 = vpop.eup %4975  ;;  %3889 = vmatprep.mubr.msk.f32.mxu0 %vm1567_vm5, %v4974_v28  ;;  %v3429_v28 = vld [vmem:[%s6898_s7 + $0xe0] sm:$0xff] }
 0x96e   :  { %3271 = vmatmul.mubr.f32.vlgmr.msra.gmra.mrb[12].mxu0 %v4976_v39  ;;  %v3430_v39 = vld [vmem:[%s6898_s7 + $0xe8] sm:$0xff] }
 0x96f   :  { %4766 = vmatpush3.bf16.msra.mxu0 %v4765_v55  ;;  %v3631_v55 = vld [vmem:[%s6900_s9 + $0x40] sm:$0xff] }
 0x970   :  { %v4978_v42 = vpop.eup %4977  ;;  %4768 = vmatprep.subr.bf16.mxu0 %v4767_v8 }
 0x971   :  { %v4980_v46 = vpop.eup %4979  ;;  %3890 = vmatprep.mubr.msk.f32.mxu0 %vm1567_vm5, %v4978_v42  ;;  %v3413_v42 = vld [vmem:[%s6898_s7 + $0x60] sm:$0xff]  ;;  %vm1939_vm5 = vcmask 1041336  }
 0x972   :  { %3276 = vmatmul.mubr.f32.gmra.mrb[14].mxu0 %v4980_v46  ;;  %v4787_v46 = vpack.c.bf16 %v3430_v39, %v3429_v28  ;;  %v3443_v28 = vld [vmem:[%s6898_s7 + $0x150] sm:$0xff]  ;;  %v3444_v39 = vld [vmem:[%s6898_s7 + $0x158] sm:$0xff] }
 0xa41   :  { %v3272_v5 = vpop.f32.mrb[12].mxu0 }
 0xa42   :  { %3281 = vst.msk [vmem:[#allocation4 + $0x1] sm:$0x1] %vm1800_vm11, %v3272_v5  ;;  %v3289_v17 = vrot.slane %v3272_v5, %v6382_v48  ;;  %v3307_v63 = vcombine.high %v3272_v5, %v3272_v5  ;;  %v3274_v7 = vpop.f32.mrb[13].mxu0  ;;  %v3414_v5 = vld [vmem:[%s6898_s7 + $0x68] sm:$0xff]  ;;  %vm1940_vm11 = vcmask 124930  }
 0xa43   :  { %vm6679_vm3 = vmor %vm1940_vm11, %vm1939_vm5 }
 0xa44   :  { %v3891_v33 = vrot.slane %v3289_v17, 9  ;;  %v3296_v12 = vcombine.high %v3289_v17, %v3289_v17  ;;  %v3314_v13 = vrot.slane %v3307_v63, %v6382_v48  ;;  %v3431_v17 = vld [vmem:[%s6898_s7 + $0xf0] sm:$0xff]  ;;  %v3432_v63 = vld [vmem:[%s6898_s7 + $0xf8] sm:$0xff] }
 0xa45   :  { %v3277_v18 = vpop.f32.mrb[14].mxu0 }
 0xa46   :  { %3297 = vrot.lane.b32.xlu0 %v3296_v12, %s5116_s16  ;;  %3292 = vrot.lane.b32.xlu1 %v3891_v33, %s5115_s25  ;;  %v3279_v19 = vpop.f32.mrb[15].mxu0  ;;  %v3327_v24 = vcombine.high %v3314_v13, %v3314_v13  ;;  %v3369_v26 = vcombine.high %v3277_v18, %v3277_v18  ;;  %v3893_v37 = vrot.slane %v3314_v13, 9  ;;  %v3892_v43 = vrot.slane %v3296_v12, 9 }
 0xa47   :  { %v3345_v27 = vrot.slane %v3277_v18, %v6382_v48  ;;  %v4789_v12 = vpack.c.bf16 %v3414_v5, %v3413_v42  ;;  %v3415_v18 = vld [vmem:[%s6898_s7 + $0x70] sm:$0xff]  ;;  %v3416_v19 = vld [vmem:[%s6898_s7 + $0x78] sm:$0xff]  ;;  %v4811_v42 = vpack.c.bf16 %v3444_v39, %v3443_v28  ;;  %v3446_v5 = vld [vmem:[%s6898_s7 + $0x168] sm:$0xff] }
 0xa48   :  { %v3894_v31 = vrot.slane %v3327_v24, 9  ;;  %v6560_v32 = vrot.slane %v3369_v26, %v6382_v48  ;;  %v4793_v26 = vpack.c.bf16 %v3416_v19, %v3415_v18  ;;  %v3623_v19 = vld [vmem:[%s6900_s9] sm:$0xff] }
 0xa49   :  { %v3356_v23 = vcombine.high %v3345_v27, %v3345_v27  ;;  %v3895_v6 = vrot.slane %v3345_v27, 9 }
 0xa4a   :  { %3334 = vrot.lane.b32.xlu0 %v3894_v31, %s5121_s29  ;;  %3315 = vrot.lane.b32.xlu1 %v3314_v13, %s7327_s3  ;;  %v3387_v7 = vcombine.high %v6560_v32, %v6560_v32  ;;  %v3897_v33 = vrot.slane %v6560_v32, 9  ;;  %v4791_v13 = vpack.c.bf16 %v3432_v63, %v3431_v17  ;;  %v1934_v31 = vpop.permute.xlu1 %1933  ;;  %v3447_v63 = vld [vmem:[%s6898_s7 + $0x170] sm:$0xff] }
 0xa4b   :  { %v3896_v2 = vrot.slane %v3356_v23, 9  ;;  %v1935_v61 = vrot.slane %v1934_v31, 6 }
 0xa4d   :  { %v1937_v8 = vsel %vm1936_vm9, %v1935_v61, %v1934_v31  ;;  %v3630_v61 = vld [vmem:[%s6900_s9 + $0x38] sm:$0xff] }
 0xa4e   :  { %3321 = vrot.lane.b32.xlu1 %v3893_v37, %s5074_s23  ;;  %3377 = vrot.lane.b32.xlu0 %v6560_v32, %s5123_s24 }
 0xa52   :  { %3303 = vrot.lane.b32.xlu1 %v3892_v43, %s5118_s2  ;;  %1926 = vrot.lane.b32.xlu0 %v6406_v41, %s5078_s28  ;;  %v3404_v41 = vld [vmem:[%s6898_s7 + $0x18] sm:$0xff] }
 0xa53   :  { %v4769_v21 = vpack.c.bf16 %v3404_v41, %v3403_v15 }
 0xa55   :  { %4770 = vmatpush3.bf16.msra.mxu0 %v4769_v21 }
 0xa56   :  { %3328 = vrot.lane.b32.xlu1 %v3327_v24, %s5120_s1  ;;  %4772 = vmatprep.subr.bf16.mxu0 %v4771_v40  ;;  %v3898_v24 = vrot.slane %v3387_v7, 9 }
 0xa59   :  { %4774 = vmatpush3.bf16.msra.mxu0 %v4773_v20 }
 0xa5a   :  { %3346 = vrot.lane.b32.xlu1 %v3345_v27, %s7322_s14  ;;  %4776 = vmatprep.subr.bf16.mxu0 %v4775_v22  ;;  %v3434_v22 = vld [vmem:[%s6898_s7 + $0x108] sm:$0xff] }
 0xa5d   :  { %4778 = vmatpush3.bf16.msra.mxu0 %v4777_v47 }
 0xa5e   :  { %3357 = vrot.lane.b32.xlu1 %v3356_v23, %s5117_s17  ;;  %4780 = vmatprep.subr.bf16.mxu0 %v4779_v51  ;;  %v3436_v51 = vld [vmem:[%s6898_s7 + $0x118] sm:$0xff] }
 0xa5f   :  { %v4799_v11 = vpack.c.bf16 %v3436_v51, %v3435_v57  ;;  %v3724_v57 = vld [vmem:[%s6902_s11 + $0x20] sm:$0xff]  ;;  %v3725_v51 = vld [vmem:[%s6902_s11 + $0x28] sm:$0xff] }
 0xa61   :  { %4782 = vmatpush3.bf16.msra.mxu0 %v4781_v59  ;;  %v3438_v59 = vld [vmem:[%s6898_s7 + $0x128] sm:$0xff] }
 0xa62   :  { %3352 = vrot.lane.b32.xlu1 %v3895_v6, %s7329_s19  ;;  %4784 = vmatprep.subr.bf16.mxu0 %v4783_v60  ;;  %v4796_v6 = vpack.c.bf16 %v3434_v22, %v3433_v10  ;;  %v4805_v60 = vpack.c.bf16 %v3440_v14, %v3439_v3  ;;  %v3720_v10 = vld [vmem:[%s6902_s11] sm:$0xff]  ;;  %v3721_v22 = vld [vmem:[%s6902_s11 + $0x8] sm:$0xff] }
 0xa63   :  { %v3729_v3 = vld [vmem:[%s6902_s11 + $0x48] sm:$0xff] }
 0xa65   :  { %4786 = vmatpush3.bf16.msra.mxu0 %v4785_v1  ;;  %v4808_v1 = vpack.c.bf16 %v3442_v36, %v3441_v9  ;;  %v3901_v9 = vld [vmem:[%s6901_s10] ss:$0 sm:$0xff]  ;;  %s5125_s10 = smov [#allocation10]  }
 0xa66   :  { %3365 = vrot.lane.b32.xlu1 %v3896_v2, %s5122_s30  ;;  %4788 = vmatprep.subr.bf16.mxu0 %v4787_v46  ;;  %v3445_v46 = vld [vmem:[%s6898_s7 + $0x160] sm:$0xff] }
 0xa67   :  { %v4814_v17 = vpack.c.bf16 %v3446_v5, %v3445_v46 }
 0xa69   :  { %4790 = vmatpush3.bf16.msra.mxu0 %v4789_v12  ;;  %v3449_v12 = vld [vmem:[%s6898_s7 + $0x180] sm:$0xff] }
 0xa6a   :  { %3383 = vrot.lane.b32.xlu1 %v3897_v33, %s5111_s6  ;;  %4792 = vmatprep.subr.bf16.mxu0 %v4791_v13  ;;  %v3450_v13 = vld [vmem:[%s6898_s7 + $0x188] sm:$0xff] }
 0xa6b   :  { %v4820_v18 = vpack.c.bf16 %v3450_v13, %v3449_v12 }
 0xa6d   :  { %4794 = vmatpush3.bf16.msra.mxu0 %v4793_v26  ;;  %v3625_v26 = vld [vmem:[%s6900_s9 + $0x10] sm:$0xff] }
 0xa6e   :  { %3394 = vrot.lane.b32.xlu1 %v3898_v24, %s5119_s27  ;;  %4795 = vmatprep.subr.bf16.mxu0 %v7201_v58  ;;  %v3624_v24 = vld [vmem:[%s6900_s9 + $0x8] sm:$0xff] }
 0xa6f   :  { %v4823_v31 = vpack.c.bf16 %v3624_v24, %v3623_v19 }
 0xa71   :  { %4824 = vmatpush3.bf16.msra.mxu1 %v4823_v31 }
 0xa72   :  { %3388 = vrot.lane.b32.xlu1 %v3387_v7, %s5078_s28  ;;  %v3448_v7 = vld [vmem:[%s6898_s7 + $0x178] sm:$0xff]  ;;  %4825 = vmatprep.subr.bf16.mxu1 %v7201_v58 }
 0xa73   :  { %v4817_v33 = vpack.c.bf16 %v3448_v7, %v3447_v63 }
 0xab8   :  { %v3298_v32 = vpop.permute.xlu0 %3297  ;;  %v3293_v37 = vpop.permute.xlu1 %3292 }
 0xab9   :  { %3295 = vst.msk [vmem:[#allocation4 + $0x1] sm:$0x1] %vm1815_vm6, %v3293_v37  ;;  %vm7370_vm6 = vcmask 582008  }
 0xaba   :  { %3300 = vst.msk [vmem:[#allocation4 + $0x1] sm:$0x1] %vm1821_vm8, %v3298_v32  ;;  %vm7372_vm8 = vcmask 557408   ;;  %v3626_v32 = vld [vmem:[%s6900_s9 + $0x18] sm:$0xff] }
 0xabb   :  { %v4826_v37 = vpack.c.bf16 %v3626_v32, %v3625_v26 }
 0xabc   :  { %v3335_v43 = vpop.permute.xlu0 %3334  ;;  %v3316_v44 = vpop.permute.xlu1 %3315 }
 0xabd   :  { %4827 = vmatpush3.bf16.msra.mxu1 %v4826_v37 }
 0xabe   :  { %4828 = vmatprep.subr.bf16.mxu1 %v7201_v58 }
 0xac0   :  { %v3322_v49 = vpop.permute.xlu1 %3321  ;;  %v3378_v50 = vpop.permute.xlu0 %3377 }
 0xac1   :  { %v3323_v54 = vrot.slane %v3322_v49, 6 }
 0xac3   :  { %v3324_v15 = vsel %vm402_vm4, %v3323_v54, %v3322_v49  ;;  %vm7371_vm4 = vcmask 352408  }
 0xac4   :  { %v3304_v62 = vpop.permute.xlu1 %3303  ;;  %v1927_v4 = vpop.permute.xlu0 %1926 }
 0xac5   :  { %3306 = vst.msk [vmem:[#allocation4 + $0x1] sm:$0x1] %vm1828_vm13, %v3304_v62  ;;  %vm7373_vm13 = vcmask 762408   ;;  %v3632_v62 = vld [vmem:[%s6900_s9 + $0x48] sm:$0xff] }
 0xac6   :  { %1930 = vst.msk [vmem:[#allocation4 + $0x4] sm:$0x1] %vm1929_vm15, %v1927_v4  ;;  %v4835_v4 = vpack.c.bf16 %v3632_v62, %v3631_v55 }
 0xac7   :  { %3318 = vst.msk [vmem:[#allocation4 + $0x1] sm:$0x1] %vm1841_vm12, %v3316_v44  ;;  %vm3479_vm12 = vcmask 130048   ;;  %v3628_v44 = vld [vmem:[%s6900_s9 + $0x28] sm:$0xff] }
 0xac8   :  { %1942 = vst.msk [vmem:[#allocation4 + $0x4] sm:$0x5] %vm6679_vm3, %v1937_v8  ;;  %v3329_v41 = vpop.permute.xlu1 %3328  ;;  %v3633_v8 = vld [vmem:[%s6900_s9 + $0x50] sm:$0xff] }
 0xac9   :  { %3326 = vst.msk [vmem:[#allocation4 + $0x1] sm:$0x5] %vm6496_vm7, %v3324_v15  ;;  %v3634_v15 = vld [vmem:[%s6900_s9 + $0x58] sm:$0xff]  ;;  %vm5124_vm7 = vmmov 0  }
 0xaca   :  { %3331 = vst.msk [vmem:[#allocation4 + $0x3] sm:$0x1] %vm1858_vm0, %v3329_v41  ;;  %v4838_v41 = vpack.c.bf16 %v3634_v15, %v3633_v8  ;;  %3999 = vmatprep.mubr.msk.f32.mxu1 %vm5124_vm7, %v7211_v0  ;;  %vm3645_vm0 = vcmask 982016  }
 0xacb   :  { %3337 = vst.msk [vmem:[#allocation4 + $0x3] sm:$0x1] %vm7370_vm6, %v3335_v43  ;;  %v3627_v43 = vld [vmem:[%s6900_s9 + $0x20] sm:$0xff] }
 0xacc   :  { %v3347_v21 = vpop.permute.xlu1 %3346  ;;  %v4829_v49 = vpack.c.bf16 %v3628_v44, %v3627_v43 }
 0xacd   :  { %3349 = vst.msk [vmem:[#allocation4 + $0x3] sm:$0x1] %vm1878_vm10, %v3347_v21  ;;  %v3635_v21 = vld [vmem:[%s6900_s9 + $0x60] sm:$0xff]  ;;  %vm7375_vm10 = vcmask 687104  }
 0xace   :  { %4830 = vmatpush3.bf16.msra.mxu1 %v4829_v49 }
 0xacf   :  { %4831 = vmatprep.subr.bf16.mxu1 %v7201_v58 }
 0xad0   :  { %v3358_v27 = vpop.permute.xlu1 %3357 }
 0xad1   :  { %v3359_v30 = vrot.slane %v3358_v27, 6 }
 0xad3   :  { %v3360_v40 = vsel %vm1891_vm14, %v3359_v30, %v3358_v27  ;;  %v3636_v27 = vld [vmem:[%s6900_s9 + $0x68] sm:$0xff]  ;;  %vm3814_vm14 = vcmask 74752  }
 0xad4   :  { %v3353_v35 = vpop.permute.xlu1 %3352  ;;  %v4841_v30 = vpack.c.bf16 %v3636_v27, %v3635_v21 }
 0xad5   :  { %3355 = vst.msk [vmem:[#allocation4 + $0x3] sm:$0x1] %vm1885_vm1, %v3353_v35  ;;  %v3637_v35 = vld [vmem:[%s6900_s9 + $0x70] sm:$0xff] }
 0xad6   :  { %3362 = vst.msk [vmem:[#allocation4 + $0x3] sm:$0x5] %vm6518_vm2, %v3360_v40 }
 0xad8   :  { %v3366_v16 = vpop.permute.xlu1 %3365 }
 0xad9   :  { %3368 = vst.msk [vmem:[#allocation4 + $0x5] sm:$0x1] %vm7371_vm4, %v3366_v16 }
 0xada   :  { %3380 = vst.msk [vmem:[#allocation4 + $0x5] sm:$0x1] %vm7372_vm8, %v3378_v50  ;;  %v3629_v50 = vld [vmem:[%s6900_s9 + $0x30] sm:$0xff] }
 0xadb   :  { %v4832_v54 = vpack.c.bf16 %v3630_v61, %v3629_v50 }
 0xadc   :  { %v3384_v45 = vpop.permute.xlu1 %3383 }
 0xadd   :  { %3386 = vst.msk [vmem:[#allocation4 + $0x5] sm:$0x1] %vm7373_vm13, %v3384_v45  ;;  %4833 = vmatpush3.bf16.msra.mxu1 %v4832_v54 }
 0xade   :  { %4834 = vmatprep.subr.bf16.mxu1 %v7201_v58 }
 0xae0   :  { %v3395_v53 = vpop.permute.xlu1 %3394 }
 0xae1   :  { %v3396_v20 = vrot.slane %v3395_v53, 6  ;;  %4836 = vmatpush3.bf16.msra.mxu1 %v4835_v4 }
 0xae2   :  { %4837 = vmatprep.subr.bf16.mxu1 %v7201_v58 }
 0xae3   :  { %v3397_v38 = vsel %vm1936_vm9, %v3396_v20, %v3395_v53  ;;  %v3899_v53 = vld [vmem:[%s6899_s8] ss:$0 sm:$0xff] }
 0xae4   :  { %v3389_v23 = vpop.permute.xlu1 %3388 }
 0xae5   :  { %3391 = vst.msk [vmem:[#allocation4 + $0x5] sm:$0x1] %vm1929_vm15, %v3389_v23  ;;  %4839 = vmatpush3.bf16.msra.mxu1 %v4838_v41 }
 0xae6   :  { %3399 = vst.msk [vmem:[#allocation4 + $0x5] sm:$0x5] %vm6679_vm3, %v3397_v38  ;;  %4840 = vmatprep.subr.bf16.mxu1 %v7201_v58  ;;  %vm7374_vm3 = vcmask 1043456  }
 0xae9   :  { %4842 = vmatpush3.bf16.msra.mxu1 %v4841_v30 }
 0xaea   :  { %3997 = vmatprep.subr.mxu1 %v7211_v0 }
 0xaed   :  { %v3400_v56 = vld [vmem:[#allocation4] sm:$0xff]  ;;  %3998 = vmatpush3.msra.mxu1 %v3637_v35 }
 0xaee   :  { %v3459_v34 = vcombine.high %v3400_v56, %v3400_v56  ;;  %v3466_v25 = vrot.slane %v3400_v56, %v6382_v48  ;;  %4843 = vmatprep.subr.bf16.mxu1 %v7201_v58 }
 0xaf0   :  { %v3474_v47 = vcombine.high %v3466_v25, %v3466_v25  ;;  %v3473_v29 = vrot.slane %v3459_v34, %v6382_v48  ;;  %v3437_v48 = vld [vmem:[%s6898_s7 + $0x120] sm:$0xff]  ;;  %v4844_v34 = vpack.c.bf16 %v3721_v22, %v3720_v10 }
 0xaf1   :  { %v4802_v2 = vpack.c.bf16 %v3438_v59, %v3437_v48  ;;  %v3727_v48 = vld [vmem:[%s6902_s11 + $0x38] sm:$0xff] }
 0xaf2   :  { %3546 = vmatprep.mubr.f32.mxu0 %v3474_v47  ;;  %v3475_v52 = vcombine.high %v3473_v29, %v3473_v29  ;;  %v3723_v47 = vld [vmem:[%s6902_s11 + $0x18] sm:$0xff] }
 0xaf3   :  { %3547 = vmatmul.mubr.f32.vlgmr.msra.gmra.mrb[16].mxu0 %v3466_v25  ;;  %v3722_v25 = vld [vmem:[%s6902_s11 + $0x10] sm:$0xff] }
 0xaf4   :  { %4797 = vmatpush1.bf16.msra.mxu0 %v4796_v6  ;;  %3900 = vmatprep.mubr.msk.f32.mxu0 %vm3479_vm12, %v3475_v52  ;;  %v4850_v52 = vpack.c.bf16 %v3725_v51, %v3724_v57 }
 0xaf5   :  { %4798 = vmatprep.subr.bf16.mxu0 %v7201_v58 }
 0xaf8   :  { %4800 = vmatpush1.bf16.msra.mxu0 %v4799_v11  ;;  %v3726_v11 = vld [vmem:[%s6902_s11 + $0x30] sm:$0xff] }
 0xaf9   :  { %4801 = vmatprep.subr.bf16.mxu0 %v7201_v58  ;;  %v4853_v59 = vpack.c.bf16 %v3727_v48, %v3726_v11 }
 0xafc   :  { %4803 = vmatpush1.bf16.msra.mxu0 %v4802_v2  ;;  %v3728_v2 = vld [vmem:[%s6902_s11 + $0x40] sm:$0xff] }
 0xafd   :  { %4804 = vmatprep.subr.bf16.mxu0 %v7201_v58  ;;  %v4856_v14 = vpack.c.bf16 %v3729_v3, %v3728_v2 }
 0xb00   :  { %4806 = vmatpush1.bf16.msra.mxu0 %v4805_v60  ;;  %v3730_v60 = vld [vmem:[%s6902_s11 + $0x50] sm:$0xf]  ;;  %s3833_s11 = sshll.u32 %s5125_s10, 4  ;;  %s3834_s11 = int_to_ptr.vmem [resolvable:$true] %s3833_s11 }
 0xb01   :  { %4807 = vmatprep.subr.bf16.mxu0 %v7201_v58  ;;  %p5043_p3 = scmp.lt.s32.totalorder %s3834_s11, %s3834_s11 }
 0xb04   :  { %4809 = vmatpush1.bf16.msra.mxu0 %v4808_v1 }
 0xb05   :  { %4810 = vmatprep.subr.bf16.mxu0 %v7201_v58 }
 0xb08   :  { %4812 = vmatpush1.bf16.msra.mxu0 %v4811_v42 }
 0xb09   :  { %4813 = vmatprep.subr.bf16.mxu0 %v7201_v58 }
 0xb0c   :  { %4815 = vmatpush1.bf16.msra.mxu0 %v4814_v17 }
 0xb0d   :  { %4816 = vmatprep.subr.bf16.mxu0 %v7201_v58 }
 0xb10   :  { %4818 = vmatpush1.bf16.msra.mxu0 %v4817_v33 }
 0xb11   :  { %4819 = vmatprep.subr.bf16.mxu0 %v7201_v58 }
 0xb14   :  { %4821 = vmatpush1.bf16.msra.mxu0 %v4820_v18 }
 0xb17   :  { %3617 = vmatmul.mubr.f32.vlgmr.msra.gmra.mrb[18].mxu0 %v3473_v29  ;;  %v4847_v29 = vpack.c.bf16 %v3723_v47, %v3722_v25 }
 0xbc6   :  { %v3938_v40 = vpop.f32.mrb[16].mxu0 }
 0xbc7   :  { %v3939_v16 = vpop.f32.mrb[17].mxu0 }
 0xbc8   :  { %v3940_v45 = vadd.f32 %v3939_v16, %v3938_v40 }
 0xbca   :  { %v3549_v20 = vadd.f32 %v3940_v45, %v3899_v53 }
 0xbea   :  { %v3618_v23 = vpop.f32.mrb[18].mxu0 }
 0xbeb   :  { %v3619_v38 = vadd.f32 %v3618_v23, %v3549_v20  ;;  %v3620_v56 = vpop.f32.mrb[19].mxu0 }
 0xbed   :  { %4981 = vtanh.f32 %v3619_v38 }
 0xbf7   :  { %v4982_v6 = vpop.eup %4981 }
 0xbf8   :  { %4000 = vmatmul.mubr.msk.f32.vlgmr.msra.gmra.mrb[20].mxu1 %vm3645_vm0, %v4982_v6 }
 0xbf9   :  { %4845 = vmatpush3.bf16.msra.mxu1 %v4844_v34  ;;  %4024 = vmatprep.mubr.msk.f32.mxu1 %vm5124_vm7, %v7211_v0 }
 0xbfa   :  { %4846 = vmatprep.subr.bf16.mxu1 %v7201_v58 }
 0xbfd   :  { %4848 = vmatpush3.bf16.msra.mxu1 %v4847_v29 }
 0xbfe   :  { %4849 = vmatprep.subr.bf16.mxu1 %v7201_v58 }
 0xc01   :  { %4851 = vmatpush3.bf16.msra.mxu1 %v4850_v52 }
 0xc02   :  { %4852 = vmatprep.subr.bf16.mxu1 %v7201_v58 }
 0xc05   :  { %4854 = vmatpush3.bf16.msra.mxu1 %v4853_v59 }
 0xc06   :  { %4855 = vmatprep.subr.bf16.mxu1 %v7201_v58  ;;  %v3903_v58 = vld [vmem:[%s6903_s12] ss:$0 sm:$0xff]  ;;  %s5038_s12 = scalar_lea.vmem %s3834_s11, 32 }
 0xc07   :  { %p5039_p2 = scmp.ne.s32.totalorder %s3834_s11, %s5038_s12  ;;  %p5044_p4 = scmp.lt.s32.totalorder %s5038_s12, %s5038_s12 }
 0xc09   :  { %4857 = vmatpush3.bf16.msra.mxu1 %v4856_v14  ;;  %p5045_p5 = por %p5044_p4, %p5043_p3 }
 0xc0a   :  { %4022 = vmatprep.subr.mxu1 %v7211_v0 }
 0xc0b   :  { %p5046_p6 = pnand %p5045_p5, %p5039_p2 }
 0xc0d   :  { %4023 = vmatpush3.msk.msra.mxu1 %vm7374_vm3, %v3730_v60 }
 0xccb   :  { %v3715_v36 = vpop.f32.mrb[20].mxu1 }
 0xccc   :  { %v3716_v1 = vadd.f32 %v3901_v9, %v3715_v36  ;;  %v4001_v28 = vpop.f32.mrb[21].mxu1 }
 0xcce   :  { %4983 = vtanh.f32 %v3716_v1 }
 0xcd8   :  { %v4984_v39 = vpop.eup %4983 }
 0xcd9   :  { %4025 = vmatmul.mubr.msk.f32.vlgmr.msra.gmra.mrb[22].mxu1 %vm7375_vm10, %v4984_v39 }
 0xdac   :  { %v3810_v0 = vpop.f32.mrb[22].mxu1 }
 0xdad   :  { %v3811_v42 = vadd.f32 %v3903_v58, %v3810_v0  ;;  %v4026_v46 = vpop.f32.mrb[23].mxu1 }
 0xdaf   :  { %v3815_v5 = vsel %vm3814_vm14, %v3811_v42, -inf }
 0xdb0   :  { %3816 = vmax.xlane.f32.xlu0 %v3815_v5 }
 0xe3d   :  { %v3817_v17 = vpop.xlane.xlu0 %3816 }
 0xe3e   :  { %v3818_v63 = vsub.f32 %v3811_v42, %v3817_v17 }
 0xe40   :  { %v3819_v7 = vmul.f32 1.442695, %v3818_v63 }
 0xe42   :  { %4985 = vpow2.f32 %v3819_v7 }
 0xe4c   :  { %v4986_v33 = vpop.eup %4985 }
 0xe4d   :  { %v3821_v12 = vsel %vm3814_vm14, %v4986_v33, 0.0 }
 0xe4e   :  { %3822 = vadd.xlane.f32.xlu1 %v3821_v12 }
 0xedb   :  { %v3823_v13 = vpop.xlane.xlu1 %3822 }
 0xedc   :  { %4987 = vrcp.f32 %v3823_v13 }
 0xee6   :  { %v4988_v18 = vpop.eup %4987 }
 0xee7   :  { %v3825_v19 = vmul.f32 %v4988_v18, %v4986_v33 }
 0xee9   :  { %3826 = vst.msk [vmem:[#allocation10] sm:$0x3] %vm3814_vm14, %v3825_v19 }
 0xeea   :  { %5049 = shalt.err (!%p5046_p6)
}
 0xeeb   :  { %s5050_s3 = scalar_lea.hbm %s6904_s13, 32 }
 0xeec   :  { %p5051_p7 = scmp.ne.s32.totalorder %s6904_s13, %s5050_s3  ;;  %p5054_p8 = scmp.lt.u32.totalorder %s5050_s3, %s6904_s13 }
 0xeee   :  { %p5056_p9 = pnand %p5054_p8, %p5051_p7 }
 0xef0   :  { %5059 = shalt.err (!%p5056_p9)
}
 0xef1   :  { %3836 = dma.vmem_to_hbm [thread:$0]  %s3834_s11, 32, %s6904_s13, [#allocation7]  }
 0xef2   :  { %5064 = dma.done.wait [#allocation7], 32  }
 0xef3   :  { %5065 = vsyncadd [#allocation7], 4294967264 }
 0xef4   :  { %3840 = vsyncpa [#allocation6], 1 }
 0xef5   :  { %3841 = vsyncpa [#allocation9], 1 }
 0xef6   :  { %3842 = vsyncpa [#allocation7], 1 }

</bundles_post_ra>
